<compile_context>
chip_gen: v5e
topology: v5e:2x2
jax: 0.10.0
libtpu: 0.0.40
codegen_flags: <defaults>
</compile_context>

<pallas_src>
import functools

import jax
import jax.numpy as jnp
from jax.experimental import pallas as pl
from jax.experimental.pallas import tpu as pltpu


def _shortcut_kernel(sel_ref, x_ref, o_ref, *, padG):
    """One batch slab per grid step.

    sel_ref: (G*H*W, G*H2*W2)    0/1 block-diagonal selection matrix (VMEM-resident)
    x_ref:   (NB, C/G, G*H*W)    lane-dense input slab
    o_ref:   (NB, C_out/G, Q)    lane-dense output slab, Q = G*H2*W2
    """
    NB, CG, K = x_ref.shape
    Q = o_ref.shape[-1]

    # Fused row+column subsample (+ channel-pair fusion when G>1) as a single
    # exact 0/1 selection matmul on the MXU.  Collapsing (NB, CG) -> NB*CG rows
    # keeps the lane (minor) dim untouched, so the reshape is layout-free.
    x2 = x_ref[...].reshape(NB * CG, K)
    sub = jnp.dot(
        x2,
        sel_ref[...],
        precision=jax.lax.Precision.HIGHEST,
        preferred_element_type=jnp.float32,
    )
    sub3 = sub.reshape(NB, CG, Q).astype(o_ref.dtype)

    # Real channels: single dense store of the whole subsampled slab.
    o_ref[:, pl.ds(padG, CG), :] = sub3

    # Zero-padded channels: written directly from registers (no HBM read, no mask).
    if padG:
        zeros = jnp.zeros((NB, padG, Q), o_ref.dtype)
        o_ref[:, pl.ds(0, padG), :] = zeros
        o_ref[:, pl.ds(padG + CG, padG), :] = zeros


def _build_sel(H, W, G, dtype):
    """sel[g*H*W + h*W + w, g'*H2*W2 + h2*W2 + w2] = 1 iff g==g', h==2*h2, w==2*w2."""
    H2, W2 = H // 2, W // 2
    K = G * H * W
    Q = G * H2 * W2
    k = jnp.arange(K)
    q = jnp.arange(Q)
    g_in, hw = k // (H * W), k % (H * W)
    h, w = hw // W, hw % W
    g_out, q2 = q // (H2 * W2), q % (H2 * W2)
    h2, w2 = q2 // W2, q2 % W2
    sel = (
        (g_in[:, None] == g_out[None, :])
        & (h[:, None] == 2 * h2[None, :])
        & (w[:, None] == 2 * w2[None, :])
    )
    return sel.astype(dtype)


def _pick_batch_tile(N, bytes_per_elem, target_bytes=1 << 20):
    """Largest divisor of N with <= target bytes per step; keep grid length >= 2."""
    nb = 1
    for d in range(1, N + 1):
        if N % d:
            continue
        if d * bytes_per_elem > target_bytes:
            continue
        if N >= 2 and N // d < 2:
            continue
        nb = d
    return nb


def lambda_layer(x, planes):
    """Pallas implementation of the option-A shortcut LambdaLayer (NCHW f32)."""
    N, C, H, W = x.shape
    # PyTorch x[:, :, ::2, ::2] gives ceil(H/2) for odd H; guard to the even (CIFAR) case.
    assert H % 2 == 0 and W % 2 == 0, "stride-2 shortcut assumes even H, W"
    pad = planes // 4
    H2, W2 = H // 2, W // 2
    C_out = C + 2 * pad
    Q0 = H2 * W2

    # Channel-group size G: make the output last dim a multiple of 128 lanes.
    if Q0 % 128 == 0:
        G = 1
    elif 128 % Q0 == 0 and C % (128 // Q0) == 0 and pad % (128 // Q0) == 0:
        G = 128 // Q0
    else:
        G = 1  # TODO(synk): lane-sparse output fallback for non-power-of-two spatials

    K = G * H * W
    Q = G * Q0
    CG = C // G
    CGout = C_out // G
    padG = pad // G

    # Free row-major wrapper reshapes: lane-dense (rows, K) slabs per batch element.
    x_view = x.reshape(N, CG, K)
    sel = _build_sel(H, W, G, x.dtype)

    bytes_per_elem = CG * K * x.dtype.itemsize
    NB = _pick_batch_tile(N, bytes_per_elem)
    grid = (N // NB,)

    kernel = functools.partial(_shortcut_kernel, padG=padG)

    out = pl.pallas_call(
        kernel,
        out_shape=jax.ShapeDtypeStruct((N, CGout, Q), x.dtype),
        grid=grid,
        in_specs=[
            # Constant block index: stays VMEM-resident across grid steps (no re-DMA).
            pl.BlockSpec((K, Q), lambda n: (0, 0)),
            pl.BlockSpec((NB, CG, K), lambda n: (n, 0, 0)),
        ],
        out_specs=pl.BlockSpec((NB, CGout, Q), lambda n: (n, 0, 0)),
        compiler_params=pltpu.CompilerParams(
            dimension_semantics=("parallel",)),
    )(sel, x_view)

    return out.reshape(N, C_out, H2, W2)


def _reference(x, planes):
    pad = planes // 4
    return jnp.pad(x[:, :, ::2, ::2], ((0, 0), (pad, pad), (0, 0), (0, 0)))


if __name__ == "__main__":
    key = jax.random.PRNGKey(0)
    k1, k2 = jax.random.split(key)

    # layer2 first-block shortcut: (N, 16, 32, 32) -> (N, 32, 16, 16), planes=32.
    x1 = jax.random.normal(k1, (2, 16, 32, 32), dtype=jnp.float32)
    out1 = jax.block_until_ready(lambda_layer(x1, planes=32))
    ref1 = _reference(x1, planes=32)
    assert out1.shape == ref1.shape, (out1.shape, ref1.shape)
    assert bool(jnp.allclose(out1, ref1, rtol=1e-6, atol=1e-6))

    # layer3 first-block shortcut: (N, 32, 16, 16) -> (N, 64, 8, 8), planes=64.
    x2 = jax.random.normal(k2, (2, 32, 16, 16), dtype=jnp.float32)
    out2 = jax.block_until_ready(lambda_layer(x2, planes=64))
    ref2 = _reference(x2, planes=64)
    assert out2.shape == ref2.shape, (out2.shape, ref2.shape)
    assert bool(jnp.allclose(out2, ref2, rtol=1e-6, atol=1e-6))

    print("KERNEL_OK")
</pallas_src>

<mosaic_0001>
module attributes {stable_mosaic.version = 11 : i64} {
  func.func @_shortcut_kernel(%arg0: i32, %arg1: memref<1024x256xf32, #tpu.memory_space<vmem>>, %arg2: memref<1x16x1024xf32, #tpu.memory_space<vmem>>, %arg3: memref<1x32x256xf32, #tpu.memory_space<vmem>>) attributes {dimension_semantics = [#tpu.dimension_semantics<parallel>], iteration_bounds = array<i64: 2>, scalar_prefetch = 0 : i64, scratch_operands = 0 : i64, tpu.core_type = #tpu.core_type<tc>, window_params = [{pipeline_mode = #tpu.pipeline_mode<synchronous>, transform_indices = @transform_0, window_bounds = array<i64: 1024, 256>}, {transform_indices = @transform_1, window_bounds = array<i64: 1, 16, 1024>}, {transform_indices = @transform_2, window_bounds = array<i64: 1, 32, 256>}]} {
    %c0 = arith.constant 0 : index
    %c0_0 = arith.constant 0 : index
    %c0_1 = arith.constant 0 : index
    %0 = vector.load %arg2[%c0, %c0_0, %c0_1] : memref<1x16x1024xf32, #tpu.memory_space<vmem>>, vector<1x16x1024xf32>
    %1 = vector.shape_cast %0 : vector<1x16x1024xf32> to vector<16x1024xf32>
    %c0_2 = arith.constant 0 : index
    %c0_3 = arith.constant 0 : index
    %2 = vector.load %arg1[%c0_2, %c0_3] : memref<1024x256xf32, #tpu.memory_space<vmem>>, vector<1024x256xf32>
    %cst = arith.constant dense<0.000000e+00> : vector<16x256xf32>
    %3 = tpu.matmul %1, %2, %cst {dimension_numbers = #tpu.dot_dimension_numbers<[1], [0], [0], [1], [0, 0, 1, 1], [], []>, precision = #tpu.contract_precision<fp32>} : vector<16x1024xf32>, vector<1024x256xf32>, vector<16x256xf32> -> vector<16x256xf32>
    %4 = vector.shape_cast %3 : vector<16x256xf32> to vector<1x16x256xf32>
    %c0_4 = arith.constant 0 : index
    %c8 = arith.constant 8 : index
    %c0_5 = arith.constant 0 : index
    %5 = vector.load %arg3[%c0_4, %c8, %c0_5] : memref<1x32x256xf32, #tpu.memory_space<vmem>>, vector<1x16x256xf32>
    tpu.vector_store %arg3[%c0_4, %c8, %c0_5], %4 {strides = array<i32>} : memref<1x32x256xf32, #tpu.memory_space<vmem>>, vector<1x16x256xf32>,
    %cst_6 = arith.constant 0.000000e+00 : f32
    %6 = vector.broadcast %cst_6 : f32 to vector<1x8x256xf32>
    %c0_7 = arith.constant 0 : index
    %c0_8 = arith.constant 0 : index
    %c0_9 = arith.constant 0 : index
    %7 = vector.load %arg3[%c0_7, %c0_8, %c0_9] : memref<1x32x256xf32, #tpu.memory_space<vmem>>, vector<1x8x256xf32>
    tpu.vector_store %arg3[%c0_7, %c0_8, %c0_9], %6 {strides = array<i32>} : memref<1x32x256xf32, #tpu.memory_space<vmem>>, vector<1x8x256xf32>,
    %c0_10 = arith.constant 0 : index
    %c24 = arith.constant 24 : index
    %c0_11 = arith.constant 0 : index
    %8 = vector.load %arg3[%c0_10, %c24, %c0_11] : memref<1x32x256xf32, #tpu.memory_space<vmem>>, vector<1x8x256xf32>
    tpu.vector_store %arg3[%c0_10, %c24, %c0_11], %6 {strides = array<i32>} : memref<1x32x256xf32, #tpu.memory_space<vmem>>, vector<1x8x256xf32>,
    return
  }
  func.func @transform_0(%arg0: i32) -> (i32, i32) {
    %c0_i32 = arith.constant 0 : i32
    %c0_i32_0 = arith.constant 0 : i32
    %c0_i32_1 = arith.constant 0 : i32
    return %c0_i32, %c0_i32_0 : i32, i32
  }
  func.func @transform_1(%arg0: i32) -> (i32, i32, i32) {
    %c0_i32 = arith.constant 0 : i32
    %c0_i32_0 = arith.constant 0 : i32
    %c0_i32_1 = arith.constant 0 : i32
    return %arg0, %c0_i32, %c0_i32_0 : i32, i32, i32
  }
  func.func @transform_2(%arg0: i32) -> (i32, i32, i32) {
    %c0_i32 = arith.constant 0 : i32
    %c0_i32_0 = arith.constant 0 : i32
    %c0_i32_1 = arith.constant 0 : i32
    return %arg0, %c0_i32, %c0_i32_0 : i32, i32, i32
  }
}

</mosaic_0001>

<bundles_post_ra>
// kernel: tpu_custom_call.1
= control target key start
LH: loop header
LB: loop body
LE: loop exit
PB: predicated region body
PF: predicated region fallthrough
CT: control target
= control target key end

     0   :  { %7 = vsyncpa [#allocation3], 0  ;;  %s11406_s0 = inlined_call_operand.hbm [shape: f32[1024,256], index: 0, kind: input, shape index: {}]   ;;  %s11407_s1 = inlined_call_operand.hbm [shape: f32[2,16,1024], index: 1, kind: input, shape index: {}]   ;;  %s11408_s2 = inlined_call_operand.hbm [shape: f32[2,32,256], index: 2, kind: output, shape index: {}]  }
   0x1   :  { %8 = vsyncpa [#allocation6], 0 }
   0x2   :  { %10 = vsyncpa [#allocation6 + $0x1], 0 }
   0x3   :  { %11 = vsyncpa [#allocation4], 0 }
   0x4   :  { %13 = vsyncpa [#allocation4 + $0x1], 0  ;;  %s6751_s9 = smov 0   ;;  %s6753_s10 = smov 0  }
   0x5   :  { %s6755_s11 = smov 0   ;;  %s6757_s12 = smov 0  }
   0x6 LB: > { %s6772_s13 = sadd.s32 4294967295, %s6726_s12   ;;  %s6514_s14 = sadd.s32 4294967294, %s6726_s12   ;;  %s6726_s12 = sphi %s6757_s12, %s12139_s12   ;;  %s6722_s11 = sphi %s6755_s11, %s12138_s11   ;;  %s6718_s10 = sphi %s6753_s10, %s12137_s10   ;;  %s6714_s9 = sphi %s6751_s9, %s12136_s9  }
   0x7   : > { %p60_p0 = scmp.ne.s32.totalorder %s6718_s10, %s6714_s9  ;;  %p61_p1 = scmp.eq.s32.totalorder %s6772_s13, 0 }
   0x8   : > { %p84_p2 = scmp.eq.s32.totalorder %s6772_s13, 1  ;;  %p90_p3 = scmp.eq.s32.totalorder %s6514_s14, 1 }
   0x9   : > { %p6781_p4 = por %p61_p1, %p60_p0  ;;  %p6515_p5 = scmp.ge.s32.totalorder %s6726_s12, 1 }
   0xa   : > { %p6786_p6 = por %p90_p3, %p60_p0  ;;  %p97_p7 = scmp.lt.s32.totalorder %s6726_s12, 3 }
   0xb   : > { %s108_s19 = sshll.u32 %s11406_s0, 4  ;;  %s6728_s21 = smov [#allocation2]   ;;  %s109_s19 = int_to_ptr.hbm [resolvable:$true] %s108_s19 }
   0xc   : > { %p6794_p8 = pnand %p6515_p5, %p97_p7  ;;  %s110_s22 = sshll.u32 %s6728_s21, 4  ;;  %s111_s22 = int_to_ptr.vmem [resolvable:$true] %s110_s22 }
   0xd   : > { %s6804_s23 = sadd.s32 1, %s6726_s12   ;;  %s6729_s24 = smov 256  }
   0xe   : > { %p6540_p9 = pneg %p6794_p8  ;;  %s6730_s25 = smov 16  }
   0xf   : > { %s44_s26 = ssub.s32 %s6726_s12, %s6804_s23  ;;  %s47_s27 = sadd.s32 1, %s6722_s11 }
  0x10   : > { %p6541_p10 = pnand %p6540_p9, %p61_p1  ;;  %p45_p12 = scmp.eq.s32.totalorder %s44_s26, 0 }
  0x11   : > { %p54_p13 = scmp.ne.s32.totalorder %s6722_s11, %s6718_s10  ;;  %p55_p0 = scmp.eq.s32.totalorder %s6726_s12, 0 }
  0x12   : > { %6543 = dma.hbm_to_vmem [thread:$0]  (!%p6541_p10), %s109_s19, 32768, %s111_s22, [#allocation3], %s6729_s24, %s6729_s24, %s6730_s25  }
  0x13   : > { %p6553_p3 = scmp.lt.s32.totalorder %s6726_s12, 2  ;;  %p56_p5 = por %p55_p0, %p54_p13 }
  0x14   : > { %s6814_s28 = scalar_select %p45_p12, %s6722_s11, %s47_s27  }
  0x15   : > { %p6818_p7 = por %p84_p2, %p54_p13  ;;  %s124_s30 = sand.u32 1, %s6722_s11  }
  0x16   : > { %s6530_s3 = sshll.u32 %s6726_s12, 7  ;;  %s6518_s4 = sshll.u32 %s124_s30, 7 }
  0x17   : > { %s133_s7 = scalar_lea.hbm %s11407_s1, %s6530_s3  ;;  %s128_s14 = scalar_lea.vmem [#allocation5], %s6518_s4 }
  0x18   : > { %s134_s8 = sshll.u32 %s133_s7, 4  ;;  %s136_s17 = sshll.u32 %s128_s14, 4  ;;  %s135_s8 = int_to_ptr.hbm [resolvable:$true] %s134_s8  ;;  %s137_s17 = int_to_ptr.vmem [resolvable:$true] %s136_s17 }
  0x19   : > { %p6829_p9 = pnand %p6553_p3, %p56_p5  ;;  %s125_s19 = scalar_lea.sflag [#allocation6], %s124_s30 }
  0x1a   : > { %s6626_s21 = sshra.s32 %s135_s8, 4  ;;  %s6633_s26 = scalar_lea.hbm %s11407_s1, 256  ;;  %s6627_s21 = int_to_ptr.hbm [resolvable:$true] %s6626_s21 }
  0x1b   : > { %s6628_s22 = scalar_lea.hbm %s6627_s21, 128  ;;  %p6630_p10 = pneg %p6829_p9 }
  0x1c   : > { %p6629_p2 = scmp.ne.s32.totalorder %s6627_s21, %s6628_s22  ;;  %p6634_p0 = scmp.lt.s32.totalorder %s6627_s21, %s11407_s1 }
  0x1d   : > { %p6635_p3 = scmp.lt.s32.totalorder %s6633_s26, %s6628_s22 }
  0x1e   : > { %p6631_p12 = pnand %p6630_p10, %p6629_p2 }
  0x1f   : > { %p6636_p5 = por %p6635_p3, %p6634_p0 }
  0x20   : > { %p6632_p13 = pneg %p6631_p12 }
  0x22   : > { %p6637_p11 = pnand %p6636_p5, %p6632_p13 }
  0x24   : > { %6640 = shalt.err (!%p6637_p11)
}
  0x25   : > { %s6731_s30 = smov 1024   ;;  %s6732_s4 = smov 64  }
  0x26   : > { %6547 = dma.hbm_to_vmem [thread:$0]  (!%p6829_p9), %s135_s8, 2048, %s137_s17, %s125_s19, %s6731_s30, %s6731_s30, %s6732_s4  }
  0x27   : > { %148 = sbr.rel (%p6794_p8) target bundleno = 1062 (0x426), region = 28 }
  0x2c   : > { %6701 = dma.done.wait (%p61_p1), [#allocation3], 32768  }
  0x2d   : > { %6703 = vsyncadd (%p61_p1), [#allocation3], 4294934528  ;;  %s6850_s5 = sand.u32 1, %s6718_s10  }
  0x2e   : > { %s6523_s6 = sshll.u32 %s6850_s5, 7  ;;  %s156_s7 = scalar_lea.sflag [#allocation6], %s6850_s5 }
  0x2f   : > { %s6854_s14 = scalar_lea.vmem [#allocation5], %s6523_s6 }
  0x30   : > { %6705 = dma.done.wait (%p6781_p4), %s156_s7, 2048  }
  0x31   : > { %6707 = vsyncadd (%p6781_p4), %s156_s7, 4294965248  ;;  %v227_v0 = vld [vmem:[#allocation2 + $0xf0] sm:$0xff]  ;;  %v225_v1 = vld [vmem:[#allocation2 + $0xe0] sm:$0xff]  ;;  %s6524_s15 = sshll.u32 %s6850_s5, 6  ;;  %s6531_s8 = sshll.u32 %s6772_s13, 6 }
  0x32   : > { %v223_v2 = vld [vmem:[#allocation2 + $0xd0] sm:$0xff]  ;;  %v6860_v3 = vand.u32 4294901760, %v227_v0  ;;  %v6862_v4 = vand.u32 4294901760, %v225_v1  ;;  %v221_v6 = vld [vmem:[#allocation2 + $0xc0] sm:$0xff]  ;;  %s9955_s20 = scalar_lea.vmem [#allocation7], %s6524_s15  ;;  %s6425_s19 = scalar_lea.hbm %s11408_s2, %s6531_s8 }
  0x33   : > { %v6864_v5 = vand.u32 4294901760, %v223_v2  ;;  %v219_v7 = vld [vmem:[#allocation2 + $0xb0] sm:$0xff]  ;;  %v217_v8 = vld [vmem:[#allocation2 + $0xa0] sm:$0xff]  ;;  %v6866_v9 = vand.u32 4294901760, %v221_v6  ;;  %s6426_s21 = sshll.u32 %s9955_s20, 4  ;;  %s6428_s22 = sshll.u32 %s6425_s19, 4  ;;  %s6427_s21 = int_to_ptr.vmem [resolvable:$true] %s6426_s21  ;;  %s6429_s22 = int_to_ptr.hbm [resolvable:$true] %s6428_s22 }
  0x34   : > { %v6868_v10 = vand.u32 4294901760, %v219_v7  ;;  %v6870_v11 = vand.u32 4294901760, %v217_v8  ;;  %v215_v12 = vld [vmem:[#allocation2 + $0x90] sm:$0xff]  ;;  %v213_v13 = vld [vmem:[#allocation2 + $0x80] sm:$0xff]  ;;  %454 = vmatpush.msra.mxu0 %v6860_v3  ;;  %v6874_v14 = vsub.f32 %v227_v0, %v6860_v3  ;;  %v6877_v15 = vsub.f32 %v225_v1, %v6862_v4  ;;  %667 = vmatpush.msra.mxu3 %v6860_v3  ;;  %s6414_s13 = scalar_lea.sflag [#allocation4], %s6850_s5  ;;  %s6670_s24 = sshra.s32 %s6429_s22, 4  ;;  %s6671_s24 = int_to_ptr.hbm [resolvable:$true] %s6670_s24 }
  0x35   : > { %v6881_v16 = vsub.f32 %v223_v2, %v6864_v5  ;;  %v6883_v17 = vand.u32 4294901760, %v215_v12  ;;  %v211_v18 = vld [vmem:[#allocation2 + $0x70] sm:$0xff]  ;;  %v6886_v19 = vsub.f32 %v221_v6, %v6866_v9  ;;  %v6891_v21 = vand.u32 4294901760, %v213_v13  ;;  %v209_v26 = vld [vmem:[#allocation2 + $0x60] sm:$0xff]  ;;  %s6672_s25 = scalar_lea.hbm %s6671_s24, 64  ;;  %s6676_s3 = scalar_lea.hbm %s11408_s2, 128 }
  0x36   : > { %v6889_v20 = vsub.f32 %v219_v7, %v6868_v10  ;;  %456 = vmatpush.msra.mxu0 %v6862_v4  ;;  %609 = vmatpush.msra.mxu2 %v6874_v14  ;;  %v504_v22 = vand.u32 4294901760, %v6874_v14  ;;  %v510_v23 = vand.u32 4294901760, %v6877_v15  ;;  %v6899_v25 = vsub.f32 %v217_v8, %v6870_v11  ;;  %v207_v36 = vld [vmem:[#allocation2 + $0x50] sm:$0xff]  ;;  %v205_v42 = vld [vmem:[#allocation2 + $0x40] sm:$0xff]  ;;  %p6673_p1 = scmp.ne.s32.totalorder %s6671_s24, %s6672_s25  ;;  %p6677_p11 = scmp.lt.s32.totalorder %s6671_s24, %s11408_s2 }
  0x37   : > { %v11422_v24 = vand.u32 4294901760, %v6881_v16  ;;  %669 = vmatpush.msra.mxu3 %v6862_v4  ;;  %v11421_v27 = vand.u32 4294901760, %v6886_v19  ;;  %v6903_v28 = vand.u32 4294901760, %v211_v18  ;;  %v6906_v29 = vsub.f32 %v215_v12, %v6883_v17  ;;  %v203_v48 = vld [vmem:[#allocation2 + $0x30] sm:$0xff]  ;;  %v201_v54 = vld [vmem:[#allocation2 + $0x20] sm:$0xff]  ;;  %p6678_p9 = scmp.lt.s32.totalorder %s6676_s3, %s6672_s25 }
  0x38   : > { %458 = vmatpush.msra.mxu0 %v6864_v5  ;;  %612 = vmatpush.msra.mxu2 %v6877_v15  ;;  %v505_v30 = vsub.f32 %v6874_v14, %v504_v22  ;;  %v511_v31 = vsub.f32 %v6877_v15, %v510_v23  ;;  %v11418_v33 = vand.u32 4294901760, %v6889_v20  ;;  %v6921_v34 = vand.u32 4294901760, %v209_v26  ;;  %v259_v59 = vld [vmem:[#allocation2 + $0x1f0] sm:$0xff]  ;;  %v257_v2 = vld [vmem:[#allocation2 + $0x1e0] sm:$0xff]  ;;  %p6674_p4 = pnand %p6673_p1, %p6818_p7 }
  0x39   : > { %v517_v32 = vsub.f32 %v6881_v16, %v11422_v24  ;;  %671 = vmatpush.msra.mxu3 %v6864_v5  ;;  %v6924_v35 = vsub.f32 %v213_v13, %v6891_v21  ;;  %v523_v39 = vsub.f32 %v6886_v19, %v11421_v27  ;;  %v11417_v40 = vand.u32 4294901760, %v6899_v25  ;;  %v199_v61 = vld [vmem:[#allocation2 + $0x10] sm:$0xff]  ;;  %v197_v7 = vld [vmem:[#allocation2] sm:$0xff]  ;;  %p6679_p2 = por %p6678_p9, %p6677_p11 }
  0x3a   : > { %460 = vmatpush.msra.mxu0 %v6866_v9  ;;  %v506_v37 = vand.u32 4294901760, %v505_v30  ;;  %615 = vmatpush.msra.mxu2 %v6881_v16  ;;  %v512_v38 = vand.u32 4294901760, %v511_v31  ;;  %v11415_v41 = vand.u32 4294901760, %v6906_v29  ;;  %v529_v44 = vsub.f32 %v6889_v20, %v11418_v33  ;;  %v255_v30 = vld [vmem:[#allocation2 + $0x1d0] sm:$0xff]  ;;  %p6675_p8 = pneg %p6674_p4 }
  0x3b   : > { %673 = vmatpush.msra.mxu3 %v6866_v9  ;;  %v518_v43 = vand.u32 4294901760, %v517_v32  ;;  %v6938_v45 = vand.u32 4294901760, %v207_v36  ;;  %v6941_v46 = vsub.f32 %v211_v18, %v6903_v28  ;;  %v11414_v47 = vand.u32 4294901760, %v6924_v35 }
  0x3c   : > { %462 = vmatpush.msra.mxu0 %v6868_v10  ;;  %507 = vmatpush.msra.mxu1 %v506_v37  ;;  %v524_v49 = vand.u32 4294901760, %v523_v39  ;;  %v535_v50 = vsub.f32 %v6899_v25, %v11417_v40  ;;  %v6950_v51 = vand.u32 4294901760, %v205_v42  ;;  %v6953_v52 = vsub.f32 %v209_v26, %v6921_v34  ;;  %p6680_p10 = pnand %p6679_p2, %p6675_p8 }
  0x3d   : > { %618 = vmatpush.msra.mxu2 %v6886_v19  ;;  %675 = vmatpush.msra.mxu3 %v6868_v10  ;;  %v541_v53 = vsub.f32 %v6906_v29, %v11415_v41  ;;  %v530_v55 = vand.u32 4294901760, %v529_v44  ;;  %v6961_v56 = vand.u32 4294901760, %v203_v48  ;;  %v11412_v57 = vand.u32 4294901760, %v6941_v46 }
  0x3e   : > { %464 = vmatpush.msra.mxu0 %v6870_v11  ;;  %513 = vmatpush.msra.mxu1 %v512_v38  ;;  %v6965_v58 = vsub.f32 %v207_v36, %v6938_v45  ;;  %v547_v60 = vsub.f32 %v6924_v35, %v11414_v47  ;;  %v536_v62 = vand.u32 4294901760, %v535_v50  ;;  %v6973_v63 = vand.u32 4294901760, %v201_v54 }
  0x3f   : > { %621 = vmatpush.msra.mxu2 %v6889_v20  ;;  %677 = vmatpush.msra.mxu3 %v6870_v11  ;;  %v11411_v0 = vand.u32 4294901760, %v6953_v52  ;;  %v6977_v1 = vsub.f32 %v205_v42, %v6950_v51  ;;  %v542_v6 = vand.u32 4294901760, %v541_v53  ;;  %v6981_v8 = vand.u32 4294901760, %v259_v59  ;;  %v253_v42 = vld [vmem:[#allocation2 + $0x1c0] sm:$0xff] }
  0x40   : > { %466 = vmatpush.msra.mxu0 %v6883_v17  ;;  %519 = vmatpush.msra.mxu1 %v518_v43  ;;  %v553_v12 = vsub.f32 %v6941_v46, %v11412_v57  ;;  %v6987_v13 = vand.u32 4294901760, %v199_v61  ;;  %v11410_v18 = vand.u32 4294901760, %v6965_v58  ;;  %v6991_v26 = vsub.f32 %v203_v48, %v6961_v56  ;;  %v247_v57 = vld [vmem:[#allocation2 + $0x190] sm:$0xff] }
  0x41   : > { %624 = vmatpush.msra.mxu2 %v6899_v25  ;;  %679 = vmatpush.msra.mxu3 %v6883_v17  ;;  %v548_v31 = vand.u32 4294901760, %v547_v60  ;;  %v6995_v32 = vand.u32 4294901760, %v257_v2  ;;  %v559_v36 = vsub.f32 %v6953_v52, %v11411_v0  ;;  %v7001_v37 = vand.u32 4294901760, %v197_v7 }
  0x42   : > { %468 = vmatpush.msra.mxu0 %v6891_v21  ;;  %525 = vmatpush.msra.mxu1 %v524_v49  ;;  %v11409_v38 = vand.u32 4294901760, %v6977_v1  ;;  %v7005_v39 = vsub.f32 %v201_v54, %v6973_v63  ;;  %v7010_v43 = vsub.f32 %v259_v59, %v6981_v8  ;;  %v7012_v44 = vand.u32 4294901760, %v255_v30  ;;  %v251_v59 = vld [vmem:[#allocation2 + $0x1b0] sm:$0xff] }
  0x43   : > { %627 = vmatpush.msra.mxu2 %v6906_v29  ;;  %681 = vmatpush.msra.mxu3 %v6891_v21  ;;  %11646 = vst [vmem:[#allocation11_spill] sm:$0xff] %v7001_v37  ;;  %v554_v48 = vand.u32 4294901760, %v553_v12  ;;  %v565_v49 = vsub.f32 %v6965_v58, %v11410_v18  ;;  %v11413_v50 = vand.u32 4294901760, %v6991_v26  ;;  %v7020_v53 = vsub.f32 %v199_v61, %v6987_v13 }
  0x44   : > { %470 = vmatpush.msra.mxu0 %v6903_v28  ;;  %531 = vmatpush.msra.mxu1 %v530_v55  ;;  %v7025_v54 = vsub.f32 %v257_v2, %v6995_v32  ;;  %v7027_v55 = vand.u32 4294901760, %v253_v42  ;;  %v560_v60 = vand.u32 4294901760, %v559_v36  ;;  %v11416_v61 = vand.u32 4294901760, %v7005_v39 }
  0x45   : > { %630 = vmatpush.msra.mxu2 %v6924_v35  ;;  %683 = vmatpush.msra.mxu3 %v6903_v28  ;;  %v11419_v2 = vand.u32 4294901760, %v7010_v43  ;;  %v7041_v12 = vsub.f32 %v255_v30, %v7012_v44  ;;  %v566_v36 = vand.u32 4294901760, %v565_v49  ;;  %v7048_v18 = vand.u32 4294901760, %v251_v59 }
  0x46   : > { %472 = vmatpush.msra.mxu0 %v6921_v34  ;;  %537 = vmatpush.msra.mxu1 %v536_v62  ;;  %v571_v62 = vsub.f32 %v6977_v1, %v11409_v38  ;;  %v577_v38 = vsub.f32 %v6991_v26, %v11413_v50  ;;  %v11423_v30 = vand.u32 4294901760, %v7025_v54  ;;  %v7054_v0 = vsub.f32 %v253_v42, %v7027_v55 }
  0x47   : > { %633 = vmatpush.msra.mxu2 %v6941_v46  ;;  %685 = vmatpush.msra.mxu3 %v6921_v34  ;;  %v583_v49 = vsub.f32 %v7005_v39, %v11416_v61  ;;  %v877_v42 = vsub.f32 %v7010_v43, %v11419_v2  ;;  %v11425_v41 = vand.u32 4294901760, %v7041_v12  ;;  %v7074_v40 = vsub.f32 %v251_v59, %v7048_v18 }
  0x48   : > { %474 = vmatpush.msra.mxu0 %v6938_v45  ;;  %543 = vmatpush.msra.mxu1 %v542_v6  ;;  %v7035_v6 = vsub.f32 %v197_v7, %v7001_v37  ;;  %v11420_v7 = vand.u32 4294901760, %v7020_v53  ;;  %v7076_v33 = vand.u32 4294901760, %v247_v57  ;;  %v883_v2 = vsub.f32 %v7025_v54, %v11423_v30 }
  0x49   : > { %636 = vmatpush.msra.mxu2 %v6953_v52  ;;  %687 = vmatpush.msra.mxu3 %v6938_v45  ;;  %v878_v30 = vand.u32 4294901760, %v877_v42  ;;  %v11647_v42 = vand.u32 4294901760, %v7054_v0  ;;  %v11648_v15 = vand.u32 4294901760, %v6881_v16  ;;  %v11650_v16 = vand.u32 4294901760, %v6886_v19 }
  0x4a   : > { %476 = vmatpush.msra.mxu0 %v6950_v51  ;;  %549 = vmatpush.msra.mxu1 %v548_v31  ;;  %v249_v31 = vld [vmem:[#allocation2 + $0x1a0] sm:$0xff]  ;;  %v11424_v50 = vand.u32 4294901760, %v7035_v6  ;;  %v589_v61 = vsub.f32 %v7020_v53, %v11420_v7  ;;  %v584_v7 = vand.u32 4294901760, %v583_v49  ;;  %v11653_v19 = vand.u32 4294901760, %v6889_v20 }
  0x4b   : > { %639 = vmatpush.msra.mxu2 %v6965_v58  ;;  %689 = vmatpush.msra.mxu3 %v6950_v51  ;;  %v7061_v47 = vand.u32 4294901760, %v249_v31  ;;  %v241_v49 = vld [vmem:[#allocation2 + $0x160] sm:$0xff] }
  0x4c   : > { %478 = vmatpush.msra.mxu0 %v6961_v56  ;;  %555 = vmatpush.msra.mxu1 %v554_v48  ;;  %v572_v48 = vand.u32 4294901760, %v571_v62  ;;  %v578_v62 = vand.u32 4294901760, %v577_v38  ;;  %v243_v38 = vld [vmem:[#allocation2 + $0x170] sm:$0xff]  ;;  %v595_v59 = vsub.f32 %v7035_v6, %v11424_v50  ;;  %v7102_v50 = vsub.f32 %v247_v57, %v7076_v33 }
  0x4d   : > { %642 = vmatpush.msra.mxu2 %v6977_v1  ;;  %691 = vmatpush.msra.mxu3 %v6961_v56  ;;  %v7089_v27 = vsub.f32 %v249_v31, %v7061_v47  ;;  %v7104_v14 = vand.u32 4294901760, %v243_v38 }
  0x4e   : > { %480 = vmatpush.msra.mxu0 %v6973_v63  ;;  %561 = vmatpush.msra.mxu1 %v560_v60  ;;  %v245_v60 = vld [vmem:[#allocation2 + $0x180] sm:$0xff] }
  0x4f   : > { %645 = vmatpush.msra.mxu2 %v6991_v26  ;;  %693 = vmatpush.msra.mxu3 %v6973_v63  ;;  %v7091_v24 = vand.u32 4294901760, %v245_v60 }
  0x50   : > { %482 = vmatpush.msra.mxu0 %v6987_v13  ;;  %567 = vmatpush.msra.mxu1 %v566_v36  ;;  %v590_v36 = vand.u32 4294901760, %v589_v61  ;;  %v895_v61 = vsub.f32 %v7054_v0, %v11647_v42  ;;  %v237_v42 = vld [vmem:[#allocation2 + $0x140] sm:$0xff] }
  0x51   : > { %648 = vmatpush.msra.mxu2 %v7005_v39  ;;  %695 = vmatpush.msra.mxu3 %v6987_v13  ;;  %v7115_v31 = vsub.f32 %v245_v60, %v7091_v24  ;;  %v7128_v60 = vsub.f32 %v243_v38, %v7104_v14 }
  0x52   : > { %484 = vmatpush.msra.mxu0 %v7001_v37  ;;  %573 = vmatpush.msra.mxu1 %v572_v48  ;;  %v889_v48 = vsub.f32 %v7041_v12, %v11425_v41  ;;  %v596_v41 = vand.u32 4294901760, %v595_v59 }
  0x53   : > { %651 = vmatpush.msra.mxu2 %v7020_v53  ;;  %697 = vmatpush.msra.mxu3 %v7001_v37  ;;  %v7117_v37 = vand.u32 4294901760, %v241_v49 }
  0x54   : > { %714 = vmatpush.msrb.mxu0 %v504_v22  ;;  %579 = vmatpush.msra.mxu1 %v578_v62  ;;  %v884_v22 = vand.u32 4294901760, %v883_v2  ;;  %v239_v62 = vld [vmem:[#allocation2 + $0x150] sm:$0xff]  ;;  %v181_v2 = vld [vmem:[%s6854_s14] sm:$0xff] }
  0x55   : > { %654 = vmatpush.msra.mxu2 %v7035_v6  ;;  %879 = vmatpush.msrb.mxu3 %v878_v30  ;;  %v7130_v57 = vand.u32 4294901760, %v239_v62  ;;  %v896_v30 = vand.u32 4294901760, %v895_v61  ;;  %v7142_v38 = vand.u32 4294901760, %v181_v2 }
  0x56   : > { %718 = vmatpush.msrb.mxu0 %v510_v23  ;;  %585 = vmatpush.msra.mxu1 %v584_v7  ;;  %v890_v23 = vand.u32 4294901760, %v889_v48  ;;  %v11649_v7 = vand.u32 4294901760, %v7074_v40 }
  0x57   : > { %826 = vmatpush.msrb.mxu2 %v6981_v8  ;;  %885 = vmatpush.msrb.mxu3 %v884_v22  ;;  %11652 = vst [vmem:[#allocation12_spill] sm:$0xff] %v7142_v38  ;;  %v11654_v22 = vand.u32 4294901760, %v7102_v50 }
  0x58   : > { %722 = vmatpush.msrb.mxu0 %v11648_v15  ;;  %591 = vmatpush.msra.mxu1 %v590_v36  ;;  %v901_v59 = vsub.f32 %v7074_v40, %v11649_v7  ;;  %v11651_v36 = vand.u32 4294901760, %v7089_v27  ;;  %v7140_v7 = vsub.f32 %v241_v49, %v7117_v37  ;;  %v7153_v49 = vsub.f32 %v239_v62, %v7130_v57 }
  0x59   : > { %828 = vmatpush.msrb.mxu2 %v6995_v32  ;;  %891 = vmatpush.msrb.mxu3 %v890_v23  ;;  %v913_v61 = vsub.f32 %v7102_v50, %v11654_v22  ;;  %v11655_v15 = vand.u32 4294901760, %v6899_v25  ;;  %v11656_v23 = vand.u32 4294901760, %v7115_v31  ;;  %v7166_v62 = vsub.f32 %v181_v2, %v7142_v38  ;;  %v233_v25 = vld [vmem:[#allocation2 + $0x120] sm:$0xff] }
  0x5a   : > { %726 = vmatpush.msrb.mxu0 %v11650_v16  ;;  %597 = vmatpush.msra.mxu1 %v596_v41  ;;  %v907_v48 = vsub.f32 %v7089_v27, %v11651_v36  ;;  %v902_v41 = vand.u32 4294901760, %v901_v59  ;;  %v11428_v16 = vand.u32 4294901760, %v7128_v60  ;;  %v235_v36 = vld [vmem:[#allocation2 + $0x130] sm:$0xff]  ;;  %v936_v22 = vand.u32 4294901760, %v7153_v49 }
  0x5b   : > { %830 = vmatpush.msrb.mxu2 %v7012_v44  ;;  %897 = vmatpush.msrb.mxu3 %v896_v30  ;;  %v919_v59 = vsub.f32 %v7115_v31, %v11656_v23  ;;  %11657 = vst [vmem:[#allocation13_spill] sm:$0xff] %v7166_v62  ;;  %v914_v30 = vand.u32 4294901760, %v913_v61  ;;  %v11659_v2 = vand.u32 4294901760, %v6924_v35  ;;  %v231_v23 = vld [vmem:[#allocation2 + $0x110] sm:$0xff]  ;;  %v7192_v35 = vand.u32 4294901760, %v7166_v62 }
  0x5c   : > { %730 = vmatpush.msrb.mxu0 %v11653_v19  ;;  %785 = vmatpush.msrb.mxu1 %v6860_v3  ;;  %v7158_v3 = vand.u32 4294901760, %v237_v42  ;;  %v908_v20 = vand.u32 4294901760, %v907_v48  ;;  %v11427_v19 = vand.u32 4294901760, %v7140_v7  ;;  %v925_v48 = vsub.f32 %v7128_v60, %v11428_v16  ;;  %v229_v16 = vld [vmem:[#allocation2 + $0x100] sm:$0xff] }
  0x5d   : > { %832 = vmatpush.msrb.mxu2 %v7027_v55  ;;  %903 = vmatpush.msrb.mxu3 %v902_v41  ;;  %v920_v41 = vand.u32 4294901760, %v919_v59  ;;  %11660 = vst [vmem:[#allocation14_spill] sm:$0xff] %v7192_v35  ;;  %v937_v59 = vsub.f32 %v7153_v49, %v936_v22 }
  0x5e   : > { %734 = vmatpush.msrb.mxu0 %v11655_v15  ;;  %787 = vmatpush.msrb.mxu1 %v6862_v4  ;;  %v11658_v15 = vand.u32 4294901760, %v6906_v29  ;;  %v7171_v4 = vand.u32 4294901760, %v235_v36  ;;  %v7182_v29 = vsub.f32 %v237_v42, %v7158_v3  ;;  %v931_v61 = vsub.f32 %v7140_v7, %v11427_v19 }
  0x5f   : > { %834 = vmatpush.msrb.mxu2 %v7048_v18  ;;  %909 = vmatpush.msrb.mxu3 %v908_v20  ;;  %v926_v20 = vand.u32 4294901760, %v925_v48  ;;  %v488_v48 = vsub.f32 %v7166_v62, %v7192_v35 }
  0x60   : > { %738 = vmatpush.msrb.mxu0 %v11658_v15  ;;  %789 = vmatpush.msrb.mxu1 %v6864_v5  ;;  %v7184_v5 = vand.u32 4294901760, %v233_v25  ;;  %v189_v15 = vld [vmem:[%s6854_s14 + $0x40] sm:$0xff]  ;;  %v7198_v42 = vsub.f32 %v235_v36, %v7171_v4 }
  0x61   : > { %836 = vmatpush.msrb.mxu2 %v7061_v47  ;;  %915 = vmatpush.msrb.mxu3 %v914_v30  ;;  %v7206_v19 = vand.u32 4294901760, %v189_v15  ;;  %v932_v30 = vand.u32 4294901760, %v931_v61 }
  0x62   : > { %742 = vmatpush.msrb.mxu0 %v11659_v2  ;;  %791 = vmatpush.msrb.mxu1 %v6866_v9  ;;  %v11661_v9 = vand.u32 4294901760, %v6941_v46  ;;  %v7204_v2 = vand.u32 4294901760, %v231_v23  ;;  %v11663_v46 = vand.u32 4294901760, %v6953_v52  ;;  %v7213_v36 = vsub.f32 %v233_v25, %v7184_v5 }
  0x63   : > { %838 = vmatpush.msrb.mxu2 %v7076_v33  ;;  %11662 = vst [vmem:[#allocation15_spill] sm:$0xff] %v7206_v19  ;;  %921 = vmatpush.msrb.mxu3 %v920_v41  ;;  %v7222_v52 = vand.u32 4294901760, %v229_v16  ;;  %v938_v25 = vand.u32 4294901760, %v937_v59  ;;  %v7226_v41 = vsub.f32 %v189_v15, %v7206_v19  ;;  %v7240_v15 = vand.u32 4294901760, %v488_v48 }
  0x64   : > { %746 = vmatpush.msrb.mxu0 %v11661_v9  ;;  %793 = vmatpush.msrb.mxu1 %v6868_v10  ;;  %v942_v10 = vand.u32 4294901760, %v7182_v29  ;;  %v11664_v9 = vand.u32 4294901760, %v6965_v58  ;;  %v7229_v61 = vsub.f32 %v231_v23, %v7204_v2  ;;  %v954_v58 = vand.u32 4294901760, %v7213_v36 }
  0x65   : > { %840 = vmatpush.msrb.mxu2 %v7091_v24  ;;  %927 = vmatpush.msrb.mxu3 %v926_v20  ;;  %11665 = vst [vmem:[#allocation16_spill] sm:$0xff] %v7226_v41  ;;  %v11668_v23 = vand.u32 4294901760, %v6991_v26  ;;  %v7254_v59 = vand.u32 4294901760, %v7226_v41  ;;  %v11671_v26 = vand.u32 4294901760, %v7005_v39  ;;  %v11672_v48 = vand.u32 4294901760, %v7020_v53 }
  0x66   : > { %750 = vmatpush.msrb.mxu0 %v11663_v46  ;;  %795 = vmatpush.msrb.mxu1 %v6870_v11  ;;  %v948_v11 = vand.u32 4294901760, %v7198_v42  ;;  %v11666_v46 = vand.u32 4294901760, %v6977_v1  ;;  %11667 = vst [vmem:[#allocation17_spill] sm:$0xff] %v7240_v15  ;;  %v7249_v1 = vsub.f32 %v229_v16, %v7222_v52  ;;  %v960_v20 = vand.u32 4294901760, %v7229_v61 }
  0x67   : > { %842 = vmatpush.msrb.mxu2 %v7104_v14  ;;  %933 = vmatpush.msrb.mxu3 %v932_v30  ;;  %11669 = vst [vmem:[#allocation18_spill] sm:$0xff] %v7254_v59  ;;  %v955_v16 = vsub.f32 %v7213_v36, %v954_v58 }
  0x68   : > { %754 = vmatpush.msrb.mxu0 %v11664_v9  ;;  %797 = vmatpush.msrb.mxu1 %v6883_v17  ;;  %v943_v17 = vsub.f32 %v7182_v29, %v942_v10  ;;  %v182_v9 = vld [vmem:[%s6854_s14 + $0x8] sm:$0xff]  ;;  %v966_v39 = vand.u32 4294901760, %v7249_v1 }
  0x69   : > { %844 = vmatpush.msrb.mxu2 %v7117_v37  ;;  %939 = vmatpush.msrb.mxu3 %v938_v25  ;;  %v7256_v30 = vand.u32 4294901760, %v182_v9  ;;  %v956_v53 = vand.u32 4294901760, %v955_v16  ;;  %v11680_v16 = vld [vmem:[#allocation11_spill] sm:$0xff] }
  0x6a   : > { %758 = vmatpush.msrb.mxu0 %v11666_v46  ;;  %799 = vmatpush.msrb.mxu1 %v6891_v21  ;;  %v949_v21 = vsub.f32 %v7198_v42, %v948_v11  ;;  %v496_v46 = vsub.f32 %v7226_v41, %v7254_v59 }
  0x6b   : > { %846 = vmatpush.msrb.mxu2 %v7130_v57  ;;  %11670 = vst [vmem:[#allocation19_spill] sm:$0xff] %v7256_v30  ;;  %490 = vmatmul.f32.vlgmr.msra.gmra.mxu0 %v7240_v15 }
  0x6c   : > { %762 = vmatpush.msrb.mxu0 %v11668_v23  ;;  %801 = vmatpush.msrb.mxu1 %v6903_v28  ;;  %v944_v28 = vand.u32 4294901760, %v943_v17  ;;  %v950_v25 = vand.u32 4294901760, %v949_v21  ;;  %v7278_v17 = vsub.f32 %v182_v9, %v7256_v30  ;;  %v11674_v23 = vand.u32 4294901760, %v7035_v6 }
  0x6d   : > { %657 = vmatmul.f32.vlgmr.msra.gmra.mxu2 %v7166_v62  ;;  %701 = vmatmul.f32.vlgmr.msra.gmra.mxu3 %v7192_v35  ;;  %v7290_v21 = vand.u32 4294901760, %v496_v46  ;;  %v11677_v6 = vand.u32 4294901760, %v7010_v43  ;;  %v275_v46 = vld [vmem:[#allocation2 + $0x270] sm:$0xff] }
  0x6e   : > { %766 = vmatpush.msrb.mxu0 %v11671_v26  ;;  %803 = vmatpush.msrb.mxu1 %v6921_v34  ;;  %v961_v34 = vsub.f32 %v7229_v61, %v960_v20  ;;  %11673 = vst [vmem:[#allocation20_spill] sm:$0xff] %v7278_v17  ;;  %v7293_v26 = vand.u32 4294901760, %v7278_v17 }
  0x6f   : > { %848 = vmatpush.msrb.mxu2 %v7158_v3  ;;  %945 = vmatpush.msrb.mxu3 %v944_v28  ;;  %11675 = vst [vmem:[#allocation21_spill] sm:$0xff] %v7290_v21 }
  0x70   : > { %770 = vmatpush.msrb.mxu0 %v11672_v48  ;;  %805 = vmatpush.msrb.mxu1 %v6938_v45  ;;  %v967_v45 = vsub.f32 %v7249_v1, %v966_v39  ;;  %v962_v9 = vand.u32 4294901760, %v961_v34  ;;  %11676 = vst [vmem:[#allocation22_spill] sm:$0xff] %v7293_v26  ;;  %v190_v48 = vld [vmem:[%s6854_s14 + $0x48] sm:$0xff]  ;;  %v277_v34 = vld [vmem:[#allocation2 + $0x280] sm:$0xff] }
  0x71   : > { %850 = vmatpush.msrb.mxu2 %v7171_v4  ;;  %599 = vmatmul.f32.vlgmr.msra.gmra.mxu1 %v7142_v38 }
  0x72   : > { %774 = vmatpush.msrb.mxu0 %v11674_v23  ;;  %807 = vmatpush.msrb.mxu1 %v6950_v51  ;;  %v968_v51 = vand.u32 4294901760, %v967_v45 }
  0x73   : > { %852 = vmatpush.msrb.mxu2 %v7184_v5  ;;  %951 = vmatpush.msrb.mxu3 %v950_v25 }
  0x74   : > { %981 = vmatpush.msra.mxu0 %v7010_v43  ;;  %809 = vmatpush.msrb.mxu1 %v6961_v56  ;;  %v860_v56 = vsub.f32 %v7278_v17, %v7293_v26  ;;  %v7324_v43 = vand.u32 4294901760, %v190_v48 }
  0x75   : > { %854 = vmatpush.msrb.mxu2 %v7204_v2  ;;  %957 = vmatpush.msrb.mxu3 %v956_v53 }
  0x76   : > { %662 = vmatmul.f32.gmra.mxu2 %v7226_v41  ;;  %984 = vmatpush.msra.mxu0 %v7025_v54  ;;  %v7312_v28 = vand.u32 4294901760, %v860_v56  ;;  %11682 = vst [vmem:[#allocation11_spill] sm:$0xff] %v7324_v43  ;;  %v273_v56 = vld [vmem:[#allocation2 + $0x260] sm:$0xff] }
  0x77   : > { %811 = vmatpush.msrb.mxu1 %v6973_v63  ;;  %856 = vmatpush.msrb.mxu2 %v7222_v52  ;;  %v11678_v63 = vand.u32 4294901760, %v7025_v54  ;;  %v11683_v54 = vand.u32 4294901760, %v7054_v0 }
  0x78   : > { %963 = vmatpush.msrb.mxu3 %v962_v9  ;;  %498 = vmatmul.f32.gmra.mxu0 %v7290_v21  ;;  %11679 = vst [vmem:[#allocation23_spill] sm:$0xff] %v7312_v28 }
  0x79   : > { %707 = vmatmul.f32.gmra.mxu3 %v7254_v59  ;;  %987 = vmatpush.msra.mxu0 %v7041_v12  ;;  %v313_v59 = vld [vmem:[#allocation2 + $0x3a0] sm:$0xff] }
  0x7a   : > { %1086 = vmatpush.msra.mxu2 %v11677_v6  ;;  %813 = vmatpush.msrb.mxu1 %v6987_v13  ;;  %v11681_v13 = vand.u32 4294901760, %v7041_v12  ;;  %v7337_v12 = vsub.f32 %v190_v48, %v7324_v43  ;;  %v271_v48 = vld [vmem:[#allocation2 + $0x250] sm:$0xff] }
  0x7b   : > { %969 = vmatpush.msrb.mxu3 %v968_v51  ;;  %603 = vmatmul.f32.gmra.mxu1 %v7206_v19 }
  0x7c   : > { %990 = vmatpush.msra.mxu0 %v7054_v0  ;;  %1090 = vmatpush.msra.mxu2 %v11678_v63  ;;  %11685 = vst [vmem:[#allocation24_spill] sm:$0xff] %v7337_v12  ;;  %v11686_v0 = vand.u32 4294901760, %v7089_v27 }
  0x7d   : > { %1157 = vmatpush.msra.mxu3 %v6981_v8  ;;  %815 = vmatpush.msrb.mxu1 %v11680_v16 }
  0x7e   : > { %993 = vmatpush.msra.mxu0 %v7074_v40  ;;  %1094 = vmatpush.msra.mxu2 %v11681_v13 }
  0x7f   : > { %1039 = vmatpush.msra.mxu1 %v6981_v8  ;;  %1159 = vmatpush.msra.mxu3 %v6995_v32  ;;  %v11684_v8 = vand.u32 4294901760, %v7074_v40  ;;  %v7349_v40 = vand.u32 4294901760, %v7337_v12 }
  0x80   : > { %862 = vmatmul.f32.vlgmr.msrb.gmra.mxu2 %v7312_v28  ;;  %996 = vmatpush.msra.mxu0 %v7089_v27  ;;  %v11689_v27 = vand.u32 4294901760, %v7115_v31 }
  0x81   : > { %1041 = vmatpush.msra.mxu1 %v6995_v32  ;;  %1098 = vmatpush.msra.mxu2 %v11683_v54  ;;  %11687 = vst [vmem:[#allocation25_spill] sm:$0xff] %v7349_v40  ;;  %v11688_v32 = vand.u32 4294901760, %v7102_v50  ;;  %v7480_v54 = vand.u32 4294901760, %v273_v56 }
  0x82   : > { %1161 = vmatpush.msra.mxu3 %v7012_v44  ;;  %776 = vmatmul.f32.vlgmr.msrb.gmra.mxu0 %v7142_v38 }
  0x83   : > { %971 = vmatmul.f32.vlgmr.msrb.gmra.mxu3 %v7256_v30  ;;  %999 = vmatpush.msra.mxu0 %v7102_v50  ;;  %v11691_v50 = vand.u32 4294901760, %v7140_v7 }
  0x84   : > { %1043 = vmatpush.msra.mxu1 %v7012_v44  ;;  %1102 = vmatpush.msra.mxu2 %v11684_v8  ;;  %v11690_v44 = vand.u32 4294901760, %v7128_v60 }
  0x85   : > { %1163 = vmatpush.msra.mxu3 %v7027_v55  ;;  %817 = vmatmul.f32.vlgmr.msrb.gmra.mxu1 %v7142_v38  ;;  %v7658_v38 = vand.u32 4294901760, %v313_v59 }
  0x86   : > { %1002 = vmatpush.msra.mxu0 %v7115_v31  ;;  %1045 = vmatpush.msra.mxu1 %v7027_v55  ;;  %v289_v55 = vld [vmem:[#allocation2 + $0x2e0] sm:$0xff] }
  0x87   : > { %1106 = vmatpush.msra.mxu2 %v11686_v0  ;;  %1165 = vmatpush.msra.mxu3 %v7048_v18  ;;  %v7682_v62 = vsub.f32 %v313_v59, %v7658_v38 }
  0x88   : > { %1005 = vmatpush.msra.mxu0 %v7128_v60  ;;  %1047 = vmatpush.msra.mxu1 %v7048_v18  ;;  %v868_v18 = vsub.f32 %v7337_v12, %v7349_v40 }
  0x89   : > { %1110 = vmatpush.msra.mxu2 %v11688_v32  ;;  %1167 = vmatpush.msra.mxu3 %v7061_v47  ;;  %v269_v32 = vld [vmem:[#allocation2 + $0x240] sm:$0xff] }
  0x8a   : > { %1008 = vmatpush.msra.mxu0 %v7140_v7  ;;  %1049 = vmatpush.msra.mxu1 %v7061_v47  ;;  %v291_v47 = vld [vmem:[#allocation2 + $0x2f0] sm:$0xff]  ;;  %v285_v7 = vld [vmem:[#allocation2 + $0x2c0] sm:$0xff] }
  0x8b   : > { %1114 = vmatpush.msra.mxu2 %v11689_v27  ;;  %1169 = vmatpush.msra.mxu3 %v7076_v33  ;;  %v7378_v31 = vand.u32 4294901760, %v291_v47  ;;  %v7489_v27 = vand.u32 4294901760, %v271_v48 }
  0x8c   : > { %1011 = vmatpush.msra.mxu0 %v7153_v49  ;;  %1051 = vmatpush.msra.mxu1 %v7076_v33  ;;  %v7373_v33 = vand.u32 4294901760, %v868_v18  ;;  %v283_v49 = vld [vmem:[#allocation2 + $0x2b0] sm:$0xff] }
  0x8d   : > { %1118 = vmatpush.msra.mxu2 %v11690_v44  ;;  %1171 = vmatpush.msra.mxu3 %v7091_v24 }
  0x8e   : > { %1014 = vmatpush.msra.mxu0 %v7182_v29  ;;  %1053 = vmatpush.msra.mxu1 %v7091_v24  ;;  %11692 = vst [vmem:[#allocation26_spill] sm:$0xff] %v7373_v33  ;;  %v287_v24 = vld [vmem:[#allocation2 + $0x2d0] sm:$0xff]  ;;  %v7411_v29 = vand.u32 4294901760, %v283_v49 }
  0x8f   : > { %1122 = vmatpush.msra.mxu2 %v11691_v50  ;;  %1173 = vmatpush.msra.mxu3 %v7104_v14  ;;  %v7391_v60 = vand.u32 4294901760, %v287_v24 }
  0x90   : > { %780 = vmatmul.f32.gmra.mxu0 %v7206_v19  ;;  %1055 = vmatpush.msra.mxu1 %v7104_v14  ;;  %v7385_v14 = vand.u32 4294901760, %v289_v55 }
  0x91   : > { %1017 = vmatpush.msra.mxu0 %v7198_v42  ;;  %1126 = vmatpush.msra.mxu2 %v936_v22 }
  0x92   : > { %1175 = vmatpush.msra.mxu3 %v7117_v37  ;;  %1057 = vmatpush.msra.mxu1 %v7117_v37  ;;  %v7394_v37 = vsub.f32 %v291_v47, %v7378_v31  ;;  %v7402_v22 = vsub.f32 %v289_v55, %v7385_v14  ;;  %v183_v47 = vld [vmem:[%s6854_s14 + $0x10] sm:$0xff] }
  0x93   : > { %1020 = vmatpush.msra.mxu0 %v7213_v36  ;;  %1130 = vmatpush.msra.mxu2 %v942_v10  ;;  %v7415_v10 = vsub.f32 %v287_v24, %v7391_v60  ;;  %v279_v36 = vld [vmem:[#allocation2 + $0x290] sm:$0xff] }
  0x94   : > { %1177 = vmatpush.msra.mxu3 %v7130_v57  ;;  %870 = vmatmul.f32.gmra.mxu2 %v7373_v33  ;;  %v11438_v42 = vand.u32 4294901760, %v7394_v37  ;;  %v267_v55 = vld [vmem:[#allocation2 + $0x230] sm:$0xff]  ;;  %v11706_v21 = vand.u32 4294901760, %v7394_v37  ;;  %v11708_v33 = vand.u32 4294901760, %v7402_v22 }
  0x95   : > { %1023 = vmatpush.msra.mxu0 %v7229_v61  ;;  %1059 = vmatpush.msra.mxu1 %v7130_v57  ;;  %v7407_v57 = vand.u32 4294901760, %v285_v7  ;;  %v11436_v61 = vand.u32 4294901760, %v7415_v10  ;;  %v11710_v15 = vand.u32 4294901760, %v7415_v10 }
  0x96   : > { %1134 = vmatpush.msra.mxu2 %v948_v11  ;;  %1179 = vmatpush.msra.mxu3 %v7158_v3  ;;  %v281_v11 = vld [vmem:[#allocation2 + $0x2a0] sm:$0xff] }
  0x97   : > { %975 = vmatmul.f32.gmra.mxu3 %v7324_v43  ;;  %1026 = vmatpush.msra.mxu0 %v7249_v1  ;;  %v7428_v25 = vsub.f32 %v285_v7, %v7407_v57  ;;  %v1261_v9 = vsub.f32 %v7415_v10, %v11436_v61 }
  0x98   : > { %1061 = vmatpush.msra.mxu1 %v7158_v3  ;;  %1138 = vmatpush.msra.mxu2 %v954_v58  ;;  %v11437_v3 = vand.u32 4294901760, %v7402_v22  ;;  %v7425_v58 = vand.u32 4294901760, %v281_v11 }
  0x99   : > { %1181 = vmatpush.msra.mxu3 %v7171_v4  ;;  %821 = vmatmul.f32.gmra.mxu1 %v7206_v19  ;;  %v11434_v53 = vand.u32 4294901760, %v7428_v25  ;;  %v1262_v8 = vand.u32 4294901760, %v1261_v9  ;;  %v7520_v9 = vsub.f32 %v271_v48, %v7489_v27  ;;  %v263_v48 = vld [vmem:[#allocation2 + $0x210] sm:$0xff] }
  0x9a   : > { %1029 = vmatmul.f32.vlgmr.msra.gmra.mxu0 %v7278_v17  ;;  %1063 = vmatpush.msra.mxu1 %v7171_v4  ;;  %v1249_v4 = vsub.f32 %v7394_v37, %v11438_v42  ;;  %v1255_v1 = vsub.f32 %v7402_v22, %v11437_v3  ;;  %v7455_v23 = vsub.f32 %v281_v11, %v7425_v58  ;;  %v321_v42 = vld [vmem:[#allocation2 + $0x3e0] sm:$0xff] }
  0x9b   : > { %1198 = vmatpush.msrb.mxu0 %v7378_v31  ;;  %1142 = vmatpush.msra.mxu2 %v960_v20  ;;  %v7438_v20 = vsub.f32 %v283_v49, %v7411_v29  ;;  %v1267_v13 = vsub.f32 %v7428_v25, %v11434_v53  ;;  %v7503_v49 = vand.u32 4294901760, %v269_v32  ;;  %v7506_v11 = vsub.f32 %v273_v56, %v7480_v54  ;;  %v191_v53 = vld [vmem:[%s6854_s14 + $0x50] sm:$0xff] }
  0x9c   : > { %1183 = vmatpush.msra.mxu3 %v7184_v5  ;;  %1065 = vmatpush.msra.mxu1 %v7184_v5  ;;  %v7442_v5 = vand.u32 4294901760, %v279_v36  ;;  %v1250_v45 = vand.u32 4294901760, %v1249_v4  ;;  %v1256_v63 = vand.u32 4294901760, %v1255_v1  ;;  %v7509_v4 = vand.u32 4294901760, %v183_v47 }
  0x9d   : > { %1200 = vmatpush.msrb.mxu0 %v7385_v14  ;;  %1146 = vmatpush.msra.mxu2 %v966_v39  ;;  %v7449_v39 = vand.u32 4294901760, %v277_v34  ;;  %v11433_v51 = vand.u32 4294901760, %v7438_v20  ;;  %v1268_v24 = vand.u32 4294901760, %v1267_v13 }
  0x9e   : > { %1185 = vmatpush.msra.mxu3 %v7204_v2  ;;  %1148 = vmatmul.f32.vlgmr.msra.gmra.mxu2 %v7256_v30  ;;  %v7468_v6 = vsub.f32 %v279_v36, %v7442_v5  ;;  %11693 = vst [vmem:[#allocation27_spill] sm:$0xff] %v7509_v4 }
  0x9f   : > { %1202 = vmatpush.msrb.mxu0 %v7391_v60  ;;  %1353 = vmatpush.msrb.mxu2 %v7394_v37  ;;  %v7473_v16 = vsub.f32 %v277_v34, %v7449_v39  ;;  %v1273_v0 = vsub.f32 %v7438_v20, %v11433_v51  ;;  %v265_v34 = vld [vmem:[#allocation2 + $0x220] sm:$0xff]  ;;  %v7576_v51 = vand.u32 4294901760, %v191_v53 }
  0xa0   : > { %1067 = vmatpush.msra.mxu1 %v7204_v2  ;;  %1187 = vmatpush.msra.mxu3 %v7222_v52  ;;  %v7465_v2 = vand.u32 4294901760, %v275_v46  ;;  %v11429_v18 = vand.u32 4294901760, %v7468_v6  ;;  %v7528_v13 = vand.u32 4294901760, %v265_v34 }
  0xa1   : > { %1189 = vmatmul.f32.vlgmr.msra.gmra.mxu3 %v7256_v30  ;;  %1204 = vmatpush.msrb.mxu0 %v7407_v57  ;;  %v11430_v50 = vand.u32 4294901760, %v7473_v16  ;;  %v1274_v36 = vand.u32 4294901760, %v1273_v0  ;;  %v7532_v0 = vsub.f32 %v269_v32, %v7503_v49  ;;  %v11439_v32 = vand.u32 4294901760, %v7520_v9  ;;  %11696 = vst [vmem:[#allocation30_spill] sm:$0xff] %v7576_v51 }
  0xa2   : > { %1356 = vmatpush.msrb.mxu2 %v7402_v22  ;;  %1411 = vmatpush.msrb.mxu3 %v7378_v31  ;;  %v7493_v44 = vsub.f32 %v275_v46, %v7465_v2  ;;  %v1285_v1 = vsub.f32 %v7468_v6, %v11429_v18  ;;  %v7516_v46 = vand.u32 4294901760, %v267_v55  ;;  %v7537_v18 = vsub.f32 %v183_v47, %v7509_v4 }
  0xa3   : > { %1069 = vmatpush.msra.mxu1 %v7222_v52  ;;  %1206 = vmatpush.msrb.mxu0 %v7411_v29  ;;  %v11431_v52 = vand.u32 4294901760, %v7455_v23  ;;  %v1291_v56 = vsub.f32 %v7473_v16, %v11430_v50 }
  0xa4   : > { %1073 = vmatmul.f32.vlgmr.msra.gmra.mxu1 %v7293_v26  ;;  %1359 = vmatpush.msrb.mxu2 %v7415_v10  ;;  %11694 = vst [vmem:[#allocation28_spill] sm:$0xff] %v7537_v18  ;;  %v7545_v50 = vsub.f32 %v267_v55, %v7516_v46  ;;  %v7557_v55 = vsub.f32 %v265_v34, %v7528_v13  ;;  %v319_v26 = vld [vmem:[#allocation2 + $0x3d0] sm:$0xff] }
  0xa5   : > { %1251 = vmatpush.msrb.mxu1 %v1250_v45  ;;  %1413 = vmatpush.msrb.mxu3 %v7385_v14  ;;  %v1279_v7 = vsub.f32 %v7455_v23, %v11431_v52  ;;  %v11432_v45 = vand.u32 4294901760, %v7493_v44  ;;  %v1292_v47 = vand.u32 4294901760, %v1291_v56  ;;  %v323_v52 = vld [vmem:[#allocation2 + $0x3f0] sm:$0xff]  ;;  %v7563_v56 = vand.u32 4294901760, %v7537_v18 }
  0xa6   : > { %1208 = vmatpush.msrb.mxu0 %v7425_v58  ;;  %1362 = vmatpush.msrb.mxu2 %v7428_v25  ;;  %v7570_v34 = vand.u32 4294901760, %v323_v52  ;;  %v7612_v30 = vand.u32 4294901760, %v319_v26  ;;  %v303_v10 = vld [vmem:[#allocation2 + $0x350] sm:$0xff] }
  0xa7   : > { %1257 = vmatpush.msrb.mxu1 %v1256_v63  ;;  %1415 = vmatpush.msrb.mxu3 %v7391_v60  ;;  %v1280_v63 = vand.u32 4294901760, %v1279_v7  ;;  %v1297_v7 = vsub.f32 %v7493_v44, %v11432_v45  ;;  %v261_v45 = vld [vmem:[#allocation2 + $0x200] sm:$0xff]  ;;  %11695 = vst [vmem:[#allocation29_spill] sm:$0xff] %v7563_v56 }
  0xa8   : > { %1034 = vmatmul.f32.gmra.mxu0 %v7337_v12  ;;  %1152 = vmatmul.f32.gmra.mxu2 %v7324_v43  ;;  %v7574_v3 = vand.u32 4294901760, %v261_v45  ;;  %v1232_v12 = vsub.f32 %v7537_v18, %v7563_v56  ;;  %11701 = vst [vmem:[#allocation32_spill] sm:$0xff] %v7612_v30 }
  0xa9   : > { %1210 = vmatpush.msrb.mxu0 %v7442_v5  ;;  %1263 = vmatpush.msrb.mxu1 %v1262_v8  ;;  %v11435_v8 = vand.u32 4294901760, %v7506_v11 }
  0xaa   : > { %1365 = vmatpush.msrb.mxu2 %v7438_v20  ;;  %1417 = vmatpush.msrb.mxu3 %v7407_v57  ;;  %v7602_v17 = vsub.f32 %v261_v45, %v7574_v3  ;;  %v7616_v45 = vand.u32 4294901760, %v1232_v12 }
  0xab   : > { %1193 = vmatmul.f32.gmra.mxu3 %v7324_v43  ;;  %1212 = vmatpush.msrb.mxu0 %v7449_v39  ;;  %v7605_v43 = vsub.f32 %v191_v53, %v7576_v51  ;;  %v315_v53 = vld [vmem:[#allocation2 + $0x3b0] sm:$0xff] }
  0xac   : > { %1269 = vmatpush.msrb.mxu1 %v1268_v24  ;;  %1368 = vmatpush.msrb.mxu2 %v7455_v23  ;;  %v1286_v24 = vand.u32 4294901760, %v1285_v1  ;;  %v7553_v1 = vand.u32 4294901760, %v263_v48  ;;  %11702 = vst [vmem:[#allocation33_spill] sm:$0xff] %v7616_v45  ;;  %v7638_v19 = vand.u32 4294901760, %v315_v53  ;;  %v11707_v41 = vand.u32 4294901760, %v7602_v17 }
  0xad   : > { %1419 = vmatpush.msrb.mxu3 %v7411_v29  ;;  %1079 = vmatmul.f32.gmra.mxu1 %v7349_v40  ;;  %v7597_v40 = vand.u32 4294901760, %v321_v42  ;;  %11699 = vst [vmem:[#allocation31_spill] sm:$0xff] %v7605_v43  ;;  %v7629_v12 = vand.u32 4294901760, %v7605_v43 }
  0xae   : > { %1214 = vmatpush.msrb.mxu0 %v7465_v2  ;;  %1275 = vmatpush.msrb.mxu1 %v1274_v36  ;;  %v1303_v36 = vsub.f32 %v7506_v11, %v11435_v8  ;;  %v1309_v8 = vsub.f32 %v7520_v9, %v11439_v32  ;;  %v7583_v61 = vsub.f32 %v263_v48, %v7553_v1 }
  0xaf   : > { %1371 = vmatpush.msrb.mxu2 %v7468_v6  ;;  %1421 = vmatpush.msrb.mxu3 %v7425_v58  ;;  %v7595_v48 = vsub.f32 %v323_v52, %v7570_v34  ;;  %v11700_v52 = vand.u32 4294901760, %v7557_v55  ;;  %v7621_v28 = vsub.f32 %v321_v42, %v7597_v40  ;;  %11703 = vst [vmem:[#allocation34_spill] sm:$0xff] %v7629_v12 }
  0xb0   : > { %1216 = vmatpush.msrb.mxu0 %v7480_v54  ;;  %1281 = vmatpush.msrb.mxu1 %v1280_v63  ;;  %v1298_v63 = vand.u32 4294901760, %v1297_v7  ;;  %v11697_v7 = vand.u32 4294901760, %v7532_v0  ;;  %v7663_v37 = vsub.f32 %v315_v53, %v7638_v19 }
  0xb1   : > { %1374 = vmatpush.msrb.mxu2 %v7473_v16  ;;  %1423 = vmatpush.msrb.mxu3 %v7442_v5 }
  0xb2   : > { %1218 = vmatpush.msrb.mxu0 %v7489_v27  ;;  %1287 = vmatpush.msrb.mxu1 %v1286_v24  ;;  %v1304_v24 = vand.u32 4294901760, %v1303_v36  ;;  %v1315_v32 = vsub.f32 %v7532_v0, %v11697_v7  ;;  %v11698_v36 = vand.u32 4294901760, %v7545_v50 }
  0xb3   : > { %1377 = vmatpush.msrb.mxu2 %v7493_v44  ;;  %1425 = vmatpush.msrb.mxu3 %v7449_v39 }
  0xb4   : > { %1220 = vmatpush.msrb.mxu0 %v7503_v49  ;;  %1293 = vmatpush.msrb.mxu1 %v1292_v47  ;;  %v1310_v47 = vand.u32 4294901760, %v1309_v8  ;;  %v1321_v7 = vsub.f32 %v7545_v50, %v11698_v36  ;;  %v317_v8 = vld [vmem:[#allocation2 + $0x3c0] sm:$0xff]  ;;  %v1327_v36 = vsub.f32 %v7557_v55, %v11700_v52 }
  0xb5   : > { %1380 = vmatpush.msrb.mxu2 %v7506_v11  ;;  %1427 = vmatpush.msrb.mxu3 %v7465_v2  ;;  %v7623_v52 = vand.u32 4294901760, %v317_v8 }
  0xb6   : > { %1222 = vmatpush.msrb.mxu0 %v7516_v46  ;;  %1299 = vmatpush.msrb.mxu1 %v1298_v63  ;;  %v1316_v63 = vand.u32 4294901760, %v1315_v32  ;;  %v7636_v32 = vsub.f32 %v319_v26, %v7612_v30  ;;  %v311_v26 = vld [vmem:[#allocation2 + $0x390] sm:$0xff] }
  0xb7   : > { %1383 = vmatpush.msrb.mxu2 %v7520_v9  ;;  %1429 = vmatpush.msrb.mxu3 %v7480_v54 }
  0xb8   : > { %1224 = vmatpush.msrb.mxu0 %v7528_v13  ;;  %1305 = vmatpush.msrb.mxu1 %v1304_v24  ;;  %v1322_v24 = vand.u32 4294901760, %v1321_v7  ;;  %v11704_v7 = vand.u32 4294901760, %v7583_v61 }
  0xb9   : > { %1386 = vmatpush.msrb.mxu2 %v7532_v0  ;;  %1431 = vmatpush.msrb.mxu3 %v7489_v27 }
  0xba   : > { %1226 = vmatpush.msrb.mxu0 %v7553_v1  ;;  %1311 = vmatpush.msrb.mxu1 %v1310_v47  ;;  %v1328_v47 = vand.u32 4294901760, %v1327_v36  ;;  %v1333_v42 = vsub.f32 %v7583_v61, %v11704_v7  ;;  %v7648_v7 = vsub.f32 %v317_v8, %v7623_v52 }
  0xbb   : > { %1389 = vmatpush.msrb.mxu2 %v7545_v50  ;;  %1433 = vmatpush.msrb.mxu3 %v7503_v49 }
  0xbc   : > { %1228 = vmatpush.msrb.mxu0 %v7574_v3  ;;  %1317 = vmatpush.msrb.mxu1 %v1316_v63  ;;  %v11705_v63 = vand.u32 4294901760, %v7595_v48  ;;  %v1334_v8 = vand.u32 4294901760, %v1333_v42  ;;  %v11463_v53 = vand.u32 4294901760, %v7648_v7 }
  0xbd   : > { %1392 = vmatpush.msrb.mxu2 %v7557_v55  ;;  %1435 = vmatpush.msrb.mxu3 %v7516_v46 }
  0xbe   : > { %1234 = vmatmul.f32.vlgmr.msrb.gmra.mxu0 %v7616_v45  ;;  %1323 = vmatpush.msrb.mxu1 %v1322_v24  ;;  %v1621_v36 = vsub.f32 %v7595_v48, %v11705_v63  ;;  %v1339_v45 = vsub.f32 %v7602_v17, %v11707_v41  ;;  %v1240_v24 = vsub.f32 %v7605_v43, %v7629_v12  ;;  %v7668_v41 = vand.u32 4294901760, %v311_v26  ;;  %v307_v63 = vld [vmem:[#allocation2 + $0x370] sm:$0xff] }
  0xbf   : > { %1458 = vmatpush.msra.mxu0 %v11706_v21  ;;  %1395 = vmatpush.msrb.mxu2 %v7583_v61  ;;  %v309_v21 = vld [vmem:[#allocation2 + $0x380] sm:$0xff] }
  0xc0   : > { %1437 = vmatpush.msrb.mxu3 %v7528_v13  ;;  %1329 = vmatpush.msrb.mxu1 %v1328_v47  ;;  %v1622_v35 = vand.u32 4294901760, %v1621_v36  ;;  %v11709_v47 = vand.u32 4294901760, %v7621_v28  ;;  %v7679_v22 = vand.u32 4294901760, %v1240_v24  ;;  %v11712_v36 = vand.u32 4294901760, %v7636_v32 }
  0xc1   : > { %1462 = vmatpush.msra.mxu0 %v11708_v33  ;;  %1398 = vmatpush.msrb.mxu2 %v7602_v17  ;;  %v1340_v33 = vand.u32 4294901760, %v1339_v45  ;;  %v11713_v45 = vand.u32 4294901760, %v7428_v25  ;;  %v7695_v59 = vsub.f32 %v311_v26, %v7668_v41  ;;  %v7697_v24 = vand.u32 4294901760, %v307_v63 }
  0xc2   : > { %1439 = vmatpush.msrb.mxu3 %v7553_v1  ;;  %1401 = vmatmul.f32.vlgmr.msrb.gmra.mxu2 %v7537_v18  ;;  %v1627_v42 = vsub.f32 %v7621_v28, %v11709_v47  ;;  %11711 = vst [vmem:[#allocation35_spill] sm:$0xff] %v7679_v22  ;;  %v7684_v18 = vand.u32 4294901760, %v309_v21  ;;  %v1633_v47 = vsub.f32 %v7636_v32, %v11712_v36 }
  0xc3   : > { %1466 = vmatpush.msra.mxu0 %v11710_v15  ;;  %1570 = vmatpush.msra.mxu2 %v7570_v34  ;;  %v305_v15 = vld [vmem:[#allocation2 + $0x360] sm:$0xff]  ;;  %v1639_v36 = vsub.f32 %v7648_v7, %v11463_v53  ;;  %v7720_v25 = vsub.f32 %v307_v63, %v7697_v24 }
  0xc4   : > { %1335 = vmatpush.msrb.mxu1 %v1334_v8  ;;  %1441 = vmatpush.msrb.mxu3 %v7574_v3  ;;  %v1628_v8 = vand.u32 4294901760, %v1627_v42  ;;  %v7708_v26 = vand.u32 4294901760, %v305_v15  ;;  %v1634_v42 = vand.u32 4294901760, %v1633_v47 }
  0xc5   : > { %1445 = vmatmul.f32.vlgmr.msrb.gmra.mxu3 %v7563_v56  ;;  %1470 = vmatpush.msra.mxu0 %v11713_v45  ;;  %v7706_v45 = vsub.f32 %v309_v21, %v7684_v18  ;;  %v11715_v56 = vand.u32 4294901760, %v7663_v37  ;;  %v1640_v47 = vand.u32 4294901760, %v1639_v36 }
  0xc6   : > { %1572 = vmatpush.msra.mxu2 %v7597_v40  ;;  %1623 = vmatpush.msra.mxu3 %v1622_v35  ;;  %v11714_v35 = vand.u32 4294901760, %v7438_v20  ;;  %v11716_v20 = vand.u32 4294901760, %v7455_v23  ;;  %v7733_v63 = vsub.f32 %v305_v15, %v7708_v26 }
  0xc7   : > { %1341 = vmatpush.msrb.mxu1 %v1340_v33  ;;  %1242 = vmatmul.f32.gmra.mxu0 %v7679_v22  ;;  %v1645_v53 = vsub.f32 %v7663_v37, %v11715_v56  ;;  %v301_v33 = vld [vmem:[#allocation2 + $0x340] sm:$0xff]  ;;  %v7722_v22 = vand.u32 4294901760, %v303_v10  ;;  %v11467_v21 = vand.u32 4294901760, %v7706_v45 }
  0xc8   : > { %1343 = vmatmul.f32.vlgmr.msrb.gmra.mxu1 %v7509_v4  ;;  %1474 = vmatpush.msra.mxu0 %v11714_v35  ;;  %v299_v35 = vld [vmem:[#allocation2 + $0x330] sm:$0xff] }
  0xc9   : > { %1529 = vmatpush.msra.mxu1 %v7378_v31  ;;  %1574 = vmatpush.msra.mxu2 %v7612_v30  ;;  %v11717_v31 = vand.u32 4294901760, %v7682_v62  ;;  %v7735_v30 = vand.u32 4294901760, %v301_v33  ;;  %v1646_v23 = vand.u32 4294901760, %v1645_v53  ;;  %v7746_v15 = vsub.f32 %v303_v10, %v7722_v22 }
  0xca   : > { %1629 = vmatpush.msra.mxu3 %v1628_v8  ;;  %1478 = vmatpush.msra.mxu0 %v11716_v20  ;;  %v11718_v8 = vand.u32 4294901760, %v7468_v6  ;;  %v11720_v6 = vand.u32 4294901760, %v7473_v16  ;;  %v1663_v53 = vsub.f32 %v7706_v45, %v11467_v21  ;;  %v184_v20 = vld [vmem:[%s6854_s14 + $0x18] sm:$0xff] }
  0xcb   : > { %1531 = vmatpush.msra.mxu1 %v7385_v14  ;;  %1576 = vmatpush.msra.mxu2 %v7623_v52  ;;  %v1651_v56 = vsub.f32 %v7682_v62, %v11717_v31  ;;  %v11719_v14 = vand.u32 4294901760, %v7695_v59  ;;  %v7748_v31 = vand.u32 4294901760, %v299_v35  ;;  %v7759_v10 = vsub.f32 %v301_v33, %v7735_v30 }
  0xcc   : > { %1635 = vmatpush.msra.mxu3 %v1634_v42  ;;  %1406 = vmatmul.f32.gmra.mxu2 %v7605_v43  ;;  %v297_v42 = vld [vmem:[#allocation2 + $0x320] sm:$0xff]  ;;  %v11725_v43 = vand.u32 4294901760, %v7506_v11  ;;  %v11727_v11 = vand.u32 4294901760, %v7520_v9  ;;  %v11729_v9 = vand.u32 4294901760, %v7532_v0 }
  0xcd   : > { %1482 = vmatpush.msra.mxu0 %v11718_v8  ;;  %1533 = vmatpush.msra.mxu1 %v7391_v60  ;;  %v1657_v36 = vsub.f32 %v7695_v59, %v11719_v14  ;;  %v1652_v60 = vand.u32 4294901760, %v1651_v56  ;;  %v295_v14 = vld [vmem:[#allocation2 + $0x310] sm:$0xff]  ;;  %v11721_v56 = vand.u32 4294901760, %v7720_v25  ;;  %v7772_v33 = vsub.f32 %v299_v35, %v7748_v31  ;;  %v293_v8 = vld [vmem:[#allocation2 + $0x300] sm:$0xff] }
  0xce   : > { %1578 = vmatpush.msra.mxu2 %v7638_v19  ;;  %1641 = vmatpush.msra.mxu3 %v1640_v47  ;;  %v7764_v47 = vand.u32 4294901760, %v297_v42  ;;  %v1686_v35 = vand.u32 4294901760, %v7759_v10 }
  0xcf   : > { %1451 = vmatmul.f32.gmra.mxu3 %v7629_v12  ;;  %1486 = vmatpush.msra.mxu0 %v11720_v6  ;;  %v1658_v16 = vand.u32 4294901760, %v1657_v36  ;;  %v1669_v6 = vsub.f32 %v7720_v25, %v11721_v56  ;;  %v7777_v12 = vand.u32 4294901760, %v295_v14  ;;  %v1664_v36 = vand.u32 4294901760, %v1663_v53 }
  0xd0   : > { %1535 = vmatpush.msra.mxu1 %v7407_v57  ;;  %1580 = vmatpush.msra.mxu2 %v7658_v38  ;;  %v11722_v57 = vand.u32 4294901760, %v7493_v44  ;;  %v11724_v56 = vand.u32 4294901760, %v7733_v63  ;;  %v7792_v44 = vand.u32 4294901760, %v293_v8  ;;  %v11726_v53 = vand.u32 4294901760, %v7746_v15 }
  0xd1   : > { %1647 = vmatpush.msra.mxu3 %v1646_v23  ;;  %1347 = vmatmul.f32.gmra.mxu1 %v7576_v51  ;;  %v7779_v23 = vand.u32 4294901760, %v184_v20 }
  0xd2   : > { %1490 = vmatpush.msra.mxu0 %v11722_v57  ;;  %1537 = vmatpush.msra.mxu1 %v7411_v29  ;;  %v1675_v21 = vsub.f32 %v7733_v63, %v11724_v56  ;;  %v7790_v29 = vsub.f32 %v297_v42, %v7764_v47  ;;  %v1681_v57 = vsub.f32 %v7746_v15, %v11726_v53  ;;  %v1692_v56 = vand.u32 4294901760, %v7772_v33 }
  0xd3   : > { %11723 = vst [vmem:[#allocation36_spill] sm:$0xff] %v7779_v23  ;;  %1582 = vmatpush.msra.mxu2 %v7668_v41  ;;  %1653 = vmatpush.msra.mxu3 %v1652_v60  ;;  %v1670_v60 = vand.u32 4294901760, %v1669_v6  ;;  %v192_v6 = vld [vmem:[%s6854_s14 + $0x58] sm:$0xff] }
  0xd4   : > { %1494 = vmatpush.msra.mxu0 %v11725_v43  ;;  %1539 = vmatpush.msra.mxu1 %v7425_v58  ;;  %v7803_v43 = vsub.f32 %v295_v14, %v7777_v12  ;;  %v7806_v58 = vsub.f32 %v184_v20, %v7779_v23  ;;  %v1676_v42 = vand.u32 4294901760, %v1675_v21  ;;  %v7817_v14 = vsub.f32 %v293_v8, %v7792_v44 }
  0xd5   : > { %1584 = vmatpush.msra.mxu2 %v7684_v18  ;;  %1659 = vmatpush.msra.mxu3 %v1658_v16  ;;  %v1687_v16 = vsub.f32 %v7759_v10, %v1686_v35  ;;  %v1682_v20 = vand.u32 4294901760, %v1681_v57  ;;  %v1693_v21 = vsub.f32 %v7772_v33, %v1692_v56  ;;  %v7839_v53 = vand.u32 4294901760, %v192_v6 }
  0xd6   : > { %1498 = vmatpush.msra.mxu0 %v11727_v11  ;;  %1541 = vmatpush.msra.mxu1 %v7442_v5  ;;  %11728 = vst [vmem:[#allocation37_spill] sm:$0xff] %v7806_v58  ;;  %v1698_v5 = vand.u32 4294901760, %v7790_v29  ;;  %v7829_v0 = vand.u32 4294901760, %v7806_v58  ;;  %v11734_v11 = vand.u32 4294901760, %v7583_v61 }
  0xd7   : > { %1586 = vmatpush.msra.mxu2 %v7697_v24  ;;  %1665 = vmatpush.msra.mxu3 %v1664_v36  ;;  %v11730_v36 = vand.u32 4294901760, %v7545_v50  ;;  %v1688_v8 = vand.u32 4294901760, %v1687_v16  ;;  %11733 = vst [vmem:[#allocation39_spill] sm:$0xff] %v7839_v53  ;;  %v1694_v57 = vand.u32 4294901760, %v1693_v21  ;;  %v11740_v21 = vand.u32 4294901760, %v7621_v28 }
  0xd8   : > { %1502 = vmatpush.msra.mxu0 %v11729_v9  ;;  %1543 = vmatpush.msra.mxu1 %v7449_v39  ;;  %v1704_v39 = vand.u32 4294901760, %v7803_v43  ;;  %11731 = vst [vmem:[#allocation38_spill] sm:$0xff] %v7829_v0  ;;  %v1699_v50 = vsub.f32 %v7790_v29, %v1698_v5 }
  0xd9   : > { %1588 = vmatpush.msra.mxu2 %v7708_v26  ;;  %1671 = vmatpush.msra.mxu3 %v1670_v60  ;;  %v11732_v60 = vand.u32 4294901760, %v7557_v55  ;;  %v1604_v55 = vsub.f32 %v7806_v58, %v7829_v0 }
  0xda   : > { %1506 = vmatpush.msra.mxu0 %v11730_v36  ;;  %1545 = vmatpush.msra.mxu1 %v7465_v2  ;;  %v1710_v2 = vand.u32 4294901760, %v7817_v14  ;;  %v1700_v16 = vand.u32 4294901760, %v1699_v50 }
  0xdb   : > { %1590 = vmatpush.msra.mxu2 %v7722_v22  ;;  %1677 = vmatpush.msra.mxu3 %v1676_v42  ;;  %v11735_v42 = vand.u32 4294901760, %v7602_v17  ;;  %v7863_v17 = vand.u32 4294901760, %v1604_v55 }
  0xdc   : > { %1510 = vmatpush.msra.mxu0 %v11732_v60  ;;  %1547 = vmatpush.msra.mxu1 %v7480_v54  ;;  %v1705_v54 = vsub.f32 %v7803_v43, %v1704_v39  ;;  %v1711_v61 = vsub.f32 %v7817_v14, %v1710_v2 }
  0xdd   : > { %1592 = vmatpush.msra.mxu2 %v7735_v30  ;;  %1683 = vmatpush.msra.mxu3 %v1682_v20  ;;  %11737 = vst [vmem:[#allocation41_spill] sm:$0xff] %v7863_v17 }
  0xde   : > { %1514 = vmatpush.msra.mxu0 %v11734_v11  ;;  %1549 = vmatpush.msra.mxu1 %v7489_v27  ;;  %v7858_v27 = vsub.f32 %v192_v6, %v7839_v53  ;;  %v1706_v9 = vand.u32 4294901760, %v1705_v54  ;;  %v341_v6 = vld [vmem:[#allocation2 + $0x480] sm:$0xff] }
  0xdf   : > { %1594 = vmatpush.msra.mxu2 %v7748_v31  ;;  %1689 = vmatpush.msra.mxu3 %v1688_v8  ;;  %v339_v8 = vld [vmem:[#allocation2 + $0x470] sm:$0xff]  ;;  %v337_v54 = vld [vmem:[#allocation2 + $0x460] sm:$0xff] }
  0xe0   : > { %1518 = vmatpush.msra.mxu0 %v11735_v42  ;;  %1551 = vmatpush.msra.mxu1 %v7503_v49  ;;  %11736 = vst [vmem:[#allocation40_spill] sm:$0xff] %v7858_v27  ;;  %v1712_v49 = vand.u32 4294901760, %v1711_v61  ;;  %v7869_v20 = vand.u32 4294901760, %v7858_v27  ;;  %v335_v61 = vld [vmem:[#allocation2 + $0x450] sm:$0xff] }
  0xe1   : > { %1596 = vmatpush.msra.mxu2 %v7764_v47  ;;  %1695 = vmatpush.msra.mxu3 %v1694_v57 }
  0xe2   : > { %1520 = vmatmul.f32.vlgmr.msra.gmra.mxu0 %v7509_v4  ;;  %1553 = vmatpush.msra.mxu1 %v7516_v46  ;;  %11738 = vst [vmem:[#allocation42_spill] sm:$0xff] %v7869_v20  ;;  %v11739_v46 = vand.u32 4294901760, %v7595_v48 }
  0xe3   : > { %1725 = vmatpush.msrb.mxu0 %v7595_v48  ;;  %1598 = vmatpush.msra.mxu2 %v7777_v12  ;;  %v11742_v48 = vand.u32 4294901760, %v7636_v32 }
  0xe4   : > { %1701 = vmatpush.msra.mxu3 %v1700_v16  ;;  %1555 = vmatpush.msra.mxu1 %v7528_v13  ;;  %v1612_v13 = vsub.f32 %v7858_v27, %v7869_v20 }
  0xe5   : > { %1728 = vmatpush.msrb.mxu0 %v7621_v28  ;;  %1600 = vmatpush.msra.mxu2 %v7792_v44  ;;  %v11743_v28 = vand.u32 4294901760, %v7648_v7 }
  0xe6   : > { %1707 = vmatpush.msra.mxu3 %v1706_v9  ;;  %1606 = vmatmul.f32.vlgmr.msra.gmra.mxu2 %v7863_v17 }
  0xe7   : > { %1731 = vmatpush.msrb.mxu0 %v7636_v32  ;;  %1830 = vmatpush.msrb.mxu2 %v11739_v46  ;;  %v11747_v32 = vand.u32 4294901760, %v7695_v59 }
  0xe8   : > { %1557 = vmatpush.msra.mxu1 %v7553_v1  ;;  %1713 = vmatpush.msra.mxu3 %v1712_v49  ;;  %v7889_v1 = vand.u32 4294901760, %v1612_v13  ;;  %v8036_v49 = vand.u32 4294901760, %v337_v54 }
  0xe9   : > { %1715 = vmatmul.f32.vlgmr.msra.gmra.mxu3 %v7779_v23  ;;  %1734 = vmatpush.msrb.mxu0 %v7648_v7  ;;  %v11750_v7 = vand.u32 4294901760, %v7733_v63 }
  0xea   : > { %1834 = vmatpush.msrb.mxu2 %v11740_v21  ;;  %1901 = vmatpush.msrb.mxu3 %v7570_v34  ;;  %11741 = vst [vmem:[#allocation43_spill] sm:$0xff] %v7889_v1  ;;  %v333_v21 = vld [vmem:[#allocation2 + $0x440] sm:$0xff] }
  0xeb   : > { %1559 = vmatpush.msra.mxu1 %v7574_v3  ;;  %1524 = vmatmul.f32.gmra.mxu0 %v7576_v51  ;;  %v11744_v3 = vld [vmem:[#allocation32_spill] sm:$0xff] }
  0xec   : > { %1561 = vmatmul.f32.vlgmr.msra.gmra.mxu1 %v7509_v4  ;;  %1737 = vmatpush.msrb.mxu0 %v7663_v37 }
  0xed   : > { %1783 = vmatpush.msrb.mxu1 %v7570_v34  ;;  %1838 = vmatpush.msrb.mxu2 %v11742_v48  ;;  %v11745_v34 = vand.u32 4294901760, %v7663_v37  ;;  %v8045_v48 = vand.u32 4294901760, %v335_v61 }
  0xee   : > { %1903 = vmatpush.msrb.mxu3 %v7597_v40  ;;  %1740 = vmatpush.msrb.mxu0 %v7682_v62 }
  0xef   : > { %1785 = vmatpush.msrb.mxu1 %v7597_v40  ;;  %1842 = vmatpush.msrb.mxu2 %v11743_v28  ;;  %v11746_v40 = vand.u32 4294901760, %v7682_v62  ;;  %v11748_v62 = vand.u32 4294901760, %v7706_v45 }
  0xf0   : > { %1905 = vmatpush.msrb.mxu3 %v11744_v3  ;;  %1614 = vmatmul.f32.gmra.mxu2 %v7889_v1 }
  0xf1   : > { %1743 = vmatpush.msrb.mxu0 %v7695_v59  ;;  %1787 = vmatpush.msrb.mxu1 %v11744_v3  ;;  %v11751_v59 = vand.u32 4294901760, %v7746_v15 }
  0xf2   : > { %1846 = vmatpush.msrb.mxu2 %v11745_v34  ;;  %1907 = vmatpush.msrb.mxu3 %v7623_v52  ;;  %v185_v34 = vld [vmem:[%s6854_s14 + $0x20] sm:$0xff] }
  0xf3   : > { %1719 = vmatmul.f32.gmra.mxu3 %v7839_v53  ;;  %1746 = vmatpush.msrb.mxu0 %v7706_v45  ;;  %v349_v45 = vld [vmem:[#allocation2 + $0x4c0] sm:$0xff] }
  0xf4   : > { %1789 = vmatpush.msrb.mxu1 %v7623_v52  ;;  %1850 = vmatpush.msrb.mxu2 %v11746_v40  ;;  %v355_v52 = vld [vmem:[#allocation2 + $0x4f0] sm:$0xff] }
  0xf5   : > { %1909 = vmatpush.msrb.mxu3 %v7638_v19  ;;  %1565 = vmatmul.f32.gmra.mxu1 %v7576_v51  ;;  %v7933_v37 = vand.u32 4294901760, %v355_v52 }
  0xf6   : > { %1749 = vmatpush.msrb.mxu0 %v7720_v25  ;;  %1791 = vmatpush.msrb.mxu1 %v7638_v19  ;;  %v11749_v19 = vand.u32 4294901760, %v7720_v25 }
  0xf7   : > { %1854 = vmatpush.msrb.mxu2 %v11747_v32  ;;  %1911 = vmatpush.msrb.mxu3 %v7658_v38  ;;  %v331_v32 = vld [vmem:[#allocation2 + $0x430] sm:$0xff] }
  0xf8   : > { %1752 = vmatpush.msrb.mxu0 %v7733_v63  ;;  %1793 = vmatpush.msrb.mxu1 %v7658_v38  ;;  %v353_v38 = vld [vmem:[#allocation2 + $0x4e0] sm:$0xff]  ;;  %v347_v63 = vld [vmem:[#allocation2 + $0x4b0] sm:$0xff] }
  0xf9   : > { %1858 = vmatpush.msrb.mxu2 %v11748_v62  ;;  %1913 = vmatpush.msrb.mxu3 %v7668_v41  ;;  %v7940_v25 = vand.u32 4294901760, %v353_v38 }
  0xfa   : > { %1755 = vmatpush.msrb.mxu0 %v7746_v15  ;;  %1795 = vmatpush.msrb.mxu1 %v7668_v41  ;;  %v351_v41 = vld [vmem:[#allocation2 + $0x4d0] sm:$0xff]  ;;  %v7962_v15 = vand.u32 4294901760, %v349_v45 }
  0xfb   : > { %1862 = vmatpush.msrb.mxu2 %v11749_v19  ;;  %1915 = vmatpush.msrb.mxu3 %v7684_v18  ;;  %v8059_v19 = vand.u32 4294901760, %v333_v21 }
  0xfc   : > { %1758 = vmatpush.msrb.mxu0 %v7759_v10  ;;  %1797 = vmatpush.msrb.mxu1 %v7684_v18  ;;  %v7947_v18 = vand.u32 4294901760, %v351_v41 }
  0xfd   : > { %1866 = vmatpush.msrb.mxu2 %v11750_v7  ;;  %1917 = vmatpush.msrb.mxu3 %v7697_v24 }
  0xfe   : > { %1761 = vmatpush.msrb.mxu0 %v7772_v33  ;;  %1799 = vmatpush.msrb.mxu1 %v7697_v24  ;;  %v7950_v24 = vsub.f32 %v355_v52, %v7933_v37  ;;  %v7971_v33 = vsub.f32 %v351_v41, %v7947_v18  ;;  %v329_v41 = vld [vmem:[#allocation2 + $0x420] sm:$0xff] }
  0xff   : > { %1870 = vmatpush.msrb.mxu2 %v11751_v59  ;;  %1919 = vmatpush.msrb.mxu3 %v7708_v26  ;;  %v8065_v59 = vand.u32 4294901760, %v185_v34 }
 0x100   : > { %1764 = vmatpush.msrb.mxu0 %v7790_v29  ;;  %1801 = vmatpush.msrb.mxu1 %v7708_v26  ;;  %v7958_v26 = vsub.f32 %v353_v38, %v7940_v25  ;;  %v11481_v10 = vand.u32 4294901760, %v7950_v24  ;;  %v343_v29 = vld [vmem:[#allocation2 + $0x490] sm:$0xff]  ;;  %v8062_v38 = vsub.f32 %v337_v54, %v8036_v49  ;;  %v11766_v51 = vand.u32 4294901760, %v7971_v33 }
 0x101   : > { %1874 = vmatpush.msrb.mxu2 %v1686_v35  ;;  %1921 = vmatpush.msrb.mxu3 %v7722_v22  ;;  %v345_v35 = vld [vmem:[#allocation2 + $0x4a0] sm:$0xff]  ;;  %11752 = vst [vmem:[#allocation32_spill] sm:$0xff] %v8065_v59  ;;  %v8093_v54 = vsub.f32 %v185_v34, %v8065_v59 }
 0x102   : > { %1767 = vmatpush.msrb.mxu0 %v7803_v43  ;;  %1803 = vmatpush.msrb.mxu1 %v7722_v22  ;;  %v7967_v22 = vand.u32 4294901760, %v347_v63  ;;  %v11478_v43 = vand.u32 4294901760, %v7971_v33 }
 0x103   : > { %1878 = vmatpush.msrb.mxu2 %v1692_v56  ;;  %1923 = vmatpush.msrb.mxu3 %v7735_v30  ;;  %v7981_v56 = vand.u32 4294901760, %v345_v35  ;;  %11753 = vst [vmem:[#allocation44_spill] sm:$0xff] %v8093_v54 }
 0x104   : > { %1770 = vmatpush.msrb.mxu0 %v7817_v14  ;;  %1805 = vmatpush.msrb.mxu1 %v7735_v30  ;;  %v11480_v30 = vand.u32 4294901760, %v7958_v26  ;;  %v7994_v36 = vsub.f32 %v347_v63, %v7967_v22  ;;  %v2005_v57 = vsub.f32 %v7971_v33, %v11478_v43  ;;  %v8072_v63 = vand.u32 4294901760, %v331_v32  ;;  %v383_v43 = vld [vmem:[#allocation2 + $0x5d0] sm:$0xff] }
 0x105   : > { %1882 = vmatpush.msrb.mxu2 %v1698_v5  ;;  %1925 = vmatpush.msrb.mxu3 %v7748_v31  ;;  %v7984_v5 = vsub.f32 %v349_v45, %v7962_v15  ;;  %v8011_v50 = vsub.f32 %v345_v35, %v7981_v56 }
 0x106   : > { %1773 = vmatmul.f32.vlgmr.msrb.gmra.mxu0 %v7806_v58  ;;  %1807 = vmatpush.msrb.mxu1 %v7748_v31  ;;  %v1993_v31 = vsub.f32 %v7950_v24, %v11481_v10  ;;  %v1999_v14 = vsub.f32 %v7958_v26, %v11480_v30  ;;  %v11476_v11 = vand.u32 4294901760, %v7994_v36  ;;  %v2006_v46 = vand.u32 4294901760, %v2005_v57  ;;  %v327_v57 = vld [vmem:[#allocation2 + $0x410] sm:$0xff]  ;;  %v377_v58 = vld [vmem:[#allocation2 + $0x5a0] sm:$0xff] }
 0x107   : > { %1942 = vmatpush.msra.mxu0 %v7933_v37  ;;  %1886 = vmatpush.msrb.mxu2 %v1704_v39  ;;  %v8005_v39 = vand.u32 4294901760, %v341_v6  ;;  %v11477_v60 = vand.u32 4294901760, %v7984_v5 }
 0x108   : > { %1927 = vmatpush.msrb.mxu3 %v7764_v47  ;;  %1809 = vmatpush.msrb.mxu1 %v7764_v47  ;;  %v7998_v47 = vand.u32 4294901760, %v343_v29  ;;  %v2000_v42 = vand.u32 4294901760, %v1999_v14  ;;  %v2017_v13 = vsub.f32 %v7994_v36, %v11476_v11  ;;  %v8084_v14 = vand.u32 4294901760, %v329_v41 }
 0x109   : > { %1944 = vmatpush.msra.mxu0 %v7940_v25  ;;  %1890 = vmatpush.msrb.mxu2 %v1710_v2  ;;  %v1994_v2 = vand.u32 4294901760, %v1993_v31  ;;  %v8029_v16 = vsub.f32 %v341_v6, %v8005_v39  ;;  %v2011_v9 = vsub.f32 %v7984_v5, %v11477_v60 }
 0x10a   : > { %1929 = vmatpush.msrb.mxu3 %v7777_v12  ;;  %1892 = vmatmul.f32.vlgmr.msrb.gmra.mxu2 %v7779_v23  ;;  %v8024_v55 = vsub.f32 %v343_v29, %v7998_v47  ;;  %v2018_v7 = vand.u32 4294901760, %v2017_v13  ;;  %v8076_v29 = vsub.f32 %v335_v61, %v8045_v48 }
 0x10b   : > { %1946 = vmatpush.msra.mxu0 %v7947_v18  ;;  %2097 = vmatpush.msra.mxu2 %v7950_v24  ;;  %v11472_v40 = vand.u32 4294901760, %v8029_v16  ;;  %v2012_v62 = vand.u32 4294901760, %v2011_v9 }
 0x10c   : > { %1811 = vmatpush.msrb.mxu1 %v7777_v12  ;;  %1931 = vmatpush.msrb.mxu3 %v7792_v44  ;;  %v8021_v12 = vand.u32 4294901760, %v339_v8  ;;  %v11473_v28 = vand.u32 4294901760, %v8024_v55  ;;  %v11475_v9 = vand.u32 4294901760, %v8076_v29 }
 0x10d   : > { %1933 = vmatmul.f32.vlgmr.msrb.gmra.mxu3 %v7779_v23  ;;  %1948 = vmatpush.msra.mxu0 %v7962_v15  ;;  %v2035_v6 = vsub.f32 %v8029_v16, %v11472_v40  ;;  %v8214_v23 = vand.u32 4294901760, %v377_v58 }
 0x10e   : > { %2100 = vmatpush.msra.mxu2 %v7958_v26  ;;  %2155 = vmatpush.msra.mxu3 %v7933_v37  ;;  %v8049_v3 = vsub.f32 %v339_v8, %v8021_v12  ;;  %v2029_v45 = vsub.f32 %v8024_v55, %v11473_v28  ;;  %v11470_v8 = vand.u32 4294901760, %v8062_v38  ;;  %v385_v28 = vld [vmem:[#allocation2 + $0x5e0] sm:$0xff] }
 0x10f   : > { %1813 = vmatpush.msrb.mxu1 %v7792_v44  ;;  %1778 = vmatmul.f32.gmra.mxu0 %v7858_v27  ;;  %v11474_v44 = vand.u32 4294901760, %v8011_v50  ;;  %v2036_v13 = vand.u32 4294901760, %v2035_v6  ;;  %v8119_v6 = vand.u32 4294901760, %v8093_v54  ;;  %v8238_v4 = vsub.f32 %v377_v58, %v8214_v23 }
 0x110   : > { %1817 = vmatmul.f32.vlgmr.msrb.gmra.mxu1 %v7829_v0  ;;  %1950 = vmatpush.msra.mxu0 %v7967_v22  ;;  %v11471_v35 = vand.u32 4294901760, %v8049_v3  ;;  %v2047_v34 = vsub.f32 %v8062_v38, %v11470_v8  ;;  %v2053_v8 = vsub.f32 %v8076_v29, %v11475_v9 }
 0x111   : > { %1995 = vmatpush.msra.mxu1 %v1994_v2  ;;  %2103 = vmatpush.msra.mxu2 %v7971_v33  ;;  %v2023_v52 = vsub.f32 %v8011_v50, %v11474_v44  ;;  %v8088_v2 = vsub.f32 %v333_v21, %v8059_v19  ;;  %v387_v21 = vld [vmem:[#allocation2 + $0x5f0] sm:$0xff]  ;;  %11754 = vst [vmem:[#allocation45_spill] sm:$0xff] %v8119_v6 }
 0x112   : > { %2157 = vmatpush.msra.mxu3 %v7940_v25  ;;  %1952 = vmatpush.msra.mxu0 %v7981_v56  ;;  %v2041_v61 = vsub.f32 %v8049_v3, %v11471_v35  ;;  %v1976_v60 = vsub.f32 %v8093_v54, %v8119_v6  ;;  %v367_v33 = vld [vmem:[#allocation2 + $0x550] sm:$0xff] }
 0x113   : > { %2001 = vmatpush.msra.mxu1 %v2000_v42  ;;  %2106 = vmatpush.msra.mxu2 %v7984_v5  ;;  %v2024_v31 = vand.u32 4294901760, %v2023_v52  ;;  %v2030_v42 = vand.u32 4294901760, %v2029_v45  ;;  %v325_v52 = vld [vmem:[#allocation2 + $0x400] sm:$0xff] }
 0x114   : > { %2159 = vmatpush.msra.mxu3 %v7947_v18  ;;  %1896 = vmatmul.f32.gmra.mxu2 %v7839_v53  ;;  %v193_v45 = vld [vmem:[%s6854_s14 + $0x60] sm:$0xff]  ;;  %v8130_v40 = vand.u32 4294901760, %v325_v52 }
 0x115   : > { %1954 = vmatpush.msra.mxu0 %v7998_v47  ;;  %2007 = vmatpush.msra.mxu1 %v2006_v46  ;;  %v8101_v46 = vsub.f32 %v331_v32, %v8072_v63  ;;  %v8113_v32 = vsub.f32 %v329_v41, %v8084_v14  ;;  %v8126_v41 = vand.u32 4294901760, %v387_v21  ;;  %v8132_v44 = vand.u32 4294901760, %v193_v45 }
 0x116   : > { %2109 = vmatpush.msra.mxu2 %v7994_v36  ;;  %2161 = vmatpush.msra.mxu3 %v7962_v15  ;;  %v8158_v30 = vsub.f32 %v325_v52, %v8130_v40  ;;  %v8172_v52 = vand.u32 4294901760, %v1976_v60 }
 0x117   : > { %1937 = vmatmul.f32.gmra.mxu3 %v7839_v53  ;;  %1956 = vmatpush.msra.mxu0 %v8005_v39  ;;  %v11482_v35 = vand.u32 4294901760, %v8101_v46  ;;  %11755 = vst [vmem:[#allocation46_spill] sm:$0xff] %v8132_v44  ;;  %v11485_v11 = vand.u32 4294901760, %v8113_v32  ;;  %v8161_v10 = vsub.f32 %v193_v45, %v8132_v44  ;;  %v379_v45 = vld [vmem:[#allocation2 + $0x5b0] sm:$0xff]  ;;  %v11762_v53 = vand.u32 4294901760, %v7950_v24 }
 0x118   : > { %2013 = vmatpush.msra.mxu1 %v2012_v62  ;;  %2112 = vmatpush.msra.mxu2 %v8011_v50  ;;  %v8109_v62 = vand.u32 4294901760, %v327_v57  ;;  %11758 = vst [vmem:[#allocation49_spill] sm:$0xff] %v8172_v52  ;;  %v8194_v27 = vand.u32 4294901760, %v379_v45  ;;  %v11763_v1 = vand.u32 4294901760, %v8158_v30 }
 0x119   : > { %2163 = vmatpush.msra.mxu3 %v7967_v22  ;;  %1823 = vmatmul.f32.gmra.mxu1 %v7869_v20  ;;  %11756 = vst [vmem:[#allocation47_spill] sm:$0xff] %v8161_v10  ;;  %v8168_v20 = vand.u32 4294901760, %v383_v43  ;;  %v8185_v60 = vand.u32 4294901760, %v8161_v10 }
 0x11a   : > { %1958 = vmatpush.msra.mxu0 %v8021_v12  ;;  %2019 = vmatpush.msra.mxu1 %v2018_v7  ;;  %v11479_v7 = vand.u32 4294901760, %v8088_v2  ;;  %v8139_v9 = vsub.f32 %v327_v57, %v8109_v62  ;;  %v8151_v57 = vsub.f32 %v387_v21, %v8126_v41  ;;  %v2071_v21 = vsub.f32 %v8113_v32, %v11485_v11 }
 0x11b   : > { %2115 = vmatpush.msra.mxu2 %v8024_v55  ;;  %2165 = vmatpush.msra.mxu3 %v7981_v56  ;;  %11757 = vst [vmem:[#allocation48_spill] sm:$0xff] %v8168_v20  ;;  %v8219_v24 = vsub.f32 %v379_v45, %v8194_v27 }
 0x11c   : > { %1960 = vmatpush.msra.mxu0 %v8036_v49  ;;  %2025 = vmatpush.msra.mxu1 %v2024_v31  ;;  %v2042_v31 = vand.u32 4294901760, %v2041_v61  ;;  %v2059_v61 = vsub.f32 %v8088_v2, %v11479_v7  ;;  %v8153_v7 = vand.u32 4294901760, %v385_v28  ;;  %11759 = vst [vmem:[#allocation50_spill] sm:$0xff] %v8185_v60 }
 0x11d   : > { %2118 = vmatpush.msra.mxu2 %v8029_v16  ;;  %2167 = vmatpush.msra.mxu3 %v7998_v47 }
 0x11e   : > { %1962 = vmatpush.msra.mxu0 %v8045_v48  ;;  %2031 = vmatpush.msra.mxu1 %v2030_v42  ;;  %v2048_v42 = vand.u32 4294901760, %v2047_v34  ;;  %v2065_v34 = vsub.f32 %v8101_v46, %v11482_v35  ;;  %v8177_v0 = vsub.f32 %v385_v28, %v8153_v7  ;;  %v11764_v35 = vand.u32 4294901760, %v7958_v26 }
 0x11f   : > { %2121 = vmatpush.msra.mxu2 %v8049_v3  ;;  %2169 = vmatpush.msra.mxu3 %v8005_v39 }
 0x120   : > { %1964 = vmatpush.msra.mxu0 %v8059_v19  ;;  %2037 = vmatpush.msra.mxu1 %v2036_v13  ;;  %v2054_v13 = vand.u32 4294901760, %v2053_v8  ;;  %v381_v8 = vld [vmem:[#allocation2 + $0x5c0] sm:$0xff] }
 0x121   : > { %2124 = vmatpush.msra.mxu2 %v8062_v38  ;;  %2171 = vmatpush.msra.mxu3 %v8021_v12  ;;  %v8179_v11 = vand.u32 4294901760, %v381_v8 }
 0x122   : > { %1966 = vmatpush.msra.mxu0 %v8072_v63  ;;  %2043 = vmatpush.msra.mxu1 %v2042_v31  ;;  %v2060_v31 = vand.u32 4294901760, %v2059_v61  ;;  %v8192_v61 = vsub.f32 %v383_v43, %v8168_v20  ;;  %v375_v43 = vld [vmem:[#allocation2 + $0x590] sm:$0xff] }
 0x123   : > { %2127 = vmatpush.msra.mxu2 %v8076_v29  ;;  %2173 = vmatpush.msra.mxu3 %v8036_v49 }
 0x124   : > { %1968 = vmatpush.msra.mxu0 %v8084_v14  ;;  %2049 = vmatpush.msra.mxu1 %v2048_v42  ;;  %v2066_v42 = vand.u32 4294901760, %v2065_v34  ;;  %v11760_v34 = vand.u32 4294901760, %v8139_v9 }
 0x125   : > { %2130 = vmatpush.msra.mxu2 %v8088_v2  ;;  %2175 = vmatpush.msra.mxu3 %v8045_v48 }
 0x126   : > { %1970 = vmatpush.msra.mxu0 %v8109_v62  ;;  %2055 = vmatpush.msra.mxu1 %v2054_v13  ;;  %v2072_v13 = vand.u32 4294901760, %v2071_v21  ;;  %v2077_v28 = vsub.f32 %v8139_v9, %v11760_v34  ;;  %v8204_v34 = vsub.f32 %v381_v8, %v8179_v11 }
 0x127   : > { %2133 = vmatpush.msra.mxu2 %v8101_v46  ;;  %2177 = vmatpush.msra.mxu3 %v8059_v19 }
 0x128   : > { %1972 = vmatpush.msra.mxu0 %v8130_v40  ;;  %2061 = vmatpush.msra.mxu1 %v2060_v31  ;;  %v11761_v31 = vand.u32 4294901760, %v8151_v57  ;;  %v2078_v8 = vand.u32 4294901760, %v2077_v28  ;;  %v11501_v45 = vand.u32 4294901760, %v8204_v34 }
 0x129   : > { %2136 = vmatpush.msra.mxu2 %v8113_v32  ;;  %2179 = vmatpush.msra.mxu3 %v8072_v63 }
 0x12a   : > { %1978 = vmatmul.f32.vlgmr.msra.gmra.mxu0 %v8172_v52  ;;  %2067 = vmatpush.msra.mxu1 %v2066_v42  ;;  %v2365_v21 = vsub.f32 %v8151_v57, %v11761_v31  ;;  %v2083_v52 = vsub.f32 %v8158_v30, %v11763_v1  ;;  %v1984_v42 = vsub.f32 %v8161_v10, %v8185_v60  ;;  %v8224_v1 = vand.u32 4294901760, %v375_v43  ;;  %v371_v31 = vld [vmem:[#allocation2 + $0x570] sm:$0xff] }
 0x12b   : > { %2202 = vmatpush.msrb.mxu0 %v11762_v53  ;;  %2139 = vmatpush.msra.mxu2 %v8139_v9  ;;  %v373_v53 = vld [vmem:[#allocation2 + $0x580] sm:$0xff] }
 0x12c   : > { %2181 = vmatpush.msra.mxu3 %v8084_v14  ;;  %2073 = vmatpush.msra.mxu1 %v2072_v13  ;;  %v2366_v17 = vand.u32 4294901760, %v2365_v21  ;;  %v11765_v13 = vand.u32 4294901760, %v8177_v0  ;;  %v2084_v26 = vand.u32 4294901760, %v2083_v52  ;;  %v11768_v21 = vand.u32 4294901760, %v8192_v61 }
 0x12d   : > { %2206 = vmatpush.msrb.mxu0 %v11764_v35  ;;  %2142 = vmatpush.msra.mxu2 %v8158_v30  ;;  %v8235_v35 = vand.u32 4294901760, %v1984_v42  ;;  %v11769_v52 = vand.u32 4294901760, %v7984_v5  ;;  %v8251_v58 = vsub.f32 %v375_v43, %v8224_v1  ;;  %v8253_v42 = vand.u32 4294901760, %v371_v31 }
 0x12e   : > { %2183 = vmatpush.msra.mxu3 %v8109_v62  ;;  %2145 = vmatmul.f32.vlgmr.msra.gmra.mxu2 %v8093_v54  ;;  %v2371_v28 = vsub.f32 %v8177_v0, %v11765_v13  ;;  %v8240_v54 = vand.u32 4294901760, %v373_v53  ;;  %v2377_v13 = vsub.f32 %v8192_v61, %v11768_v21  ;;  %v2383_v21 = vsub.f32 %v8204_v34, %v11501_v45 }
 0x12f   : > { %2210 = vmatpush.msrb.mxu0 %v11766_v51  ;;  %2314 = vmatpush.msrb.mxu2 %v8126_v41  ;;  %11767 = vst [vmem:[#allocation51_spill] sm:$0xff] %v8235_v35  ;;  %v369_v51 = vld [vmem:[#allocation2 + $0x560] sm:$0xff]  ;;  %v8276_v5 = vsub.f32 %v371_v31, %v8253_v42 }
 0x130   : > { %2079 = vmatpush.msra.mxu1 %v2078_v8  ;;  %2185 = vmatpush.msra.mxu3 %v8130_v40  ;;  %v2372_v8 = vand.u32 4294901760, %v2371_v28  ;;  %v8264_v43 = vand.u32 4294901760, %v369_v51  ;;  %v2378_v28 = vand.u32 4294901760, %v2377_v13  ;;  %v2384_v13 = vand.u32 4294901760, %v2383_v21 }
 0x131   : > { %2189 = vmatmul.f32.vlgmr.msra.gmra.mxu3 %v8119_v6  ;;  %2214 = vmatpush.msrb.mxu0 %v11769_v52  ;;  %v8262_v52 = vsub.f32 %v373_v53, %v8240_v54  ;;  %v11771_v6 = vand.u32 4294901760, %v8219_v24 }
 0x132   : > { %2316 = vmatpush.msrb.mxu2 %v8153_v7  ;;  %2367 = vmatpush.msrb.mxu3 %v2366_v17  ;;  %v11770_v17 = vand.u32 4294901760, %v7994_v36  ;;  %v11772_v36 = vand.u32 4294901760, %v8011_v50  ;;  %v8289_v31 = vsub.f32 %v369_v51, %v8264_v43 }
 0x133   : > { %2085 = vmatpush.msra.mxu1 %v2084_v26  ;;  %1986 = vmatmul.f32.gmra.mxu0 %v8235_v35  ;;  %v2389_v45 = vsub.f32 %v8219_v24, %v11771_v6  ;;  %v365_v26 = vld [vmem:[#allocation2 + $0x540] sm:$0xff]  ;;  %v8278_v35 = vand.u32 4294901760, %v367_v33  ;;  %v11505_v53 = vand.u32 4294901760, %v8262_v52 }
 0x134   : > { %2087 = vmatmul.f32.vlgmr.msra.gmra.mxu1 %v8065_v59  ;;  %2218 = vmatpush.msrb.mxu0 %v11770_v17  ;;  %v363_v17 = vld [vmem:[#allocation2 + $0x530] sm:$0xff] }
 0x135   : > { %2273 = vmatpush.msrb.mxu1 %v7933_v37  ;;  %2318 = vmatpush.msrb.mxu2 %v8168_v20  ;;  %v11773_v37 = vand.u32 4294901760, %v8238_v4  ;;  %v8291_v20 = vand.u32 4294901760, %v365_v26  ;;  %v2390_v50 = vand.u32 4294901760, %v2389_v45  ;;  %v8302_v51 = vsub.f32 %v367_v33, %v8278_v35 }
 0x136   : > { %2373 = vmatpush.msrb.mxu3 %v2372_v8  ;;  %2222 = vmatpush.msrb.mxu0 %v11772_v36  ;;  %v11774_v8 = vand.u32 4294901760, %v8024_v55  ;;  %v11776_v55 = vand.u32 4294901760, %v8029_v16  ;;  %v2407_v45 = vsub.f32 %v8262_v52, %v11505_v53  ;;  %v186_v36 = vld [vmem:[%s6854_s14 + $0x28] sm:$0xff] }
 0x137   : > { %2275 = vmatpush.msrb.mxu1 %v7940_v25  ;;  %2320 = vmatpush.msrb.mxu2 %v8179_v11  ;;  %v2395_v6 = vsub.f32 %v8238_v4, %v11773_v37  ;;  %v11775_v25 = vand.u32 4294901760, %v8251_v58  ;;  %v8304_v37 = vand.u32 4294901760, %v363_v17  ;;  %v8315_v33 = vsub.f32 %v365_v26, %v8291_v20 }
 0x138   : > { %2379 = vmatpush.msrb.mxu3 %v2378_v28  ;;  %2150 = vmatmul.f32.gmra.mxu2 %v8161_v10  ;;  %v361_v28 = vld [vmem:[#allocation2 + $0x520] sm:$0xff]  ;;  %v11781_v10 = vand.u32 4294901760, %v8062_v38  ;;  %v11783_v38 = vand.u32 4294901760, %v8076_v29  ;;  %v11785_v29 = vand.u32 4294901760, %v8088_v2 }
 0x139   : > { %2226 = vmatpush.msrb.mxu0 %v11774_v8  ;;  %2277 = vmatpush.msrb.mxu1 %v7947_v18  ;;  %v2401_v21 = vsub.f32 %v8251_v58, %v11775_v25  ;;  %v2396_v18 = vand.u32 4294901760, %v2395_v6  ;;  %v359_v25 = vld [vmem:[#allocation2 + $0x510] sm:$0xff]  ;;  %v11777_v6 = vand.u32 4294901760, %v8276_v5  ;;  %v8328_v26 = vsub.f32 %v363_v17, %v8304_v37  ;;  %v357_v8 = vld [vmem:[#allocation2 + $0x500] sm:$0xff] }
 0x13a   : > { %2322 = vmatpush.msrb.mxu2 %v8194_v27  ;;  %2385 = vmatpush.msrb.mxu3 %v2384_v13  ;;  %v8320_v13 = vand.u32 4294901760, %v361_v28  ;;  %v2430_v17 = vand.u32 4294901760, %v8315_v33 }
 0x13b   : > { %2195 = vmatmul.f32.gmra.mxu3 %v8185_v60  ;;  %2230 = vmatpush.msrb.mxu0 %v11776_v55  ;;  %v2402_v16 = vand.u32 4294901760, %v2401_v21  ;;  %v2413_v55 = vsub.f32 %v8276_v5, %v11777_v6  ;;  %v8333_v60 = vand.u32 4294901760, %v359_v25  ;;  %v2408_v21 = vand.u32 4294901760, %v2407_v45 }
 0x13c   : > { %2279 = vmatpush.msrb.mxu1 %v7962_v15  ;;  %2324 = vmatpush.msrb.mxu2 %v8214_v23  ;;  %v11778_v15 = vand.u32 4294901760, %v8049_v3  ;;  %v11780_v6 = vand.u32 4294901760, %v8289_v31  ;;  %v8348_v3 = vand.u32 4294901760, %v357_v8  ;;  %v11782_v45 = vand.u32 4294901760, %v8302_v51 }
 0x13d   : > { %2391 = vmatpush.msrb.mxu3 %v2390_v50  ;;  %2091 = vmatmul.f32.gmra.mxu1 %v8132_v44  ;;  %v8335_v50 = vand.u32 4294901760, %v186_v36 }
 0x13e   : > { %2234 = vmatpush.msrb.mxu0 %v11778_v15  ;;  %2281 = vmatpush.msrb.mxu1 %v7967_v22  ;;  %v2419_v53 = vsub.f32 %v8289_v31, %v11780_v6  ;;  %v8346_v22 = vsub.f32 %v361_v28, %v8320_v13  ;;  %v2425_v15 = vsub.f32 %v8302_v51, %v11782_v45  ;;  %v2436_v6 = vand.u32 4294901760, %v8328_v26 }
 0x13f   : > { %11779 = vst [vmem:[#allocation52_spill] sm:$0xff] %v8335_v50  ;;  %2326 = vmatpush.msrb.mxu2 %v8224_v1  ;;  %2397 = vmatpush.msrb.mxu3 %v2396_v18  ;;  %v2414_v18 = vand.u32 4294901760, %v2413_v55  ;;  %v194_v55 = vld [vmem:[%s6854_s14 + $0x68] sm:$0xff] }
 0x140   : > { %2238 = vmatpush.msrb.mxu0 %v11781_v10  ;;  %2283 = vmatpush.msrb.mxu1 %v7981_v56  ;;  %v8359_v10 = vsub.f32 %v359_v25, %v8333_v60  ;;  %v8362_v56 = vsub.f32 %v186_v36, %v8335_v50  ;;  %v2420_v28 = vand.u32 4294901760, %v2419_v53  ;;  %v8373_v25 = vsub.f32 %v357_v8, %v8348_v3 }
 0x141   : > { %2328 = vmatpush.msrb.mxu2 %v8240_v54  ;;  %2403 = vmatpush.msrb.mxu3 %v2402_v16  ;;  %v2431_v16 = vsub.f32 %v8315_v33, %v2430_v17  ;;  %v2426_v36 = vand.u32 4294901760, %v2425_v15  ;;  %v2437_v53 = vsub.f32 %v8328_v26, %v2436_v6  ;;  %v8395_v45 = vand.u32 4294901760, %v194_v55 }
 0x142   : > { %2242 = vmatpush.msrb.mxu0 %v11783_v38  ;;  %2285 = vmatpush.msrb.mxu1 %v7998_v47  ;;  %11784 = vst [vmem:[#allocation53_spill] sm:$0xff] %v8362_v56  ;;  %v2442_v47 = vand.u32 4294901760, %v8346_v22  ;;  %v8385_v2 = vand.u32 4294901760, %v8362_v56  ;;  %v11790_v38 = vand.u32 4294901760, %v8139_v9 }
 0x143   : > { %2330 = vmatpush.msrb.mxu2 %v8253_v42  ;;  %2409 = vmatpush.msrb.mxu3 %v2408_v21  ;;  %v11786_v21 = vand.u32 4294901760, %v8101_v46  ;;  %v2432_v8 = vand.u32 4294901760, %v2431_v16  ;;  %11789 = vst [vmem:[#allocation55_spill] sm:$0xff] %v8395_v45  ;;  %v2438_v15 = vand.u32 4294901760, %v2437_v53  ;;  %v8414_v9 = vsub.f32 %v194_v55, %v8395_v45  ;;  %v405_v55 = vld [vmem:[#allocation2 + $0x680] sm:$0xff] }
 0x144   : > { %2246 = vmatpush.msrb.mxu0 %v11785_v29  ;;  %2287 = vmatpush.msrb.mxu1 %v8005_v39  ;;  %v2448_v39 = vand.u32 4294901760, %v8359_v10  ;;  %11787 = vst [vmem:[#allocation54_spill] sm:$0xff] %v8385_v2  ;;  %v2443_v46 = vsub.f32 %v8346_v22, %v2442_v47  ;;  %v11796_v53 = vand.u32 4294901760, %v8177_v0 }
 0x145   : > { %2332 = vmatpush.msrb.mxu2 %v8264_v43  ;;  %2415 = vmatpush.msrb.mxu3 %v2414_v18  ;;  %v11788_v18 = vand.u32 4294901760, %v8113_v32  ;;  %v2348_v32 = vsub.f32 %v8362_v56, %v8385_v2  ;;  %11792 = vst [vmem:[#allocation56_spill] sm:$0xff] %v8414_v9 }
 0x146   : > { %2250 = vmatpush.msrb.mxu0 %v11786_v21  ;;  %2289 = vmatpush.msrb.mxu1 %v8021_v12  ;;  %v2454_v12 = vand.u32 4294901760, %v8373_v25  ;;  %v2444_v16 = vand.u32 4294901760, %v2443_v46 }
 0x147   : > { %2334 = vmatpush.msrb.mxu2 %v8278_v35  ;;  %2421 = vmatpush.msrb.mxu3 %v2420_v28  ;;  %v11791_v28 = vand.u32 4294901760, %v8158_v30  ;;  %v8419_v30 = vand.u32 4294901760, %v2348_v32 }
 0x148   : > { %2254 = vmatpush.msrb.mxu0 %v11788_v18  ;;  %2291 = vmatpush.msrb.mxu1 %v8036_v49  ;;  %v2449_v49 = vsub.f32 %v8359_v10, %v2448_v39 }
 0x149   : > { %2336 = vmatpush.msrb.mxu2 %v8291_v20  ;;  %2427 = vmatpush.msrb.mxu3 %v2426_v36  ;;  %11793 = vst [vmem:[#allocation57_spill] sm:$0xff] %v8419_v30  ;;  %v8425_v36 = vand.u32 4294901760, %v8414_v9 }
 0x14a   : > { %2258 = vmatpush.msrb.mxu0 %v11790_v38  ;;  %2293 = vmatpush.msrb.mxu1 %v8045_v48  ;;  %v2455_v48 = vsub.f32 %v8373_v25, %v2454_v12  ;;  %v2450_v29 = vand.u32 4294901760, %v2449_v49  ;;  %v401_v49 = vld [vmem:[#allocation2 + $0x660] sm:$0xff] }
 0x14b   : > { %2338 = vmatpush.msrb.mxu2 %v8304_v37  ;;  %2433 = vmatpush.msrb.mxu3 %v2432_v8  ;;  %11794 = vst [vmem:[#allocation58_spill] sm:$0xff] %v8425_v36  ;;  %v403_v8 = vld [vmem:[#allocation2 + $0x670] sm:$0xff] }
 0x14c   : > { %2262 = vmatpush.msrb.mxu0 %v11791_v28  ;;  %2295 = vmatpush.msrb.mxu1 %v8059_v19  ;;  %v2456_v19 = vand.u32 4294901760, %v2455_v48  ;;  %v399_v48 = vld [vmem:[#allocation2 + $0x650] sm:$0xff] }
 0x14d   : > { %2340 = vmatpush.msrb.mxu2 %v8320_v13  ;;  %2439 = vmatpush.msrb.mxu3 %v2438_v15 }
 0x14e   : > { %2264 = vmatmul.f32.vlgmr.msrb.gmra.mxu0 %v8065_v59  ;;  %2297 = vmatpush.msrb.mxu1 %v8072_v63  ;;  %v11795_v63 = vand.u32 4294901760, %v8151_v57 }
 0x14f   : > { %2469 = vmatpush.msra.mxu0 %v8151_v57  ;;  %2342 = vmatpush.msrb.mxu2 %v8333_v60  ;;  %v11798_v57 = vand.u32 4294901760, %v8192_v61 }
 0x150   : > { %2445 = vmatpush.msrb.mxu3 %v2444_v16  ;;  %2299 = vmatpush.msrb.mxu1 %v8084_v14  ;;  %v2356_v14 = vsub.f32 %v8414_v9, %v8425_v36 }
 0x151   : > { %2472 = vmatpush.msra.mxu0 %v8177_v0  ;;  %2344 = vmatpush.msrb.mxu2 %v8348_v3  ;;  %v11799_v0 = vand.u32 4294901760, %v8204_v34 }
 0x152   : > { %2451 = vmatpush.msrb.mxu3 %v2450_v29  ;;  %2350 = vmatmul.f32.vlgmr.msrb.gmra.mxu2 %v8419_v30  ;;  %v8782_v30 = vpop.f32.mrf.mxu0 }
 0x153   : > { %2475 = vmatpush.msra.mxu0 %v8192_v61  ;;  %2574 = vmatpush.msra.mxu2 %v11795_v63  ;;  %v11803_v61 = vand.u32 4294901760, %v8251_v58  ;;  %11821 = vst [vmem:[#allocation67_spill] sm:$0xff] %v8782_v30 }
 0x154   : > { %2301 = vmatpush.msrb.mxu1 %v8109_v62  ;;  %2457 = vmatpush.msrb.mxu3 %v2456_v19  ;;  %v8445_v62 = vand.u32 4294901760, %v2356_v14  ;;  %v8592_v19 = vand.u32 4294901760, %v401_v49 }
 0x155   : > { %2459 = vmatmul.f32.vlgmr.msrb.gmra.mxu3 %v8335_v50  ;;  %2478 = vmatpush.msra.mxu0 %v8204_v34  ;;  %v11806_v34 = vand.u32 4294901760, %v8289_v31 }
 0x156   : > { %2578 = vmatpush.msra.mxu2 %v11796_v53  ;;  %2645 = vmatpush.msra.mxu3 %v8126_v41  ;;  %11797 = vst [vmem:[#allocation59_spill] sm:$0xff] %v8445_v62  ;;  %v397_v53 = vld [vmem:[#allocation2 + $0x640] sm:$0xff] }
 0x157   : > { %2303 = vmatpush.msrb.mxu1 %v8130_v40  ;;  %2268 = vmatmul.f32.gmra.mxu0 %v8132_v44  ;;  %v11800_v40 = vld [vmem:[#allocation48_spill] sm:$0xff] }
 0x158   : > { %2305 = vmatmul.f32.vlgmr.msrb.gmra.mxu1 %v8065_v59  ;;  %2481 = vmatpush.msra.mxu0 %v8219_v24 }
 0x159   : > { %2527 = vmatpush.msra.mxu1 %v8126_v41  ;;  %2582 = vmatpush.msra.mxu2 %v11798_v57  ;;  %v11801_v41 = vand.u32 4294901760, %v8219_v24  ;;  %v8601_v57 = vand.u32 4294901760, %v399_v48 }
 0x15a   : > { %2647 = vmatpush.msra.mxu3 %v8153_v7  ;;  %2484 = vmatpush.msra.mxu0 %v8238_v4 }
 0x15b   : > { %2529 = vmatpush.msra.mxu1 %v8153_v7  ;;  %2586 = vmatpush.msra.mxu2 %v11799_v0  ;;  %v11802_v7 = vand.u32 4294901760, %v8238_v4  ;;  %v11804_v4 = vand.u32 4294901760, %v8262_v52 }
 0x15c   : > { %2649 = vmatpush.msra.mxu3 %v11800_v40  ;;  %2358 = vmatmul.f32.gmra.mxu2 %v8445_v62 }
 0x15d   : > { %2487 = vmatpush.msra.mxu0 %v8251_v58  ;;  %2531 = vmatpush.msra.mxu1 %v11800_v40  ;;  %v11807_v58 = vand.u32 4294901760, %v8302_v51 }
 0x15e   : > { %2590 = vmatpush.msra.mxu2 %v11801_v41  ;;  %2651 = vmatpush.msra.mxu3 %v8179_v11  ;;  %v187_v41 = vld [vmem:[%s6854_s14 + $0x30] sm:$0xff] }
 0x15f   : > { %2463 = vmatmul.f32.gmra.mxu3 %v8395_v45  ;;  %2490 = vmatpush.msra.mxu0 %v8262_v52  ;;  %v413_v52 = vld [vmem:[#allocation2 + $0x6c0] sm:$0xff] }
 0x160   : > { %2533 = vmatpush.msra.mxu1 %v8179_v11  ;;  %2594 = vmatpush.msra.mxu2 %v11802_v7  ;;  %v419_v11 = vld [vmem:[#allocation2 + $0x6f0] sm:$0xff] }
 0x161   : > { %2653 = vmatpush.msra.mxu3 %v8194_v27  ;;  %2309 = vmatmul.f32.gmra.mxu1 %v8132_v44  ;;  %v8489_v24 = vand.u32 4294901760, %v419_v11  ;;  %v435_v44 = vld [vmem:[#allocation2 + $0x770] sm:$0xff] }
 0x162   : > { %2493 = vmatpush.msra.mxu0 %v8276_v5  ;;  %2535 = vmatpush.msra.mxu1 %v8194_v27  ;;  %v11805_v27 = vand.u32 4294901760, %v8276_v5 }
 0x163   : > { %2598 = vmatpush.msra.mxu2 %v11803_v61  ;;  %2655 = vmatpush.msra.mxu3 %v8214_v23  ;;  %v395_v61 = vld [vmem:[#allocation2 + $0x630] sm:$0xff] }
 0x164   : > { %2496 = vmatpush.msra.mxu0 %v8289_v31  ;;  %2537 = vmatpush.msra.mxu1 %v8214_v23  ;;  %v417_v23 = vld [vmem:[#allocation2 + $0x6e0] sm:$0xff]  ;;  %v411_v31 = vld [vmem:[#allocation2 + $0x6b0] sm:$0xff] }
 0x165   : > { %2602 = vmatpush.msra.mxu2 %v11804_v4  ;;  %2657 = vmatpush.msra.mxu3 %v8224_v1  ;;  %v8496_v5 = vand.u32 4294901760, %v417_v23 }
 0x166   : > { %2499 = vmatpush.msra.mxu0 %v8302_v51  ;;  %2539 = vmatpush.msra.mxu1 %v8224_v1  ;;  %v415_v1 = vld [vmem:[#allocation2 + $0x6d0] sm:$0xff]  ;;  %v8518_v51 = vand.u32 4294901760, %v413_v52 }
 0x167   : > { %2606 = vmatpush.msra.mxu2 %v11805_v27  ;;  %2659 = vmatpush.msra.mxu3 %v8240_v54  ;;  %v8615_v27 = vand.u32 4294901760, %v397_v53 }
 0x168   : > { %2502 = vmatpush.msra.mxu0 %v8315_v33  ;;  %2541 = vmatpush.msra.mxu1 %v8240_v54  ;;  %v8503_v54 = vand.u32 4294901760, %v415_v1 }
 0x169   : > { %2610 = vmatpush.msra.mxu2 %v11806_v34  ;;  %2661 = vmatpush.msra.mxu3 %v8253_v42 }
 0x16a   : > { %2505 = vmatpush.msra.mxu0 %v8328_v26  ;;  %2543 = vmatpush.msra.mxu1 %v8253_v42  ;;  %v8506_v42 = vsub.f32 %v419_v11, %v8489_v24  ;;  %v8527_v26 = vsub.f32 %v415_v1, %v8503_v54  ;;  %v393_v1 = vld [vmem:[#allocation2 + $0x620] sm:$0xff] }
 0x16b   : > { %2614 = vmatpush.msra.mxu2 %v11807_v58  ;;  %2663 = vmatpush.msra.mxu3 %v8264_v43  ;;  %v8621_v58 = vand.u32 4294901760, %v187_v41 }
 0x16c   : > { %2508 = vmatpush.msra.mxu0 %v8346_v22  ;;  %2545 = vmatpush.msra.mxu1 %v8264_v43  ;;  %v8514_v43 = vsub.f32 %v417_v23, %v8496_v5  ;;  %v11519_v33 = vand.u32 4294901760, %v8506_v42  ;;  %v407_v22 = vld [vmem:[#allocation2 + $0x690] sm:$0xff]  ;;  %v8618_v23 = vsub.f32 %v401_v49, %v8592_v19 }
 0x16d   : > { %2618 = vmatpush.msra.mxu2 %v2430_v17  ;;  %2665 = vmatpush.msra.mxu3 %v8278_v35  ;;  %v409_v17 = vld [vmem:[#allocation2 + $0x6a0] sm:$0xff]  ;;  %11808 = vst [vmem:[#allocation48_spill] sm:$0xff] %v8621_v58  ;;  %v8649_v49 = vsub.f32 %v187_v41, %v8621_v58 }
 0x16e   : > { %2511 = vmatpush.msra.mxu0 %v8359_v10  ;;  %2547 = vmatpush.msra.mxu1 %v8278_v35  ;;  %v8523_v35 = vand.u32 4294901760, %v411_v31  ;;  %v11516_v10 = vand.u32 4294901760, %v8527_v26 }
 0x16f   : > { %2622 = vmatpush.msra.mxu2 %v2436_v6  ;;  %2667 = vmatpush.msra.mxu3 %v8291_v20  ;;  %v8537_v6 = vand.u32 4294901760, %v409_v17  ;;  %11809 = vst [vmem:[#allocation60_spill] sm:$0xff] %v8649_v49 }
 0x170   : > { %2514 = vmatpush.msra.mxu0 %v8373_v25  ;;  %2549 = vmatpush.msra.mxu1 %v8291_v20  ;;  %v11518_v20 = vand.u32 4294901760, %v8514_v43  ;;  %v8550_v21 = vsub.f32 %v411_v31, %v8523_v35  ;;  %v2749_v15 = vsub.f32 %v8527_v26, %v11516_v10  ;;  %v8628_v31 = vand.u32 4294901760, %v395_v61  ;;  %v447_v10 = vld [vmem:[#allocation2 + $0x7d0] sm:$0xff] }
 0x171   : > { %2626 = vmatpush.msra.mxu2 %v2442_v47  ;;  %2669 = vmatpush.msra.mxu3 %v8304_v37  ;;  %v8540_v47 = vsub.f32 %v413_v52, %v8518_v51  ;;  %v8567_v46 = vsub.f32 %v409_v17, %v8537_v6 }
 0x172   : > { %2517 = vmatmul.f32.vlgmr.msra.gmra.mxu0 %v8362_v56  ;;  %2551 = vmatpush.msra.mxu1 %v8304_v37  ;;  %v2737_v37 = vsub.f32 %v8506_v42, %v11519_v33  ;;  %v2743_v25 = vsub.f32 %v8514_v43, %v11518_v20  ;;  %v11514_v38 = vand.u32 4294901760, %v8550_v21  ;;  %v2750_v63 = vand.u32 4294901760, %v2749_v15  ;;  %v391_v15 = vld [vmem:[#allocation2 + $0x610] sm:$0xff]  ;;  %v441_v56 = vld [vmem:[#allocation2 + $0x7a0] sm:$0xff] }
 0x173   : > { %2686 = vmatpush.msrb.mxu0 %v8489_v24  ;;  %2630 = vmatpush.msra.mxu2 %v2448_v39  ;;  %v8561_v39 = vand.u32 4294901760, %v405_v55  ;;  %v11515_v18 = vand.u32 4294901760, %v8540_v47 }
 0x174   : > { %2671 = vmatpush.msra.mxu3 %v8320_v13  ;;  %2553 = vmatpush.msra.mxu1 %v8320_v13  ;;  %v8554_v13 = vand.u32 4294901760, %v407_v22  ;;  %v2744_v28 = vand.u32 4294901760, %v2743_v25  ;;  %v2761_v14 = vsub.f32 %v8550_v21, %v11514_v38  ;;  %v8640_v25 = vand.u32 4294901760, %v393_v1 }
 0x175   : > { %2688 = vmatpush.msrb.mxu0 %v8496_v5  ;;  %2634 = vmatpush.msra.mxu2 %v2454_v12  ;;  %v2738_v12 = vand.u32 4294901760, %v2737_v37  ;;  %v8585_v16 = vsub.f32 %v405_v55, %v8561_v39  ;;  %v2755_v29 = vsub.f32 %v8540_v47, %v11515_v18 }
 0x176   : > { %2673 = vmatpush.msra.mxu3 %v8333_v60  ;;  %2636 = vmatmul.f32.vlgmr.msra.gmra.mxu2 %v8335_v50  ;;  %v8580_v32 = vsub.f32 %v407_v22, %v8554_v13  ;;  %v2762_v34 = vand.u32 4294901760, %v2761_v14  ;;  %v8632_v22 = vsub.f32 %v399_v48, %v8601_v57 }
 0x177   : > { %2690 = vmatpush.msrb.mxu0 %v8503_v54  ;;  %2841 = vmatpush.msrb.mxu2 %v8506_v42  ;;  %v11510_v7 = vand.u32 4294901760, %v8585_v16  ;;  %v2756_v4 = vand.u32 4294901760, %v2755_v29 }
 0x178   : > { %2555 = vmatpush.msra.mxu1 %v8333_v60  ;;  %2675 = vmatpush.msra.mxu3 %v8348_v3  ;;  %v8577_v60 = vand.u32 4294901760, %v403_v8  ;;  %v11511_v0 = vand.u32 4294901760, %v8580_v32  ;;  %v11513_v29 = vand.u32 4294901760, %v8632_v22 }
 0x179   : > { %2677 = vmatmul.f32.vlgmr.msra.gmra.mxu3 %v8335_v50  ;;  %2692 = vmatpush.msrb.mxu0 %v8518_v51  ;;  %v2779_v55 = vsub.f32 %v8585_v16, %v11510_v7  ;;  %v8770_v50 = vand.u32 4294901760, %v441_v56 }
 0x17a   : > { %2844 = vmatpush.msrb.mxu2 %v8514_v43  ;;  %2899 = vmatpush.msrb.mxu3 %v8489_v24  ;;  %v8605_v40 = vsub.f32 %v403_v8, %v8577_v60  ;;  %v2773_v52 = vsub.f32 %v8580_v32, %v11511_v0  ;;  %v11508_v8 = vand.u32 4294901760, %v8618_v23  ;;  %v449_v0 = vld [vmem:[#allocation2 + $0x7e0] sm:$0xff] }
 0x17b   : > { %2557 = vmatpush.msra.mxu1 %v8348_v3  ;;  %2522 = vmatmul.f32.gmra.mxu0 %v8414_v9  ;;  %v11512_v3 = vand.u32 4294901760, %v8567_v46  ;;  %v2780_v14 = vand.u32 4294901760, %v2779_v55  ;;  %v8675_v55 = vand.u32 4294901760, %v8649_v49  ;;  %v8796_v30 = vsub.f32 %v441_v56, %v8770_v50 }
 0x17c   : > { %2561 = vmatmul.f32.vlgmr.msra.gmra.mxu1 %v8385_v2  ;;  %2694 = vmatpush.msrb.mxu0 %v8523_v35  ;;  %v11509_v17 = vand.u32 4294901760, %v8605_v40  ;;  %v2791_v41 = vsub.f32 %v8618_v23, %v11508_v8  ;;  %v2797_v8 = vsub.f32 %v8632_v22, %v11513_v29  ;;  %v11828_v56 = vand.u32 4294901760, %v8540_v47 }
 0x17d   : > { %2739 = vmatpush.msrb.mxu1 %v2738_v12  ;;  %2847 = vmatpush.msrb.mxu2 %v8527_v26  ;;  %v2767_v11 = vsub.f32 %v8567_v46, %v11512_v3  ;;  %v8644_v12 = vsub.f32 %v397_v53, %v8615_v27  ;;  %v451_v53 = vld [vmem:[#allocation2 + $0x7f0] sm:$0xff]  ;;  %11810 = vst [vmem:[#allocation61_spill] sm:$0xff] %v8675_v55 }
 0x17e   : > { %2901 = vmatpush.msrb.mxu3 %v8496_v5  ;;  %2696 = vmatpush.msrb.mxu0 %v8537_v6  ;;  %v2785_v48 = vsub.f32 %v8605_v40, %v11509_v17  ;;  %v2720_v18 = vsub.f32 %v8649_v49, %v8675_v55 }
 0x17f   : > { %2745 = vmatpush.msrb.mxu1 %v2744_v28  ;;  %2850 = vmatpush.msrb.mxu2 %v8540_v47  ;;  %v2768_v37 = vand.u32 4294901760, %v2767_v11  ;;  %v2774_v28 = vand.u32 4294901760, %v2773_v52  ;;  %v389_v11 = vld [vmem:[#allocation2 + $0x600] sm:$0xff]  ;;  %v195_v52 = vld [vmem:[%s6854_s14 + $0x70] sm:$0xff] }
 0x180   : > { %2903 = vmatpush.msrb.mxu3 %v8503_v54  ;;  %2640 = vmatmul.f32.gmra.mxu2 %v8395_v45  ;;  %v8686_v7 = vand.u32 4294901760, %v389_v11  ;;  %v8688_v3 = vand.u32 4294901760, %v195_v52 }
 0x181   : > { %2698 = vmatpush.msrb.mxu0 %v8554_v13  ;;  %2751 = vmatpush.msrb.mxu1 %v2750_v63  ;;  %v8657_v63 = vsub.f32 %v395_v61, %v8628_v31  ;;  %v8669_v61 = vsub.f32 %v393_v1, %v8640_v25  ;;  %v8682_v1 = vand.u32 4294901760, %v451_v53 }
 0x182   : > { %2853 = vmatpush.msrb.mxu2 %v8550_v21  ;;  %2905 = vmatpush.msrb.mxu3 %v8518_v51  ;;  %11811 = vst [vmem:[#allocation62_spill] sm:$0xff] %v8686_v7  ;;  %v8714_v20 = vsub.f32 %v389_v11, %v8686_v7  ;;  %v8717_v33 = vsub.f32 %v195_v52, %v8688_v3  ;;  %v8728_v11 = vand.u32 4294901760, %v2720_v18  ;;  %v443_v52 = vld [vmem:[#allocation2 + $0x7b0] sm:$0xff] }
 0x183   : > { %2681 = vmatmul.f32.gmra.mxu3 %v8395_v45  ;;  %2700 = vmatpush.msrb.mxu0 %v8561_v39  ;;  %v11520_v17 = vand.u32 4294901760, %v8657_v63  ;;  %11812 = vst [vmem:[#allocation63_spill] sm:$0xff] %v8688_v3  ;;  %v11523_v38 = vand.u32 4294901760, %v8669_v61  ;;  %v8750_v9 = vand.u32 4294901760, %v443_v52  ;;  %v11818_v45 = vand.u32 4294901760, %v8506_v42 }
 0x184   : > { %2757 = vmatpush.msrb.mxu1 %v2756_v4  ;;  %2856 = vmatpush.msrb.mxu2 %v8567_v46  ;;  %v8665_v4 = vand.u32 4294901760, %v391_v15  ;;  %11813 = vst [vmem:[#allocation64_spill] sm:$0xff] %v8717_v33  ;;  %v8741_v18 = vand.u32 4294901760, %v8717_v33  ;;  %v11819_v62 = vand.u32 4294901760, %v8714_v20 }
 0x185   : > { %2907 = vmatpush.msrb.mxu3 %v8523_v35  ;;  %2567 = vmatmul.f32.gmra.mxu1 %v8425_v36  ;;  %v8724_v36 = vand.u32 4294901760, %v447_v10  ;;  %11814 = vst [vmem:[#allocation65_spill] sm:$0xff] %v8728_v11  ;;  %v8775_v42 = vsub.f32 %v443_v52, %v8750_v9 }
 0x186   : > { %2702 = vmatpush.msrb.mxu0 %v8577_v60  ;;  %2763 = vmatpush.msrb.mxu1 %v2762_v34  ;;  %v11517_v34 = vand.u32 4294901760, %v8644_v12  ;;  %v8695_v29 = vsub.f32 %v391_v15, %v8665_v4  ;;  %v8707_v15 = vsub.f32 %v451_v53, %v8682_v1  ;;  %v2815_v53 = vsub.f32 %v8669_v61, %v11523_v38 }
 0x187   : > { %2859 = vmatpush.msrb.mxu2 %v8580_v32  ;;  %2909 = vmatpush.msrb.mxu3 %v8537_v6  ;;  %11815 = vst [vmem:[#allocation66_spill] sm:$0xff] %v8741_v18 }
 0x188   : > { %2704 = vmatpush.msrb.mxu0 %v8592_v19  ;;  %2769 = vmatpush.msrb.mxu1 %v2768_v37  ;;  %v2786_v37 = vand.u32 4294901760, %v2785_v48  ;;  %v2803_v48 = vsub.f32 %v8644_v12, %v11517_v34  ;;  %v8709_v34 = vand.u32 4294901760, %v449_v0 }
 0x189   : > { %2862 = vmatpush.msrb.mxu2 %v8585_v16  ;;  %2911 = vmatpush.msrb.mxu3 %v8554_v13 }
 0x18a   : > { %2706 = vmatpush.msrb.mxu0 %v8601_v57  ;;  %2775 = vmatpush.msrb.mxu1 %v2774_v28  ;;  %v2792_v28 = vand.u32 4294901760, %v2791_v41  ;;  %v2809_v41 = vsub.f32 %v8657_v63, %v11520_v17  ;;  %v8733_v2 = vsub.f32 %v449_v0, %v8709_v34  ;;  %v11820_v17 = vand.u32 4294901760, %v8514_v43 }
 0x18b   : > { %2865 = vmatpush.msrb.mxu2 %v8605_v40  ;;  %2913 = vmatpush.msrb.mxu3 %v8561_v39  ;;  %v11823_v43 = vand.u32 4294901760, %v8527_v26 }
 0x18c   : > { %2708 = vmatpush.msrb.mxu0 %v8615_v27  ;;  %2781 = vmatpush.msrb.mxu1 %v2780_v14  ;;  %v2798_v14 = vand.u32 4294901760, %v2797_v8  ;;  %v445_v8 = vld [vmem:[#allocation2 + $0x7c0] sm:$0xff] }
 0x18d   : > { %2868 = vmatpush.msrb.mxu2 %v8618_v23  ;;  %2915 = vmatpush.msrb.mxu3 %v8577_v60  ;;  %v8735_v38 = vand.u32 4294901760, %v445_v8 }
 0x18e   : > { %2710 = vmatpush.msrb.mxu0 %v8628_v31  ;;  %2787 = vmatpush.msrb.mxu1 %v2786_v37  ;;  %v2804_v37 = vand.u32 4294901760, %v2803_v48  ;;  %v8748_v48 = vsub.f32 %v447_v10, %v8724_v36  ;;  %v439_v10 = vld [vmem:[#allocation2 + $0x790] sm:$0xff] }
 0x18f   : > { %2871 = vmatpush.msrb.mxu2 %v8632_v22  ;;  %2917 = vmatpush.msrb.mxu3 %v8592_v19 }
 0x190   : > { %2712 = vmatpush.msrb.mxu0 %v8640_v25  ;;  %2793 = vmatpush.msrb.mxu1 %v2792_v28  ;;  %v2810_v28 = vand.u32 4294901760, %v2809_v41  ;;  %v11816_v41 = vand.u32 4294901760, %v8695_v29 }
 0x191   : > { %2874 = vmatpush.msrb.mxu2 %v8644_v12  ;;  %2919 = vmatpush.msrb.mxu3 %v8601_v57 }
 0x192   : > { %2714 = vmatpush.msrb.mxu0 %v8665_v4  ;;  %2799 = vmatpush.msrb.mxu1 %v2798_v14  ;;  %v2816_v14 = vand.u32 4294901760, %v2815_v53  ;;  %v2821_v0 = vsub.f32 %v8695_v29, %v11816_v41  ;;  %v8760_v41 = vsub.f32 %v445_v8, %v8735_v38 }
 0x193   : > { %2877 = vmatpush.msrb.mxu2 %v8657_v63  ;;  %2921 = vmatpush.msrb.mxu3 %v8615_v27 }
 0x194   : > { %2716 = vmatpush.msrb.mxu0 %v8686_v7  ;;  %2805 = vmatpush.msrb.mxu1 %v2804_v37  ;;  %v11817_v37 = vand.u32 4294901760, %v8707_v15  ;;  %v2822_v8 = vand.u32 4294901760, %v2821_v0  ;;  %v11822_v0 = vand.u32 4294901760, %v8733_v2  ;;  %v11829_v26 = vand.u32 4294901760, %v8760_v41 }
 0x195   : > { %2880 = vmatpush.msrb.mxu2 %v8669_v61  ;;  %2923 = vmatpush.msrb.mxu3 %v8628_v31 }
 0x196   : > { %2722 = vmatmul.f32.vlgmr.msrb.gmra.mxu0 %v8728_v11  ;;  %2811 = vmatpush.msrb.mxu1 %v2810_v28  ;;  %v3109_v53 = vsub.f32 %v8707_v15, %v11817_v37  ;;  %v2827_v11 = vsub.f32 %v8714_v20, %v11819_v62  ;;  %v2728_v28 = vsub.f32 %v8717_v33, %v8741_v18  ;;  %v8780_v62 = vand.u32 4294901760, %v439_v10  ;;  %v8805_v37 = vpop.f32.mrf.mxu1 }
 0x197   : > { %2946 = vmatpush.msra.mxu0 %v11818_v45  ;;  %2883 = vmatpush.msrb.mxu2 %v8695_v29  ;;  %v437_v45 = vld [vmem:[#allocation2 + $0x780] sm:$0xff]  ;;  %v3115_v52 = vsub.f32 %v8733_v2, %v11822_v0  ;;  %11826 = vst [vmem:[#allocation69_spill] sm:$0xff] %v8805_v37  ;;  %v3127_v37 = vsub.f32 %v8760_v41, %v11829_v26  ;;  %v11832_v26 = vand.u32 4294901760, %v8775_v42 }
 0x198   : > { %2925 = vmatpush.msrb.mxu3 %v8640_v25  ;;  %2817 = vmatpush.msrb.mxu1 %v2816_v14  ;;  %v3110_v14 = vand.u32 4294901760, %v3109_v53  ;;  %v8793_v59 = vand.u32 4294901760, %v2728_v28  ;;  %v11825_v53 = vand.u32 4294901760, %v8748_v48  ;;  %v8813_v28 = vsub.f32 %v439_v10, %v8780_v62 }
 0x199   : > { %2950 = vmatpush.msra.mxu0 %v11820_v17  ;;  %2886 = vmatpush.msrb.mxu2 %v8714_v20  ;;  %v2828_v17 = vand.u32 4294901760, %v2827_v11  ;;  %v8807_v11 = vpop.f32.mrf.mxu2 }
 0x19a   : > { %2927 = vmatpush.msrb.mxu3 %v8665_v4  ;;  %2889 = vmatmul.f32.vlgmr.msrb.gmra.mxu2 %v8649_v49  ;;  %11824 = vst [vmem:[#allocation68_spill] sm:$0xff] %v8793_v59  ;;  %v8798_v49 = vand.u32 4294901760, %v437_v45  ;;  %v3121_v0 = vsub.f32 %v8748_v48, %v11825_v53  ;;  %v3116_v53 = vand.u32 4294901760, %v3115_v52 }
 0x19b   : > { %2954 = vmatpush.msra.mxu0 %v11823_v43  ;;  %3058 = vmatpush.msra.mxu2 %v8682_v1  ;;  %v433_v43 = vld [vmem:[#allocation2 + $0x760] sm:$0xff]  ;;  %11827 = vst [vmem:[#allocation70_spill] sm:$0xff] %v8807_v11 }
 0x19c   : > { %2823 = vmatpush.msrb.mxu1 %v2822_v8  ;;  %2929 = vmatpush.msrb.mxu3 %v8686_v7  ;;  %v8815_v8 = vand.u32 4294901760, %v435_v44  ;;  %v431_v7 = vld [vmem:[#allocation2 + $0x750] sm:$0xff]  ;;  %v8826_v10 = vand.u32 4294901760, %v433_v43  ;;  %v3122_v52 = vand.u32 4294901760, %v3121_v0  ;;  %v3128_v0 = vand.u32 4294901760, %v3127_v37 }
 0x19d   : > { %2933 = vmatmul.f32.vlgmr.msrb.gmra.mxu3 %v8675_v55  ;;  %2958 = vmatpush.msra.mxu0 %v11828_v56  ;;  %v8824_v56 = vsub.f32 %v437_v45, %v8798_v49  ;;  %v8828_v55 = vpop.f32.mrf.mxu3  ;;  %v11837_v37 = vand.u32 4294901760, %v8813_v28 }
 0x19e   : > { %3060 = vmatpush.msra.mxu2 %v8709_v34  ;;  %3111 = vmatpush.msra.mxu3 %v3110_v14  ;;  %11830 = vst [vmem:[#allocation71_spill] sm:$0xff] %v8828_v55  ;;  %v11831_v14 = vand.u32 4294901760, %v8550_v21  ;;  %v8840_v47 = vsub.f32 %v435_v44, %v8815_v8  ;;  %v8842_v55 = vand.u32 4294901760, %v431_v7  ;;  %v11833_v21 = vand.u32 4294901760, %v8567_v46 }
 0x19f   : > { %2829 = vmatpush.msrb.mxu1 %v2828_v17  ;;  %2730 = vmatmul.f32.gmra.mxu0 %v8793_v59  ;;  %v3133_v17 = vsub.f32 %v8775_v42, %v11832_v26  ;;  %v429_v59 = vld [vmem:[#allocation2 + $0x740] sm:$0xff]  ;;  %v8853_v44 = vsub.f32 %v433_v43, %v8826_v10 }
 0x1a0   : > { %2831 = vmatmul.f32.vlgmr.msrb.gmra.mxu1 %v8621_v58  ;;  %2962 = vmatpush.msra.mxu0 %v11831_v14  ;;  %v427_v14 = vld [vmem:[#allocation2 + $0x730] sm:$0xff]  ;;  %v8855_v11 = vand.u32 4294901760, %v429_v59  ;;  %v421_v43 = vld [vmem:[#allocation2 + $0x700] sm:$0xff] }
 0x1a1   : > { %3017 = vmatpush.msra.mxu1 %v8489_v24  ;;  %3062 = vmatpush.msra.mxu2 %v8724_v36  ;;  %v11834_v24 = vand.u32 4294901760, %v8796_v30  ;;  %v3134_v46 = vand.u32 4294901760, %v3133_v17  ;;  %v8870_v45 = vand.u32 4294901760, %v427_v14  ;;  %v8875_v17 = vpop.f32.mrf.mxu2 }
 0x1a2   : > { %3117 = vmatpush.msra.mxu3 %v3116_v53  ;;  %2966 = vmatpush.msra.mxu0 %v11833_v21  ;;  %v8857_v53 = vpop.f32.mrf.mxu0  ;;  %v3145_v21 = vsub.f32 %v8813_v28, %v11837_v37  ;;  %11839 = vst [vmem:[#allocation74_spill] sm:$0xff] %v8875_v17  ;;  %v11841_v37 = vand.u32 4294901760, %v8824_v56 }
 0x1a3   : > { %3019 = vmatpush.msra.mxu1 %v8496_v5  ;;  %3064 = vmatpush.msra.mxu2 %v8735_v38  ;;  %v3139_v26 = vsub.f32 %v8796_v30, %v11834_v24  ;;  %11835 = vst [vmem:[#allocation72_spill] sm:$0xff] %v8857_v53  ;;  %v11836_v5 = vand.u32 4294901760, %v8580_v32  ;;  %v8868_v24 = vsub.f32 %v431_v7, %v8842_v55  ;;  %v8873_v32 = vpop.f32.mrf.mxu1  ;;  %v188_v53 = vld [vmem:[%s6854_s14 + $0x38] sm:$0xff] }
 0x1a4   : > { %3123 = vmatpush.msra.mxu3 %v3122_v52  ;;  %2894 = vmatmul.f32.gmra.mxu2 %v8717_v33  ;;  %v425_v52 = vld [vmem:[#allocation2 + $0x720] sm:$0xff]  ;;  %11838 = vst [vmem:[#allocation73_spill] sm:$0xff] %v8873_v32  ;;  %v3151_v7 = vsub.f32 %v8824_v56, %v11841_v37  ;;  %v8885_v33 = vsub.f32 %v429_v59, %v8855_v11  ;;  %v11846_v37 = vand.u32 4294901760, %v8853_v44 }
 0x1a5   : > { %2970 = vmatpush.msra.mxu0 %v11836_v5  ;;  %3021 = vmatpush.msra.mxu1 %v8503_v54  ;;  %v11840_v54 = vand.u32 4294901760, %v8585_v16  ;;  %v3140_v5 = vand.u32 4294901760, %v3139_v26  ;;  %v3146_v16 = vand.u32 4294901760, %v3145_v21  ;;  %v11842_v26 = vand.u32 4294901760, %v8840_v47  ;;  %v8900_v17 = vpop.f32.mrf.mxu3 }
 0x1a6   : > { %3066 = vmatpush.msra.mxu2 %v8750_v9  ;;  %3129 = vmatpush.msra.mxu3 %v3128_v0  ;;  %v423_v0 = vld [vmem:[#allocation2 + $0x710] sm:$0xff]  ;;  %v8898_v59 = vsub.f32 %v427_v14, %v8870_v45  ;;  %11843 = vst [vmem:[#allocation75_spill] sm:$0xff] %v8900_v17  ;;  %v8907_v21 = vand.u32 4294901760, %v188_v53  ;;  %v3163_v14 = vsub.f32 %v8853_v44, %v11846_v37  ;;  %v11847_v17 = vand.u32 4294901760, %v8618_v23 }
 0x1a7   : > { %2939 = vmatmul.f32.gmra.mxu3 %v8741_v18  ;;  %2974 = vmatpush.msra.mxu0 %v11840_v54  ;;  %v8890_v18 = vand.u32 4294901760, %v425_v52  ;;  %v3157_v54 = vsub.f32 %v8840_v47, %v11842_v26  ;;  %v3152_v26 = vand.u32 4294901760, %v3151_v7  ;;  %v11848_v7 = vand.u32 4294901760, %v8868_v24 }
 0x1a8   : > { %3023 = vmatpush.msra.mxu1 %v8518_v51  ;;  %3068 = vmatpush.msra.mxu2 %v8770_v50  ;;  %v11844_v51 = vand.u32 4294901760, %v8605_v40  ;;  %11845 = vst [vmem:[#allocation76_spill] sm:$0xff] %v8907_v21  ;;  %v8920_v40 = vand.u32 4294901760, %v421_v43  ;;  %v11849_v23 = vand.u32 4294901760, %v8632_v22  ;;  %v11852_v22 = vand.u32 4294901760, %v8644_v12 }
 0x1a9   : > { %3135 = vmatpush.msra.mxu3 %v3134_v46  ;;  %2835 = vmatmul.f32.gmra.mxu1 %v8688_v3  ;;  %v8905_v46 = vand.u32 4294901760, %v423_v0  ;;  %v3169_v37 = vsub.f32 %v8868_v24, %v11848_v7  ;;  %v8951_v7 = vpop.f32.mrf.mxu2 }
 0x1aa   : > { %2978 = vmatpush.msra.mxu0 %v11844_v51  ;;  %3025 = vmatpush.msra.mxu1 %v8523_v35  ;;  %v8918_v35 = vsub.f32 %v425_v52, %v8890_v18  ;;  %v3180_v51 = vand.u32 4294901760, %v8898_v59  ;;  %v8927_v32 = vpop.f32.mrf.mxu0  ;;  %v8936_v52 = vsub.f32 %v188_v53, %v8907_v21 }
 0x1ab   : > { %3070 = vmatpush.msra.mxu2 %v8780_v62  ;;  %3141 = vmatpush.msra.mxu3 %v3140_v5  ;;  %v3158_v5 = vand.u32 4294901760, %v3157_v54  ;;  %v8949_v53 = vpop.f32.mrf.mxu1 }
 0x1ac   : > { %2982 = vmatpush.msra.mxu0 %v11847_v17  ;;  %3027 = vmatpush.msra.mxu1 %v8537_v6  ;;  %v8933_v6 = vsub.f32 %v423_v0, %v8905_v46  ;;  %11850 = vst [vmem:[#allocation77_spill] sm:$0xff] %v8936_v52  ;;  %v3164_v17 = vand.u32 4294901760, %v3163_v14  ;;  %v8947_v0 = vsub.f32 %v421_v43, %v8920_v40  ;;  %v196_v14 = vld [vmem:[%s6854_s14 + $0x78] sm:$0xff] }
 0x1ad   : > { %3072 = vmatpush.msra.mxu2 %v8798_v49  ;;  %3147 = vmatpush.msra.mxu3 %v3146_v16  ;;  %v11851_v16 = vand.u32 4294901760, %v8885_v33  ;;  %v3181_v12 = vsub.f32 %v8898_v59, %v3180_v51 }
 0x1ae   : > { %2986 = vmatpush.msra.mxu0 %v11849_v23  ;;  %3029 = vmatpush.msra.mxu1 %v8554_v13  ;;  %v3186_v13 = vand.u32 4294901760, %v8918_v35  ;;  %v3192_v43 = vand.u32 4294901760, %v8933_v6  ;;  %v8963_v23 = vand.u32 4294901760, %v8936_v52 }
 0x1af   : > { %3074 = vmatpush.msra.mxu2 %v8815_v8  ;;  %3153 = vmatpush.msra.mxu3 %v3152_v26  ;;  %v3175_v54 = vsub.f32 %v8885_v33, %v11851_v16  ;;  %v3170_v26 = vand.u32 4294901760, %v3169_v37  ;;  %v8966_v37 = vpop.f32.mrf.mxu3  ;;  %v11855_v16 = vand.u32 4294901760, %v8669_v61 }
 0x1b0   : > { %2990 = vmatpush.msra.mxu0 %v11852_v22  ;;  %3031 = vmatpush.msra.mxu1 %v8561_v39  ;;  %v11853_v39 = vand.u32 4294901760, %v8657_v63  ;;  %11854 = vst [vmem:[#allocation78_spill] sm:$0xff] %v8963_v23  ;;  %v3198_v63 = vand.u32 4294901760, %v8947_v0  ;;  %v8975_v22 = vand.u32 4294901760, %v196_v14  ;;  %v3092_v61 = vsub.f32 %v8936_v52, %v8963_v23 }
 0x1b1   : > { %3076 = vmatpush.msra.mxu2 %v8826_v10  ;;  %3159 = vmatpush.msra.mxu3 %v3158_v5  ;;  %v3176_v5 = vand.u32 4294901760, %v3175_v54 }
 0x1b2   : > { %2994 = vmatpush.msra.mxu0 %v11853_v39  ;;  %3033 = vmatpush.msra.mxu1 %v8577_v60  ;;  %v3187_v60 = vsub.f32 %v8918_v35, %v3186_v13  ;;  %11856 = vst [vmem:[#allocation79_spill] sm:$0xff] %v8975_v22  ;;  %v8978_v54 = vpop.f32.mrf.mxu0  ;;  %v11857_v39 = vand.u32 4294901760, %v8695_v29  ;;  %v8996_v29 = vsub.f32 %v196_v14, %v8975_v22 }
 0x1b3   : > { %3078 = vmatpush.msra.mxu2 %v8842_v55  ;;  %3165 = vmatpush.msra.mxu3 %v3164_v17  ;;  %v3182_v17 = vand.u32 4294901760, %v3181_v12 }
 0x1b4   : > { %2998 = vmatpush.msra.mxu0 %v11855_v16  ;;  %3035 = vmatpush.msra.mxu1 %v8592_v19  ;;  %v3193_v19 = vsub.f32 %v8933_v6, %v3192_v43  ;;  %v3188_v12 = vand.u32 4294901760, %v3187_v60  ;;  %11859 = vst [vmem:[#allocation80_spill] sm:$0xff] %v8996_v29  ;;  %v8998_v16 = vpop.f32.mrf.mxu1  ;;  %v9013_v60 = vand.u32 4294901760, %v8996_v29 }
 0x1b5   : > { %3080 = vmatpush.msra.mxu2 %v8855_v11  ;;  %3171 = vmatpush.msra.mxu3 %v3170_v26  ;;  %v11858_v26 = vand.u32 4294901760, %v8714_v20 }
 0x1b6   : > { %3002 = vmatpush.msra.mxu0 %v11857_v39  ;;  %3037 = vmatpush.msra.mxu1 %v8601_v57  ;;  %v3199_v57 = vsub.f32 %v8947_v0, %v3198_v63  ;;  %v9000_v39 = vpop.f32.mrf.mxu2  ;;  %v3194_v20 = vand.u32 4294901760, %v3193_v19  ;;  %11861 = vst [vmem:[#allocation82_spill] sm:$0xff] %v9013_v60  ;;  %v11863_v19 = vand.u32 4294901760, %v8733_v2 }
 0x1b7   : > { %3082 = vmatpush.msra.mxu2 %v8870_v45  ;;  %3177 = vmatpush.msra.mxu3 %v3176_v5  ;;  %v9009_v14 = vpop.f32.mrf.mxu3 }
 0x1b8   : > { %3006 = vmatpush.msra.mxu0 %v11858_v26  ;;  %3039 = vmatpush.msra.mxu1 %v8615_v27  ;;  %v9005_v27 = vand.u32 4294901760, %v3092_v61  ;;  %v3200_v5 = vand.u32 4294901760, %v3199_v57  ;;  %v11864_v26 = vld [vmem:[#allocation62_spill] sm:$0xff]  ;;  %v11867_v57 = vand.u32 4294901760, %v8760_v41 }
 0x1b9   : > { %3084 = vmatpush.msra.mxu2 %v8890_v18  ;;  %3183 = vmatpush.msra.mxu3 %v3182_v17 }
 0x1ba   : > { %3008 = vmatmul.f32.vlgmr.msra.gmra.mxu0 %v8621_v58  ;;  %3041 = vmatpush.msra.mxu1 %v8628_v31  ;;  %11860 = vst [vmem:[#allocation81_spill] sm:$0xff] %v9005_v27  ;;  %v11862_v31 = vand.u32 4294901760, %v8707_v15  ;;  %v9021_v17 = vpop.f32.mrf.mxu0 }
 0x1bb   : > { %3213 = vmatpush.msrb.mxu0 %v8707_v15  ;;  %3086 = vmatpush.msra.mxu2 %v8905_v46 }
 0x1bc   : > { %3189 = vmatpush.msra.mxu3 %v3188_v12  ;;  %3043 = vmatpush.msra.mxu1 %v8640_v25  ;;  %v3100_v25 = vsub.f32 %v8996_v29, %v9013_v60  ;;  %v9031_v61 = vpop.f32.mrf.mxu1 }
 0x1bd   : > { %3216 = vmatpush.msrb.mxu0 %v8733_v2  ;;  %3088 = vmatpush.msra.mxu2 %v8920_v40  ;;  %v11866_v2 = vand.u32 4294901760, %v8748_v48 }
 0x1be   : > { %3195 = vmatpush.msra.mxu3 %v3194_v20  ;;  %3094 = vmatmul.f32.vlgmr.msra.gmra.mxu2 %v9005_v27  ;;  %v9033_v15 = vpop.f32.mrf.mxu2  ;;  %v208_v27 = vld [vmem:[#allocation2 + $0x58] sm:$0xff] }
 0x1bf   : > { %3219 = vmatpush.msrb.mxu0 %v8748_v48  ;;  %3318 = vmatpush.msrb.mxu2 %v11862_v31  ;;  %v9044_v12 = vpop.f32.mrf.mxu3  ;;  %v11873_v31 = vand.u32 4294901760, %v8853_v44 }
 0x1c0   : > { %3045 = vmatpush.msra.mxu1 %v8665_v4  ;;  %3201 = vmatpush.msra.mxu3 %v3200_v5  ;;  %v9039_v4 = vand.u32 4294901760, %v3100_v25  ;;  %v11874_v25 = vand.u32 4294901760, %v8868_v24 }
 0x1c1   : > { %3203 = vmatmul.f32.vlgmr.msra.gmra.mxu3 %v8907_v21  ;;  %3222 = vmatpush.msrb.mxu0 %v8760_v41 }
 0x1c2   : > { %3322 = vmatpush.msrb.mxu2 %v11863_v19  ;;  %3389 = vmatpush.msrb.mxu3 %v8682_v1  ;;  %11865 = vst [vmem:[#allocation62_spill] sm:$0xff] %v9039_v4  ;;  %v9051_v20 = vpop.f32.mrf.mxu0 }
 0x1c3   : > { %3047 = vmatpush.msra.mxu1 %v11864_v26  ;;  %3012 = vmatmul.f32.gmra.mxu0 %v8688_v3  ;;  %v11876_v26 = vld [vmem:[#allocation69_spill] sm:$0xff] }
 0x1c4   : > { %3049 = vmatmul.f32.vlgmr.msra.gmra.mxu1 %v8621_v58  ;;  %3225 = vmatpush.msrb.mxu0 %v8775_v42  ;;  %v9065_v48 = vpop.f32.mrf.mxu1  ;;  %v204_v58 = vld [vmem:[#allocation2 + $0x38] sm:$0xff] }
 0x1c5   : > { %3271 = vmatpush.msrb.mxu1 %v8682_v1  ;;  %3326 = vmatpush.msrb.mxu2 %v11866_v2  ;;  %v11868_v1 = vand.u32 4294901760, %v8775_v42  ;;  %v11871_v42 = vand.u32 4294901760, %v8824_v56 }
 0x1c6   : > { %3391 = vmatpush.msrb.mxu3 %v8709_v34  ;;  %3228 = vmatpush.msrb.mxu0 %v8796_v30  ;;  %v9067_v41 = vpop.f32.mrf.mxu2 }
 0x1c7   : > { %3273 = vmatpush.msrb.mxu1 %v8709_v34  ;;  %3330 = vmatpush.msrb.mxu2 %v11867_v57  ;;  %v11869_v34 = vand.u32 4294901760, %v8796_v30  ;;  %v11877_v57 = vand.u32 4294901760, %v8885_v33 }
 0x1c8   : > { %3393 = vmatpush.msrb.mxu3 %v8724_v36  ;;  %3102 = vmatmul.f32.gmra.mxu2 %v9039_v4 }
 0x1c9   : > { %3231 = vmatpush.msrb.mxu0 %v8813_v28  ;;  %3275 = vmatpush.msrb.mxu1 %v8724_v36  ;;  %v11870_v36 = vand.u32 4294901760, %v8813_v28  ;;  %v11872_v28 = vand.u32 4294901760, %v8840_v47 }
 0x1ca   : > { %3334 = vmatpush.msrb.mxu2 %v11868_v1  ;;  %3395 = vmatpush.msrb.mxu3 %v8735_v38  ;;  %v9078_v30 = vpop.f32.mrf.mxu0  ;;  %v222_v1 = vld [vmem:[#allocation2 + $0xc8] sm:$0xff] }
 0x1cb   : > { %3207 = vmatmul.f32.gmra.mxu3 %v8975_v22  ;;  %3234 = vmatpush.msrb.mxu0 %v8824_v56 }
 0x1cc   : > { %3277 = vmatpush.msrb.mxu1 %v8735_v38  ;;  %3338 = vmatpush.msrb.mxu2 %v11869_v34  ;;  %v9076_v38 = vpop.f32.mrf.mxu3  ;;  %v9092_v5 = vpop.f32.mrf.mxu1 }
 0x1cd   : > { %3397 = vmatpush.msrb.mxu3 %v8750_v9  ;;  %3053 = vmatmul.f32.gmra.mxu1 %v8688_v3  ;;  %v206_v3 = vld [vmem:[#allocation2 + $0x48] sm:$0xff] }
 0x1ce   : > { %3237 = vmatpush.msrb.mxu0 %v8840_v47  ;;  %3279 = vmatpush.msrb.mxu1 %v8750_v9  ;;  %v228_v9 = vld [vmem:[#allocation2 + $0xf8] sm:$0xff]  ;;  %v9094_v56 = vpop.f32.mrf.mxu2 }
 0x1cf   : > { %3342 = vmatpush.msrb.mxu2 %v11870_v36  ;;  %3399 = vmatpush.msrb.mxu3 %v8770_v50  ;;  %v224_v47 = vld [vmem:[#allocation2 + $0xd8] sm:$0xff]  ;;  %v9134_v36 = vand.u32 4294901760, %v222_v1 }
 0x1d0   : > { %3240 = vmatpush.msrb.mxu0 %v8853_v44  ;;  %3281 = vmatpush.msrb.mxu1 %v8770_v50  ;;  %v226_v50 = vld [vmem:[#allocation2 + $0xe8] sm:$0xff]  ;;  %v11875_v44 = vld [vmem:[#allocation67_spill] sm:$0xff] }
 0x1d1   : > { %3346 = vmatpush.msrb.mxu2 %v11871_v42  ;;  %3401 = vmatpush.msrb.mxu3 %v8780_v62  ;;  %v601_v2 = vadd.f32 %v11876_v26, %v11875_v44  ;;  %11878 = vst [vmem:[#allocation67_spill] sm:$0xff] %v9134_v36  ;;  %v11879_v42 = vld [vmem:[#allocation70_spill] sm:$0xff] }
 0x1d2   : > { %3243 = vmatpush.msrb.mxu0 %v8868_v24  ;;  %3283 = vmatpush.msrb.mxu1 %v8780_v62  ;;  %v9099_v62 = vand.u32 4294901760, %v228_v9  ;;  %v9122_v34 = vpop.f32.mrf.mxu0 }
 0x1d3   : > { %3350 = vmatpush.msrb.mxu2 %v11872_v28  ;;  %3403 = vmatpush.msrb.mxu3 %v8798_v49  ;;  %v218_v28 = vld [vmem:[#allocation2 + $0xa8] sm:$0xff] }
 0x1d4   : > { %3246 = vmatpush.msrb.mxu0 %v8885_v33  ;;  %3285 = vmatpush.msrb.mxu1 %v8798_v49  ;;  %v9106_v49 = vand.u32 4294901760, %v226_v50  ;;  %v9108_v19 = vpop.f32.mrf.mxu3  ;;  %v9120_v24 = vsub.f32 %v228_v9, %v9099_v62  ;;  %v659_v9 = vadd.f32 %v11879_v42, %v601_v2 }
 0x1d5   : > { %3354 = vmatpush.msrb.mxu2 %v11873_v31  ;;  %3405 = vmatpush.msrb.mxu3 %v8815_v8  ;;  %v9158_v31 = vand.u32 4294901760, %v218_v28 }
 0x1d6   : > { %3249 = vmatpush.msrb.mxu0 %v8898_v59  ;;  %3287 = vmatpush.msrb.mxu1 %v8815_v8  ;;  %v9117_v8 = vand.u32 4294901760, %v224_v47  ;;  %v9130_v33 = vsub.f32 %v226_v50, %v9106_v49  ;;  %v11543_v59 = vand.u32 4294901760, %v9120_v24  ;;  %v9150_v50 = vpop.f32.mrf.mxu2 }
 0x1d7   : > { %3358 = vmatpush.msrb.mxu2 %v11874_v25  ;;  %3407 = vmatpush.msrb.mxu3 %v8826_v10  ;;  %11881 = vst [vmem:[#allocation70_spill] sm:$0xff] %v9150_v50  ;;  %v11883_v25 = vld [vmem:[#allocation71_spill] sm:$0xff] }
 0x1d8   : > { %3252 = vmatpush.msrb.mxu0 %v8918_v35  ;;  %3289 = vmatpush.msrb.mxu1 %v8826_v10  ;;  %v220_v10 = vld [vmem:[#allocation2 + $0xb8] sm:$0xff]  ;;  %v11544_v35 = vand.u32 4294901760, %v9130_v33  ;;  %11882 = vst [vmem:[#allocation83_spill] sm:$0xff] %v9158_v31  ;;  %v703_v44 = vadd.f32 %v11883_v25, %v659_v9 }
 0x1d9   : > { %3362 = vmatpush.msrb.mxu2 %v11877_v57  ;;  %3409 = vmatpush.msrb.mxu3 %v8842_v55  ;;  %v212_v9 = vld [vmem:[#allocation2 + $0x78] sm:$0xff] }
 0x1da   : > { %3255 = vmatpush.msrb.mxu0 %v8933_v6  ;;  %3291 = vmatpush.msrb.mxu1 %v8842_v55  ;;  %v9140_v55 = vand.u32 4294901760, %v220_v10  ;;  %v3481_v6 = vsub.f32 %v9120_v24, %v11543_v59  ;;  %v9176_v2 = vpop.f32.mrf.mxu0  ;;  %v9195_v59 = vsub.f32 %v218_v28, %v9158_v31  ;;  %v9206_v28 = vand.u32 4294901760, %v212_v9 }
 0x1db   : > { %3366 = vmatpush.msrb.mxu2 %v3180_v51  ;;  %3411 = vmatpush.msrb.mxu3 %v8855_v11  ;;  %v9144_v51 = vsub.f32 %v224_v47, %v9117_v8  ;;  %v214_v47 = vld [vmem:[#allocation2 + $0x88] sm:$0xff] }
 0x1dc   : > { %3258 = vmatpush.msrb.mxu0 %v8947_v0  ;;  %3293 = vmatpush.msrb.mxu1 %v8855_v11  ;;  %11880 = vst [vmem:[#allocation69_spill] sm:$0xff] %v9140_v55  ;;  %v9148_v11 = vpop.f32.mrf.mxu1  ;;  %v9174_v26 = vpop.f32.mrf.mxu3  ;;  %v11885_v0 = vld [vmem:[#allocation72_spill] sm:$0xff]  ;;  %v9189_v42 = vand.u32 4294901760, %v214_v47 }
 0x1dd   : > { %3370 = vmatpush.msrb.mxu2 %v3186_v13  ;;  %3413 = vmatpush.msrb.mxu3 %v8870_v45  ;;  %v216_v13 = vld [vmem:[#allocation2 + $0x98] sm:$0xff]  ;;  %11884 = vst [vmem:[#allocation71_spill] sm:$0xff] %v9174_v26  ;;  %v9266_v26 = vand.u32 4294901760, %v204_v58 }
 0x1de   : > { %3261 = vmatmul.f32.vlgmr.msrb.gmra.mxu0 %v8936_v52  ;;  %3295 = vmatpush.msrb.mxu1 %v8870_v45  ;;  %v9161_v45 = vsub.f32 %v222_v1, %v9134_v36  ;;  %v9180_v57 = vand.u32 4294901760, %v216_v13  ;;  %11887 = vst [vmem:[#allocation72_spill] sm:$0xff] %v9206_v28 }
 0x1df   : > { %3430 = vmatpush.msra.mxu0 %v9099_v62  ;;  %3374 = vmatpush.msrb.mxu2 %v3192_v43  ;;  %v11547_v43 = vand.u32 4294901760, %v9144_v51  ;;  %11900 = vst [vmem:[#allocation87_spill] sm:$0xff] %v9266_v26 }
 0x1e0   : > { %3415 = vmatpush.msrb.mxu3 %v8890_v18  ;;  %3297 = vmatpush.msrb.mxu1 %v8890_v18  ;;  %v9172_v18 = vsub.f32 %v220_v10, %v9140_v55  ;;  %v3487_v10 = vsub.f32 %v9130_v33, %v11544_v35  ;;  %v3482_v35 = vand.u32 4294901760, %v3481_v6  ;;  %v9209_v25 = vsub.f32 %v216_v13, %v9180_v57  ;;  %v9214_v6 = vpop.f32.mrf.mxu2 }
 0x1e1   : > { %3432 = vmatpush.msra.mxu0 %v9106_v49  ;;  %3378 = vmatpush.msrb.mxu2 %v3198_v63  ;;  %v11886_v63 = vld [vmem:[#allocation73_spill] sm:$0xff]  ;;  %v3493_v52 = vsub.f32 %v9144_v51, %v11547_v43  ;;  %v11891_v13 = vand.u32 4294901760, %v9161_v45 }
 0x1e2   : > { %3417 = vmatpush.msrb.mxu3 %v8905_v46  ;;  %3380 = vmatmul.f32.vlgmr.msrb.gmra.mxu2 %v8907_v21  ;;  %v605_v1 = vadd.f32 %v11886_v63, %v11885_v0  ;;  %v210_v0 = vld [vmem:[#allocation2 + $0x68] sm:$0xff]  ;;  %v778_v63 = vadd.f32 %v8927_v32, %v703_v44  ;;  %v11888_v32 = vld [vmem:[#allocation74_spill] sm:$0xff]  ;;  %11889 = vst [vmem:[#allocation73_spill] sm:$0xff] %v9214_v6  ;;  %v3488_v43 = vand.u32 4294901760, %v3487_v10 }
 0x1e3   : > { %3434 = vmatpush.msra.mxu0 %v9117_v8  ;;  %3585 = vmatpush.msra.mxu2 %v9120_v24  ;;  %v3494_v10 = vand.u32 4294901760, %v3493_v52 }
 0x1e4   : > { %3299 = vmatpush.msrb.mxu1 %v8905_v46  ;;  %3419 = vmatpush.msrb.mxu3 %v8920_v40  ;;  %v664_v44 = vadd.f32 %v11888_v32, %v605_v1  ;;  %v9212_v4 = vpop.f32.mrf.mxu1  ;;  %v9218_v46 = vand.u32 4294901760, %v210_v0  ;;  %v3499_v1 = vsub.f32 %v9161_v45, %v11891_v13  ;;  %v9238_v13 = vand.u32 4294901760, %v208_v27 }
 0x1e5   : > { %3421 = vmatmul.f32.vlgmr.msrb.gmra.mxu3 %v8907_v21  ;;  %3436 = vmatpush.msra.mxu0 %v9134_v36  ;;  %v9221_v21 = vsub.f32 %v214_v47, %v9189_v42  ;;  %v11892_v47 = vand.u32 4294901760, %v9172_v18 }
 0x1e6   : > { %3588 = vmatpush.msra.mxu2 %v9130_v33  ;;  %3643 = vmatpush.msra.mxu3 %v9099_v62  ;;  %11890 = vst [vmem:[#allocation74_spill] sm:$0xff] %v9218_v46  ;;  %v3500_v32 = vand.u32 4294901760, %v3499_v1  ;;  %v9270_v6 = vsub.f32 %v208_v27, %v9238_v13 }
 0x1e7   : > { %3301 = vmatpush.msrb.mxu1 %v8920_v40  ;;  %3266 = vmatmul.f32.gmra.mxu0 %v8996_v29  ;;  %v819_v40 = vadd.f32 %v8949_v53, %v778_v63  ;;  %v3505_v29 = vsub.f32 %v9172_v18, %v11892_v47  ;;  %11894 = vst [vmem:[#allocation85_spill] sm:$0xff] %v9238_v13  ;;  %v202_v63 = vld [vmem:[#allocation2 + $0x28] sm:$0xff] }
 0x1e8   : > { %3305 = vmatmul.f32.vlgmr.msrb.gmra.mxu1 %v8963_v23  ;;  %3438 = vmatpush.msra.mxu0 %v9140_v55  ;;  %v9234_v23 = vpop.f32.mrf.mxu3  ;;  %v9242_v53 = vsub.f32 %v212_v9, %v9206_v28  ;;  %v9248_v47 = vsub.f32 %v210_v0, %v9218_v46  ;;  %v11897_v9 = vand.u32 4294901760, %v9195_v59  ;;  %v9288_v50 = vpop.f32.mrf.mxu2 }
 0x1e9   : > { %3483 = vmatpush.msra.mxu1 %v3482_v35  ;;  %3591 = vmatpush.msra.mxu2 %v9144_v51  ;;  %11893 = vst [vmem:[#allocation84_spill] sm:$0xff] %v9234_v23  ;;  %v11895_v35 = vld [vmem:[#allocation75_spill] sm:$0xff]  ;;  %v9250_v23 = vpop.f32.mrf.mxu0  ;;  %v3506_v0 = vand.u32 4294901760, %v3505_v29  ;;  %v11901_v29 = vand.u32 4294901760, %v9221_v21 }
 0x1ea   : > { %3645 = vmatpush.msra.mxu3 %v9106_v49  ;;  %3440 = vmatpush.msra.mxu0 %v9158_v31  ;;  %v709_v52 = vadd.f32 %v11895_v35, %v664_v44  ;;  %11896 = vst [vmem:[#allocation75_spill] sm:$0xff] %v9250_v23  ;;  %v3511_v44 = vsub.f32 %v9195_v59, %v11897_v9  ;;  %v11899_v23 = vand.u32 4294901760, %v9209_v25  ;;  %v9280_v9 = vand.u32 4294901760, %v202_v63 }
 0x1eb   : > { %3489 = vmatpush.msra.mxu1 %v3488_v43  ;;  %3594 = vmatpush.msra.mxu2 %v9161_v45  ;;  %v9257_v43 = vand.u32 4294901760, %v206_v3  ;;  %v864_v35 = vadd.f32 %v8951_v7, %v819_v40  ;;  %v3523_v40 = vsub.f32 %v9221_v21, %v11901_v29  ;;  %11903 = vst [vmem:[#allocation89_spill] sm:$0xff] %v9288_v50  ;;  %v260_v29 = vld [vmem:[#allocation2 + $0x1f8] sm:$0xff] }
 0x1ec   : > { %3647 = vmatpush.msra.mxu3 %v9117_v8  ;;  %3384 = vmatmul.f32.gmra.mxu2 %v8975_v22  ;;  %v3517_v1 = vsub.f32 %v9209_v25, %v11899_v23  ;;  %v782_v7 = vadd.f32 %v8978_v54, %v709_v52  ;;  %v3512_v23 = vand.u32 4294901760, %v3511_v44  ;;  %v200_v54 = vld [vmem:[#allocation2 + $0x18] sm:$0xff] }
 0x1ed   : > { %11898 = vst [vmem:[#allocation86_spill] sm:$0xff] %v9257_v43  ;;  %3442 = vmatpush.msra.mxu0 %v9180_v57  ;;  %3495 = vmatpush.msra.mxu1 %v3494_v10  ;;  %v9283_v27 = vsub.f32 %v206_v3, %v9257_v43  ;;  %v973_v52 = vadd.f32 %v8966_v37, %v864_v35  ;;  %v11904_v3 = vand.u32 4294901760, %v9242_v53 }
 0x1ee   : > { %3597 = vmatpush.msra.mxu2 %v9172_v18  ;;  %3649 = vmatpush.msra.mxu3 %v9134_v36  ;;  %v3518_v44 = vand.u32 4294901760, %v3517_v1  ;;  %v9298_v35 = vsub.f32 %v204_v58, %v9266_v26  ;;  %v823_v50 = vadd.f32 %v8998_v16, %v782_v7  ;;  %v9306_v1 = vand.u32 4294901760, %v200_v54  ;;  %v252_v16 = vld [vmem:[#allocation2 + $0x1b8] sm:$0xff] }
 0x1ef   : > { %3425 = vmatmul.f32.gmra.mxu3 %v8975_v22  ;;  %3444 = vmatpush.msra.mxu0 %v9189_v42  ;;  %v9286_v22 = vpop.f32.mrf.mxu1  ;;  %v3529_v10 = vsub.f32 %v9242_v53, %v11904_v3  ;;  %v9317_v7 = vsub.f32 %v202_v63, %v9280_v9 }
 0x1f0   : > { %3501 = vmatpush.msra.mxu1 %v3500_v32  ;;  %3600 = vmatpush.msra.mxu2 %v9195_v59  ;;  %11902 = vst [vmem:[#allocation88_spill] sm:$0xff] %v9286_v22  ;;  %v198_v32 = vld [vmem:[#allocation2 + $0x8] sm:$0xff]  ;;  %v11905_v22 = vand.u32 4294901760, %v9248_v47  ;;  %v9308_v3 = vpop.f32.mrf.mxu3  ;;  %v872_v36 = vadd.f32 %v9000_v39, %v823_v50 }
 0x1f1   : > { %3651 = vmatpush.msra.mxu3 %v9140_v55  ;;  %3311 = vmatmul.f32.gmra.mxu1 %v9013_v60  ;;  %v3524_v60 = vand.u32 4294901760, %v3523_v40  ;;  %v258_v55 = vld [vmem:[#allocation2 + $0x1e8] sm:$0xff]  ;;  %11906 = vst [vmem:[#allocation90_spill] sm:$0xff] %v9308_v3  ;;  %v9310_v37 = vpop.f32.mrf.mxu0  ;;  %v9313_v58 = vand.u32 4294901760, %v198_v32  ;;  %v9319_v40 = vand.u32 4294901760, %v260_v29  ;;  %v3530_v3 = vand.u32 4294901760, %v3529_v10 }
 0x1f2   : > { %3446 = vmatpush.msra.mxu0 %v9206_v28  ;;  %3507 = vmatpush.msra.mxu1 %v3506_v0  ;;  %v3535_v0 = vsub.f32 %v9248_v47, %v11905_v22  ;;  %11907 = vst [vmem:[#allocation91_spill] sm:$0xff] %v9310_v37  ;;  %v1031_v22 = vadd.f32 %v9021_v17, %v973_v52  ;;  %v9329_v63 = vand.u32 4294901760, %v258_v55  ;;  %v254_v50 = vld [vmem:[#allocation2 + $0x1c8] sm:$0xff] }
 0x1f3   : > { %3603 = vmatpush.msra.mxu2 %v9209_v25  ;;  %3653 = vmatpush.msra.mxu3 %v9158_v31  ;;  %11908 = vst [vmem:[#allocation92_spill] sm:$0xff] %v9317_v7  ;;  %v256_v31 = vld [vmem:[#allocation2 + $0x1d8] sm:$0xff]  ;;  %v9336_v10 = vsub.f32 %v200_v54, %v9306_v1  ;;  %v9344_v39 = vsub.f32 %v198_v32, %v9313_v58  ;;  %v9351_v54 = vpop.f32.mrf.mxu2  ;;  %v11914_v32 = vand.u32 4294901760, %v9298_v35 }
 0x1f4   : > { %3448 = vmatpush.msra.mxu0 %v9218_v46  ;;  %3513 = vmatpush.msra.mxu1 %v3512_v23  ;;  %v11909_v23 = vand.u32 4294901760, %v9270_v6  ;;  %v1075_v17 = vadd.f32 %v9031_v61, %v1031_v22  ;;  %v3536_v52 = vand.u32 4294901760, %v3535_v0  ;;  %v9347_v61 = vsub.f32 %v260_v29, %v9319_v40  ;;  %11913 = vst [vmem:[#allocation95_spill] sm:$0xff] %v9351_v54 }
 0x1f5   : > { %3606 = vmatpush.msra.mxu2 %v9221_v21  ;;  %3655 = vmatpush.msra.mxu3 %v9180_v57  ;;  %v3553_v29 = vsub.f32 %v9298_v35, %v11914_v32  ;;  %v977_v54 = vadd.f32 %v9009_v14, %v872_v36  ;;  %v11916_v32 = vand.u32 4294901760, %v9317_v7 }
 0x1f6   : > { %3450 = vmatpush.msra.mxu0 %v9238_v13  ;;  %3519 = vmatpush.msra.mxu1 %v3518_v44  ;;  %v3541_v37 = vsub.f32 %v9270_v6, %v11909_v23  ;;  %v11910_v44 = vand.u32 4294901760, %v9283_v27  ;;  %11911 = vst [vmem:[#allocation93_spill] sm:$0xff] %v9347_v61 }
 0x1f7   : > { %3609 = vmatpush.msra.mxu2 %v9242_v53  ;;  %3657 = vmatpush.msra.mxu3 %v9189_v42  ;;  %v9349_v0 = vpop.f32.mrf.mxu1  ;;  %v3559_v14 = vsub.f32 %v9317_v7, %v11916_v32  ;;  %v1036_v36 = vadd.f32 %v9051_v20, %v977_v54  ;;  %v11919_v20 = vand.u32 4294901760, %v9347_v61  ;;  %v11920_v32 = vand.u32 4294901760, %v9344_v39 }
 0x1f8   : > { %3452 = vmatpush.msra.mxu0 %v9257_v43  ;;  %3525 = vmatpush.msra.mxu1 %v3524_v60  ;;  %v3547_v23 = vsub.f32 %v9283_v27, %v11910_v44  ;;  %11912 = vst [vmem:[#allocation94_spill] sm:$0xff] %v9349_v0  ;;  %v9355_v60 = vand.u32 4294901760, %v256_v31  ;;  %v3542_v22 = vand.u32 4294901760, %v3541_v37  ;;  %v9362_v44 = vsub.f32 %v258_v55, %v9329_v63  ;;  %v9371_v37 = vpop.f32.mrf.mxu3 }
 0x1f9   : > { %3612 = vmatpush.msra.mxu2 %v9248_v47  ;;  %3659 = vmatpush.msra.mxu3 %v9206_v28  ;;  %v1150_v0 = vadd.f32 %v9033_v15, %v1075_v17  ;;  %11915 = vst [vmem:[#allocation96_spill] sm:$0xff] %v9371_v37  ;;  %v250_v17 = vld [vmem:[#allocation2 + $0x1a8] sm:$0xff]  ;;  %v9384_v37 = vand.u32 4294901760, %v252_v16  ;;  %v248_v15 = vld [vmem:[#allocation2 + $0x198] sm:$0xff]  ;;  %v3853_v54 = vsub.f32 %v9347_v61, %v11919_v20  ;;  %v11921_v20 = vand.u32 4294901760, %v9120_v24 }
 0x1fa   : > { %3454 = vmatpush.msra.mxu0 %v9266_v26  ;;  %3531 = vmatpush.msra.mxu1 %v3530_v3  ;;  %v9369_v3 = vand.u32 4294901760, %v254_v50  ;;  %v3548_v55 = vand.u32 4294901760, %v3547_v23  ;;  %v9382_v28 = vsub.f32 %v256_v31, %v9355_v60  ;;  %v3554_v23 = vand.u32 4294901760, %v3553_v29 }
 0x1fb   : > { %3615 = vmatpush.msra.mxu2 %v9270_v6  ;;  %3661 = vmatpush.msra.mxu3 %v9218_v46  ;;  %v11918_v31 = vand.u32 4294901760, %v9336_v10  ;;  %v3560_v29 = vand.u32 4294901760, %v3559_v14 }
 0x1fc   : > { %3456 = vmatpush.msra.mxu0 %v9280_v9  ;;  %3537 = vmatpush.msra.mxu1 %v3536_v52  ;;  %v9386_v52 = vpop.f32.mrf.mxu0  ;;  %v9397_v46 = vsub.f32 %v254_v50, %v9369_v3  ;;  %v9426_v50 = vpop.f32.mrf.mxu2 }
 0x1fd   : > { %3618 = vmatpush.msra.mxu2 %v9283_v27  ;;  %3663 = vmatpush.msra.mxu3 %v9238_v13  ;;  %11917 = vst [vmem:[#allocation97_spill] sm:$0xff] %v9386_v52  ;;  %v3565_v13 = vsub.f32 %v9336_v10, %v11918_v31  ;;  %v9399_v52 = vand.u32 4294901760, %v250_v17  ;;  %v246_v31 = vld [vmem:[#allocation2 + $0x188] sm:$0xff] }
 0x1fe   : > { %3458 = vmatpush.msra.mxu0 %v9306_v1  ;;  %3543 = vmatpush.msra.mxu1 %v3542_v22  ;;  %v1191_v22 = vadd.f32 %v9044_v12, %v1150_v0  ;;  %v9413_v12 = vsub.f32 %v252_v16, %v9384_v37  ;;  %v9415_v0 = vand.u32 4294901760, %v248_v15  ;;  %11923 = vst [vmem:[#allocation98_spill] sm:$0xff] %v9426_v50  ;;  %v9434_v16 = vand.u32 4294901760, %v246_v31 }
 0x1ff   : > { %3621 = vmatpush.msra.mxu2 %v9298_v35  ;;  %3665 = vmatpush.msra.mxu3 %v9257_v43  ;;  %v3571_v43 = vsub.f32 %v9344_v39, %v11920_v32  ;;  %v11922_v32 = vand.u32 4294901760, %v9362_v44  ;;  %v9432_v24 = vsub.f32 %v250_v17, %v9399_v52 }
 0x200   : > { %3460 = vmatpush.msra.mxu0 %v9313_v58  ;;  %3549 = vmatpush.msra.mxu1 %v3548_v55  ;;  %v1081_v55 = vadd.f32 %v9065_v48, %v1036_v36  ;;  %v1236_v14 = vadd.f32 %v9078_v30, %v1191_v22  ;;  %v3566_v48 = vand.u32 4294901760, %v3565_v13  ;;  %v3854_v22 = vand.u32 4294901760, %v3853_v54  ;;  %v240_v30 = vld [vmem:[#allocation2 + $0x158] sm:$0xff] }
 0x201   : > { %3624 = vmatpush.msra.mxu2 %v9317_v7  ;;  %3667 = vmatpush.msra.mxu3 %v9266_v26  ;;  %v3859_v61 = vsub.f32 %v9362_v44, %v11922_v32  ;;  %v244_v26 = vld [vmem:[#allocation2 + $0x178] sm:$0xff]  ;;  %v9424_v7 = vpop.f32.mrf.mxu1  ;;  %v242_v32 = vld [vmem:[#allocation2 + $0x168] sm:$0xff]  ;;  %v11925_v13 = vand.u32 4294901760, %v9382_v28  ;;  %v9446_v50 = vsub.f32 %v248_v15, %v9415_v0  ;;  %v11927_v54 = vand.u32 4294901760, %v9144_v51 }
 0x202   : > { %3690 = vmatpush.msrb.mxu0 %v11921_v20  ;;  %3555 = vmatpush.msra.mxu1 %v3554_v23  ;;  %v1345_v36 = vadd.f32 %v9092_v5, %v1236_v14  ;;  %v11924_v23 = vand.u32 4294901760, %v9130_v33  ;;  %v3572_v20 = vand.u32 4294901760, %v3571_v43  ;;  %v9448_v5 = vand.u32 4294901760, %v244_v26 }
 0x203   : > { %3627 = vmatpush.msra.mxu2 %v9336_v10  ;;  %3669 = vmatpush.msra.mxu3 %v9280_v9  ;;  %v3865_v17 = vsub.f32 %v9382_v28, %v11925_v13  ;;  %v1154_v33 = vadd.f32 %v9067_v41, %v1081_v55  ;;  %v3860_v14 = vand.u32 4294901760, %v3859_v61  ;;  %v11928_v15 = vand.u32 4294901760, %v9397_v46 }
 0x204   : > { %3694 = vmatpush.msrb.mxu0 %v11924_v23  ;;  %3561 = vmatpush.msra.mxu1 %v3560_v29  ;;  %v9451_v29 = vpop.f32.mrf.mxu3  ;;  %v9453_v43 = vpop.f32.mrf.mxu0  ;;  %v9464_v41 = vsub.f32 %v246_v31, %v9434_v16  ;;  %v9466_v55 = vand.u32 4294901760, %v242_v32  ;;  %v1403_v51 = vadd.f32 %v9094_v56, %v1345_v36  ;;  %v11574_v31 = vand.u32 4294901760, %v9446_v50  ;;  %v238_v36 = vld [vmem:[#allocation2 + $0x148] sm:$0xff] }
 0x205   : > { %3630 = vmatpush.msra.mxu2 %v9344_v39  ;;  %3671 = vmatpush.msra.mxu3 %v9306_v1  ;;  %11926 = vst [vmem:[#allocation99_spill] sm:$0xff] %v9451_v29  ;;  %v3871_v23 = vsub.f32 %v9397_v46, %v11928_v15  ;;  %v3866_v61 = vand.u32 4294901760, %v3865_v17  ;;  %v9477_v13 = vsub.f32 %v244_v26, %v9448_v5  ;;  %v11931_v56 = vand.u32 4294901760, %v9172_v18 }
 0x206   : > { %3698 = vmatpush.msrb.mxu0 %v11927_v54  ;;  %3567 = vmatpush.msra.mxu1 %v3566_v48  ;;  %v11929_v54 = vand.u32 4294901760, %v9161_v45  ;;  %v11930_v48 = vand.u32 4294901760, %v9413_v12  ;;  %v1195_v29 = vadd.f32 %v9076_v38, %v1154_v33  ;;  %v9483_v45 = vand.u32 4294901760, %v240_v30 }
 0x207   : > { %3802 = vmatpush.msrb.mxu2 %v9319_v40  ;;  %3673 = vmatpush.msra.mxu3 %v9313_v58  ;;  %v3872_v17 = vand.u32 4294901760, %v3871_v23  ;;  %v11932_v26 = vand.u32 4294901760, %v9432_v24  ;;  %v11572_v18 = vand.u32 4294901760, %v9464_v41  ;;  %v9495_v33 = vsub.f32 %v242_v32, %v9466_v55 }
 0x208   : > { %3702 = vmatpush.msrb.mxu0 %v11929_v54  ;;  %3573 = vmatpush.msra.mxu1 %v3572_v20  ;;  %v3877_v15 = vsub.f32 %v9413_v12, %v11930_v48  ;;  %v9487_v20 = vpop.f32.mrf.mxu2  ;;  %v1447_v54 = vadd.f32 %v9108_v19, %v1403_v51  ;;  %v11933_v48 = vand.u32 4294901760, %v9195_v59  ;;  %v11571_v32 = vand.u32 4294901760, %v9477_v13  ;;  %v234_v51 = vld [vmem:[#allocation2 + $0x128] sm:$0xff] }
 0x209   : > { %3804 = vmatpush.msrb.mxu2 %v9329_v63  ;;  %3855 = vmatpush.msrb.mxu3 %v3854_v22  ;;  %v9485_v22 = vpop.f32.mrf.mxu1  ;;  %v3883_v38 = vsub.f32 %v9432_v24, %v11932_v26  ;;  %v9507_v26 = vand.u32 4294901760, %v238_v36 }
 0x20a   : > { %3706 = vmatpush.msrb.mxu0 %v11931_v56  ;;  %3761 = vmatpush.msrb.mxu1 %v9099_v62  ;;  %v1244_v62 = vadd.f32 %v9122_v34, %v1195_v29  ;;  %v3878_v23 = vand.u32 4294901760, %v3877_v15  ;;  %v3889_v56 = vsub.f32 %v9446_v50, %v11574_v31  ;;  %v1522_v34 = vadd.f32 %v9176_v2, %v1447_v54 }
 0x20b   : > { %3806 = vmatpush.msrb.mxu2 %v9355_v60  ;;  %3861 = vmatpush.msrb.mxu3 %v3860_v14  ;;  %v236_v14 = vld [vmem:[#allocation2 + $0x138] sm:$0xff]  ;;  %11934 = vst [vmem:[#allocation100_spill] sm:$0xff] %v9507_v26  ;;  %v9517_v29 = vsub.f32 %v240_v30, %v9483_v45  ;;  %v11573_v2 = vand.u32 4294901760, %v9495_v33  ;;  %v11938_v30 = vld [vmem:[#allocation67_spill] sm:$0xff]  ;;  %v9537_v54 = vsub.f32 %v238_v36, %v9507_v26 }
 0x20c   : > { %3710 = vmatpush.msrb.mxu0 %v11933_v48  ;;  %3763 = vmatpush.msrb.mxu1 %v9106_v49  ;;  %v1349_v19 = vadd.f32 %v9148_v11, %v1244_v62  ;;  %v9511_v59 = vpop.f32.mrf.mxu3  ;;  %v11935_v49 = vand.u32 4294901760, %v9209_v25  ;;  %v3895_v11 = vsub.f32 %v9464_v41, %v11572_v18  ;;  %v9524_v15 = vand.u32 4294901760, %v236_v14  ;;  %v9527_v62 = vpop.f32.mrf.mxu0 }
 0x20d   : > { %3808 = vmatpush.msrb.mxu2 %v9369_v3  ;;  %3867 = vmatpush.msrb.mxu3 %v3866_v61  ;;  %v3884_v61 = vand.u32 4294901760, %v3883_v38  ;;  %v1563_v25 = vadd.f32 %v9212_v4, %v1522_v34  ;;  %v3901_v38 = vsub.f32 %v9477_v13, %v11571_v32  ;;  %v9539_v48 = vand.u32 4294901760, %v234_v51  ;;  %v232_v4 = vld [vmem:[#allocation2 + $0x118] sm:$0xff] }
 0x20e   : > { %3714 = vmatpush.msrb.mxu0 %v11935_v49  ;;  %3765 = vmatpush.msrb.mxu1 %v9117_v8  ;;  %11936 = vst [vmem:[#allocation101_spill] sm:$0xff] %v9524_v15  ;;  %v11937_v8 = vand.u32 4294901760, %v9221_v21  ;;  %v11939_v34 = vld [vmem:[#allocation70_spill] sm:$0xff]  ;;  %v11940_v21 = vand.u32 4294901760, %v9242_v53  ;;  %v3907_v36 = vsub.f32 %v9495_v33, %v11573_v2  ;;  %v11943_v53 = vld [vmem:[#allocation83_spill] sm:$0xff]  ;;  %v11946_v2 = vand.u32 4294901760, %v9270_v6 }
 0x20f   : > { %3810 = vmatpush.msrb.mxu2 %v9384_v37  ;;  %3873 = vmatpush.msrb.mxu3 %v3872_v17  ;;  %v3890_v17 = vand.u32 4294901760, %v3889_v56  ;;  %v1408_v49 = vadd.f32 %v11939_v34, %v1349_v19  ;;  %v3896_v56 = vand.u32 4294901760, %v3895_v11  ;;  %v11942_v19 = vand.u32 4294901760, %v9248_v47 }
 0x210   : > { %3718 = vmatpush.msrb.mxu0 %v11937_v8  ;;  %3767 = vmatpush.msrb.mxu1 %v11938_v30  ;;  %v11941_v8 = vld [vmem:[#allocation69_spill] sm:$0xff]  ;;  %v9551_v30 = vsub.f32 %v236_v14, %v9524_v15  ;;  %v9556_v34 = vand.u32 4294901760, %v232_v4  ;;  %v3902_v11 = vand.u32 4294901760, %v3901_v38  ;;  %v11576_v14 = vand.u32 4294901760, %v9537_v54 }
 0x211   : > { %3812 = vmatpush.msrb.mxu2 %v9399_v52  ;;  %3879 = vmatpush.msrb.mxu3 %v3878_v23  ;;  %v11575_v23 = vand.u32 4294901760, %v9517_v29  ;;  %v9559_v18 = vpop.f32.mrf.mxu1  ;;  %v9566_v47 = vsub.f32 %v234_v51, %v9539_v48  ;;  %v11947_v51 = vld [vmem:[#allocation75_spill] sm:$0xff] }
 0x212   : > { %3722 = vmatpush.msrb.mxu0 %v11940_v21  ;;  %3769 = vmatpush.msrb.mxu1 %v11941_v8  ;;  %v230_v21 = vld [vmem:[#allocation2 + $0x108] sm:$0xff]  ;;  %v11944_v8 = vld [vmem:[#allocation73_spill] sm:$0xff] }
 0x213   : > { %3814 = vmatpush.msrb.mxu2 %v9415_v0  ;;  %3885 = vmatpush.msrb.mxu3 %v3884_v61  ;;  %v1608_v32 = vadd.f32 %v11944_v8, %v1563_v25  ;;  %v9561_v61 = vpop.f32.mrf.mxu2  ;;  %v3913_v25 = vsub.f32 %v9517_v29, %v11575_v23  ;;  %v9577_v8 = vand.u32 4294901760, %v230_v21 }
 0x214   : > { %3726 = vmatpush.msrb.mxu0 %v11942_v19  ;;  %3771 = vmatpush.msrb.mxu1 %v11943_v53  ;;  %v11945_v19 = vld [vmem:[#allocation71_spill] sm:$0xff]  ;;  %v9582_v6 = vpop.f32.mrf.mxu0 }
 0x215   : > { %3816 = vmatpush.msrb.mxu2 %v9434_v16  ;;  %3891 = vmatpush.msrb.mxu3 %v3890_v17  ;;  %v1453_v53 = vadd.f32 %v11945_v19, %v1408_v49  ;;  %v3908_v17 = vand.u32 4294901760, %v3907_v36  ;;  %v9580_v49 = vpop.f32.mrf.mxu3  ;;  %v3919_v19 = vsub.f32 %v9537_v54, %v11576_v14  ;;  %v11955_v14 = vld [vmem:[#allocation13_spill] sm:$0xff] }
 0x216   : > { %3730 = vmatpush.msrb.mxu0 %v11946_v2  ;;  %3773 = vmatpush.msrb.mxu1 %v9180_v57  ;;  %v11948_v57 = vand.u32 4294901760, %v9283_v27  ;;  %v9588_v2 = vsub.f32 %v232_v4, %v9556_v34  ;;  %v11951_v27 = vand.u32 4294901760, %v9298_v35  ;;  %v3914_v4 = vand.u32 4294901760, %v3913_v25  ;;  %v11958_v25 = vld [vmem:[#allocation94_spill] sm:$0xff] }
 0x217   : > { %3818 = vmatpush.msrb.mxu2 %v9448_v5  ;;  %3897 = vmatpush.msrb.mxu3 %v3896_v56  ;;  %v1526_v31 = vadd.f32 %v11947_v51, %v1453_v53  ;;  %v11949_v56 = vld [vmem:[#allocation84_spill] sm:$0xff]  ;;  %v11577_v53 = vand.u32 4294901760, %v9566_v47 }
 0x218   : > { %3734 = vmatpush.msrb.mxu0 %v11948_v57  ;;  %3775 = vmatpush.msrb.mxu1 %v9189_v42  ;;  %v1717_v36 = vadd.f32 %v11949_v56, %v1608_v32  ;;  %v11950_v51 = vld [vmem:[#allocation88_spill] sm:$0xff]  ;;  %v11953_v57 = vld [vmem:[#allocation91_spill] sm:$0xff]  ;;  %v11954_v32 = vand.u32 4294901760, %v9551_v30  ;;  %v9606_v56 = vsub.f32 %v230_v21, %v9577_v8 }
 0x219   : > { %3820 = vmatpush.msrb.mxu2 %v9466_v55  ;;  %3903 = vmatpush.msrb.mxu3 %v3902_v11  ;;  %v1567_v23 = vadd.f32 %v11950_v51, %v1526_v31  ;;  %v11952_v42 = vld [vmem:[#allocation72_spill] sm:$0xff]  ;;  %v3931_v21 = vsub.f32 %v9566_v47, %v11577_v53  ;;  %v11966_v53 = vld [vmem:[#allocation95_spill] sm:$0xff] }
 0x21a   : > { %3738 = vmatpush.msrb.mxu0 %v11951_v27  ;;  %3777 = vmatpush.msrb.mxu1 %v11952_v42  ;;  %v1775_v38 = vadd.f32 %v11953_v57, %v1717_v36  ;;  %v3925_v11 = vsub.f32 %v9551_v30, %v11954_v32  ;;  %v11956_v31 = vld [vmem:[#allocation92_spill] sm:$0xff]  ;;  %v9613_v36 = vpop.f32.mrf.mxu1  ;;  %v3920_v57 = vand.u32 4294901760, %v3919_v19  ;;  %v11961_v32 = vld [vmem:[#allocation89_spill] sm:$0xff] }
 0x21b   : > { %3822 = vmatpush.msrb.mxu2 %v9483_v45  ;;  %3909 = vmatpush.msrb.mxu3 %v3908_v17  ;;  %v11957_v35 = vand.u32 4294901760, %v11956_v31  ;;  %v9615_v42 = vpop.f32.mrf.mxu2  ;;  %v11959_v17 = vld [vmem:[#allocation74_spill] sm:$0xff]  ;;  %v1616_v31 = vadd.f32 %v11961_v32, %v1567_v23  ;;  %v11964_v19 = vld [vmem:[#allocation85_spill] sm:$0xff]  ;;  %v11967_v32 = vld [vmem:[#allocation12_spill] sm:$0xff] }
 0x21c   : > { %3633 = vmatmul.f32.vlgmr.msra.gmra.mxu2 %v11955_v14  ;;  %v1819_v27 = vadd.f32 %v11958_v25, %v1775_v38  ;;  %3779 = vmatpush.msrb.mxu1 %v11959_v17  ;;  %v11960_v14 = vld [vmem:[#allocation17_spill] sm:$0xff]  ;;  %v11963_v38 = vand.u32 4294901760, %v9336_v10  ;;  %v3926_v25 = vand.u32 4294901760, %v3925_v11  ;;  %v3932_v10 = vand.u32 4294901760, %v3931_v21 }
 0x21d   : > { %3742 = vmatpush.msrb.mxu0 %v11957_v35  ;;  %3824 = vmatpush.msrb.mxu2 %v9507_v26  ;;  %v11962_v35 = vld [vmem:[#allocation14_spill] sm:$0xff]  ;;  %v9628_v51 = vpop.f32.mrf.mxu3  ;;  %v11968_v11 = vand.u32 4294901760, %v9344_v39  ;;  %v11975_v39 = vld [vmem:[#allocation96_spill] sm:$0xff] }
 0x21e   : > { %3915 = vmatpush.msrb.mxu3 %v3914_v4  ;;  %3466 = vmatmul.f32.vlgmr.msra.gmra.mxu0 %v11960_v14  ;;  %v11965_v4 = vand.u32 4294901760, %v9588_v2  ;;  %v1894_v23 = vadd.f32 %v11966_v53, %v1819_v27  ;;  %v11972_v27 = vld [vmem:[#allocation93_spill] sm:$0xff] }
 0x21f   : > { %3677 = vmatmul.f32.vlgmr.msra.gmra.mxu3 %v11962_v35  ;;  %3746 = vmatpush.msrb.mxu0 %v11963_v38  ;;  %v9637_v35 = vpop.f32.mrf.mxu0  ;;  %v11969_v38 = vld [vmem:[#allocation86_spill] sm:$0xff] }
 0x220   : > { %3781 = vmatpush.msrb.mxu1 %v11964_v19  ;;  %3826 = vmatpush.msrb.mxu2 %v9524_v15  ;;  %v3937_v14 = vsub.f32 %v9588_v2, %v11965_v4  ;;  %v11970_v19 = vld [vmem:[#allocation90_spill] sm:$0xff]  ;;  %v11971_v4 = vand.u32 4294901760, %v9606_v56  ;;  %v11974_v15 = vld [vmem:[#allocation97_spill] sm:$0xff] }
 0x221   : > { %3921 = vmatpush.msrb.mxu3 %v3920_v57  ;;  %3575 = vmatmul.f32.vlgmr.msra.gmra.mxu1 %v11967_v32  ;;  %v1721_v17 = vadd.f32 %v11970_v19, %v1616_v31  ;;  %v11973_v57 = vld [vmem:[#allocation87_spill] sm:$0xff]  ;;  %v11976_v31 = vld [vmem:[#allocation16_spill] sm:$0xff] }
 0x222   : > { %3750 = vmatpush.msrb.mxu0 %v11968_v11  ;;  %3783 = vmatpush.msrb.mxu1 %v11969_v38  ;;  %v3943_v53 = vsub.f32 %v9606_v56, %v11971_v4  ;;  %v3938_v21 = vand.u32 4294901760, %v3937_v14  ;;  %v1935_v11 = vadd.f32 %v11975_v39, %v1894_v23  ;;  %v9656_v19 = vpop.f32.mrf.mxu1  ;;  %v11978_v23 = vld [vmem:[#allocation18_spill] sm:$0xff] }
 0x223   : > { %3828 = vmatpush.msrb.mxu2 %v9539_v48  ;;  %3927 = vmatpush.msrb.mxu3 %v3926_v25  ;;  %v1780_v26 = vadd.f32 %v11974_v15, %v1721_v17  ;;  %v9658_v4 = vpop.f32.mrf.mxu2  ;;  %v11977_v17 = vld [vmem:[#allocation21_spill] sm:$0xff] }
 0x224   : > { %3957 = vmatpush.msra.mxu0 %v11972_v27  ;;  %3785 = vmatpush.msrb.mxu1 %v11973_v57  ;;  %v1980_v38 = vadd.f32 %v9453_v43, %v1935_v11  ;;  %v3944_v15 = vand.u32 4294901760, %v3943_v53  ;;  %v11981_v53 = vld [vmem:[#allocation15_spill] sm:$0xff]  ;;  %v11984_v11 = vand.u32 4294901760, %v9382_v28 }
 0x225   : > { %3830 = vmatpush.msrb.mxu2 %v9556_v34  ;;  %3933 = vmatpush.msrb.mxu3 %v3932_v10  ;;  %v1825_v25 = vadd.f32 %v9424_v7, %v1780_v26  ;;  %v9666_v7 = vpop.f32.mrf.mxu3  ;;  %v11979_v26 = vand.u32 4294901760, %v11972_v27 }
 0x226   : > { %3638 = vmatmul.f32.gmra.mxu2 %v11976_v31  ;;  %3960 = vmatpush.msra.mxu0 %v9362_v44  ;;  %v2089_v14 = vadd.f32 %v9485_v22, %v1980_v38  ;;  %v11982_v22 = vand.u32 4294901760, %v9362_v44  ;;  %v11985_v44 = vld [vmem:[#allocation23_spill] sm:$0xff] }
 0x227   : > { %3787 = vmatpush.msrb.mxu1 %v9280_v9  ;;  %3832 = vmatpush.msrb.mxu2 %v9577_v8  ;;  %v9668_v43 = vpop.f32.mrf.mxu0  ;;  %v11980_v9 = vld [vmem:[#allocation98_spill] sm:$0xff]  ;;  %v11987_v38 = vld [vmem:[#allocation19_spill] sm:$0xff] }
 0x228   : > { %3939 = vmatpush.msrb.mxu3 %v3938_v21  ;;  %3474 = vmatmul.f32.gmra.mxu0 %v11977_v17  ;;  %v1898_v10 = vadd.f32 %v11980_v9, %v1825_v25  ;;  %v2147_v57 = vadd.f32 %v9487_v20, %v2089_v14  ;;  %v11997_v9 = vand.u32 4294901760, %v9551_v30 }
 0x229   : > { %3683 = vmatmul.f32.gmra.mxu3 %v11978_v23  ;;  %3963 = vmatpush.msra.mxu0 %v9382_v28 }
 0x22a   : > { %4062 = vmatpush.msra.mxu2 %v11979_v26  ;;  %3789 = vmatpush.msrb.mxu1 %v9306_v1  ;;  %v11983_v1 = vld [vmem:[#allocation99_spill] sm:$0xff]  ;;  %v2562_v21 = vpop.f32.mrf.mxu1  ;;  %v2191_v20 = vadd.f32 %v9511_v59, %v2147_v57 }
 0x22b   : > { %3945 = vmatpush.msrb.mxu3 %v3944_v15  ;;  %3579 = vmatmul.f32.gmra.mxu1 %v11981_v53  ;;  %v1939_v27 = vadd.f32 %v11983_v1, %v1898_v10  ;;  %v9684_v39 = vpop.f32.mrf.mxu2  ;;  %v11998_v10 = vld [vmem:[#allocation100_spill] sm:$0xff]  ;;  %v11999_v57 = vld [vmem:[#allocation11_spill] sm:$0xff]  ;;  %v284_v1 = vld [vmem:[#allocation2 + $0x2b8] sm:$0xff] }
 0x22c   : > { %3966 = vmatpush.msra.mxu0 %v9397_v46  ;;  %4066 = vmatpush.msra.mxu2 %v11982_v22  ;;  %v2266_v25 = vadd.f32 %v9582_v6, %v2191_v20  ;;  %v12002_v20 = vld [vmem:[#allocation20_spill] sm:$0xff] }
 0x22d   : > { %4133 = vmatpush.msra.mxu3 %v9319_v40  ;;  %3791 = vmatpush.msrb.mxu1 %v9313_v58  ;;  %v1988_v58 = vadd.f32 %v9527_v62, %v1939_v27  ;;  %v9696_v31 = vpop.f32.mrf.mxu3  ;;  %v11989_v62 = vand.u32 4294901760, %v9432_v24  ;;  %v12000_v27 = vand.u32 4294901760, %v9566_v47 }
 0x22e   : > { %3969 = vmatpush.msra.mxu0 %v9413_v12  ;;  %4070 = vmatpush.msra.mxu2 %v11984_v11 }
 0x22f   : > { %4015 = vmatpush.msra.mxu1 %v9319_v40  ;;  %4135 = vmatpush.msra.mxu3 %v9329_v63  ;;  %v11986_v40 = vand.u32 4294901760, %v9397_v46  ;;  %v2093_v28 = vadd.f32 %v9559_v18, %v1988_v58  ;;  %v9704_v59 = vpop.f32.mrf.mxu0  ;;  %v11988_v46 = vand.u32 4294901760, %v9413_v12  ;;  %v282_v58 = vld [vmem:[#allocation2 + $0x2a8] sm:$0xff] }
 0x230   : > { %3838 = vmatmul.f32.vlgmr.msrb.gmra.mxu2 %v11985_v44  ;;  %3972 = vmatpush.msra.mxu0 %v9432_v24  ;;  %v11991_v24 = vand.u32 4294901760, %v9464_v41 }
 0x231   : > { %4017 = vmatpush.msra.mxu1 %v9329_v63  ;;  %4074 = vmatpush.msra.mxu2 %v11986_v40  ;;  %v2307_v63 = vadd.f32 %v9613_v36, %v2266_v25  ;;  %v2152_v18 = vadd.f32 %v9561_v61, %v2093_v28  ;;  %v11990_v36 = vand.u32 4294901760, %v9446_v50  ;;  %v280_v40 = vld [vmem:[#allocation2 + $0x298] sm:$0xff] }
 0x232   : > { %4137 = vmatpush.msra.mxu3 %v9355_v60  ;;  %3752 = vmatmul.f32.vlgmr.msrb.gmra.mxu0 %v11967_v32  ;;  %v9721_v12 = vpop.f32.mrf.mxu1 }
 0x233   : > { %3947 = vmatmul.f32.vlgmr.msrb.gmra.mxu3 %v11987_v38  ;;  %3975 = vmatpush.msra.mxu0 %v9446_v50  ;;  %v9723_v6 = vpop.f32.mrf.mxu2 }
 0x234   : > { %4019 = vmatpush.msra.mxu1 %v9355_v60  ;;  %4078 = vmatpush.msra.mxu2 %v11988_v46  ;;  %v2352_v60 = vadd.f32 %v9615_v42, %v2307_v63  ;;  %v9818_v63 = vand.u32 4294901760, %v282_v58 }
 0x235   : > { %4139 = vmatpush.msra.mxu3 %v9369_v3  ;;  %3793 = vmatmul.f32.vlgmr.msrb.gmra.mxu1 %v11967_v32 }
 0x236   : > { %3978 = vmatpush.msra.mxu0 %v9464_v41  ;;  %4021 = vmatpush.msra.mxu1 %v9369_v3  ;;  %v2197_v3 = vadd.f32 %v9580_v49, %v2152_v18  ;;  %v2461_v42 = vadd.f32 %v9628_v51, %v2352_v60  ;;  %v292_v41 = vld [vmem:[#allocation2 + $0x2f8] sm:$0xff]  ;;  %v12004_v60 = vand.u32 4294901760, %v9606_v56 }
 0x237   : > { %4082 = vmatpush.msra.mxu2 %v11989_v62  ;;  %4141 = vmatpush.msra.mxu3 %v9384_v37  ;;  %v2723_v61 = vpop.f32.mrf.mxu0 }
 0x238   : > { %3981 = vmatpush.msra.mxu0 %v9477_v13  ;;  %4023 = vmatpush.msra.mxu1 %v9384_v37  ;;  %v9734_v37 = vpop.f32.mrf.mxu3  ;;  %v2270_v50 = vadd.f32 %v9637_v35, %v2197_v3  ;;  %v2519_v32 = vadd.f32 %v9668_v43, %v2461_v42  ;;  %v276_v42 = vld [vmem:[#allocation2 + $0x278] sm:$0xff] }
 0x239   : > { %4086 = vmatpush.msra.mxu2 %v11990_v36  ;;  %4143 = vmatpush.msra.mxu3 %v9399_v52 }
 0x23a   : > { %3984 = vmatpush.msra.mxu0 %v9495_v33  ;;  %4025 = vmatpush.msra.mxu1 %v9399_v52  ;;  %v11992_v52 = vand.u32 4294901760, %v9477_v13  ;;  %v2311_v49 = vadd.f32 %v9656_v19, %v2270_v50  ;;  %v290_v13 = vld [vmem:[#allocation2 + $0x2e8] sm:$0xff]  ;;  %v2563_v51 = vadd.f32 %v2562_v21, %v2519_v32  ;;  %v2832_v35 = vpop.f32.mrf.mxu1  ;;  %v9757_v19 = vand.u32 4294901760, %v292_v41 }
 0x23b   : > { %4090 = vmatpush.msra.mxu2 %v11991_v24  ;;  %4145 = vmatpush.msra.mxu3 %v9415_v0  ;;  %v9752_v15 = vpop.f32.mrf.mxu2  ;;  %v9765_v14 = vand.u32 4294901760, %v290_v13 }
 0x23c   : > { %3987 = vmatpush.msra.mxu0 %v9517_v29  ;;  %4027 = vmatpush.msra.mxu1 %v9415_v0  ;;  %v11993_v0 = vand.u32 4294901760, %v9495_v33  ;;  %v288_v33 = vld [vmem:[#allocation2 + $0x2d8] sm:$0xff]  ;;  %v2360_v17 = vadd.f32 %v9658_v4, %v2311_v49  ;;  %v2638_v43 = vadd.f32 %v9684_v39, %v2563_v51  ;;  %v9777_v4 = vsub.f32 %v292_v41, %v9757_v19 }
 0x23d   : > { %4094 = vmatpush.msra.mxu2 %v11992_v52  ;;  %4147 = vmatpush.msra.mxu3 %v9434_v16  ;;  %v9851_v49 = vsub.f32 %v282_v58, %v9818_v63  ;;  %v9864_v51 = vand.u32 4294901760, %v276_v42 }
 0x23e   : > { %3990 = vmatpush.msra.mxu0 %v9537_v54  ;;  %4029 = vmatpush.msra.mxu1 %v9434_v16  ;;  %v11994_v16 = vand.u32 4294901760, %v9517_v29  ;;  %v11996_v29 = vld [vmem:[#allocation26_spill] sm:$0xff]  ;;  %v2465_v22 = vadd.f32 %v9666_v7, %v2360_v17  ;;  %v2679_v39 = vadd.f32 %v9696_v31, %v2638_v43  ;;  %v12001_v7 = vld [vmem:[#allocation101_spill] sm:$0xff]  ;;  %v4224_v11 = vand.u32 4294901760, %v9777_v4 }
 0x23f   : > { %4098 = vmatpush.msra.mxu2 %v11993_v0  ;;  %4149 = vmatpush.msra.mxu3 %v9448_v5  ;;  %v9779_v26 = vpop.f32.mrf.mxu0  ;;  %v272_v17 = vld [vmem:[#allocation2 + $0x258] sm:$0xff] }
 0x240   : > { %3756 = vmatmul.f32.gmra.mxu0 %v11981_v53  ;;  %4031 = vmatpush.msra.mxu1 %v9448_v5  ;;  %v11995_v5 = vand.u32 4294901760, %v9537_v54  ;;  %v9767_v23 = vpop.f32.mrf.mxu3  ;;  %v286_v54 = vld [vmem:[#allocation2 + $0x2c8] sm:$0xff]  ;;  %v2724_v31 = vadd.f32 %v2723_v61, %v2679_v39  ;;  %v9894_v39 = vand.u32 4294901760, %v272_v17 }
 0x241   : > { %3993 = vmatpush.msra.mxu0 %v9551_v30  ;;  %4102 = vmatpush.msra.mxu2 %v11994_v16  ;;  %v9793_v21 = vand.u32 4294901760, %v286_v54  ;;  %v2524_v30 = vadd.f32 %v9704_v59, %v2465_v22 }
 0x242   : > { %4151 = vmatpush.msra.mxu3 %v9466_v55  ;;  %4033 = vmatpush.msra.mxu1 %v9466_v55  ;;  %v9774_v55 = vand.u32 4294901760, %v288_v33  ;;  %v9808_v25 = vpop.f32.mrf.mxu1  ;;  %v2833_v62 = vadd.f32 %v2832_v35, %v2724_v31 }
 0x243   : > { %3996 = vmatpush.msra.mxu0 %v9566_v47  ;;  %4106 = vmatpush.msra.mxu2 %v11995_v5  ;;  %v9805_v47 = vand.u32 4294901760, %v284_v1  ;;  %v2569_v28 = vadd.f32 %v9721_v12, %v2524_v30  ;;  %v9810_v59 = vpop.f32.mrf.mxu2  ;;  %v9821_v18 = vsub.f32 %v286_v54, %v9793_v21  ;;  %v9829_v12 = vand.u32 4294901760, %v280_v40  ;;  %v12005_v5 = vld [vmem:[#allocation22_spill] sm:$0xff]  ;;  %v270_v54 = vld [vmem:[#allocation2 + $0x248] sm:$0xff] }
 0x244   : > { %4153 = vmatpush.msra.mxu3 %v9483_v45  ;;  %3846 = vmatmul.f32.gmra.mxu2 %v11996_v29  ;;  %v9801_v44 = vsub.f32 %v288_v33, %v9774_v55 }
 0x245   : > { %3999 = vmatpush.msra.mxu0 %v9588_v2  ;;  %4035 = vmatpush.msra.mxu1 %v9483_v45  ;;  %v9788_v45 = vsub.f32 %v290_v13, %v9765_v14  ;;  %v9837_v61 = vsub.f32 %v284_v1, %v9805_v47  ;;  %v4242_v41 = vand.u32 4294901760, %v9821_v18  ;;  %v9860_v0 = vsub.f32 %v280_v40, %v9829_v12  ;;  %v274_v13 = vld [vmem:[#allocation2 + $0x268] sm:$0xff] }
 0x246   : > { %4110 = vmatpush.msra.mxu2 %v11997_v9  ;;  %4155 = vmatpush.msra.mxu3 %v11998_v10  ;;  %v4236_v36 = vand.u32 4294901760, %v9801_v44  ;;  %v9877_v43 = vand.u32 4294901760, %v274_v13 }
 0x247   : > { %3951 = vmatmul.f32.gmra.mxu3 %v11999_v57  ;;  %4002 = vmatpush.msra.mxu0 %v9606_v56  ;;  %v4230_v46 = vand.u32 4294901760, %v9788_v45  ;;  %v3009_v24 = vpop.f32.mrf.mxu0  ;;  %v2642_v56 = vadd.f32 %v9723_v6, %v2569_v28  ;;  %v2891_v6 = vadd.f32 %v9752_v15, %v2833_v62  ;;  %v4248_v35 = vand.u32 4294901760, %v9837_v61  ;;  %v12006_v28 = vld [vmem:[#allocation24_spill] sm:$0xff] }
 0x248   : > { %4037 = vmatpush.msra.mxu1 %v11998_v10  ;;  %4114 = vmatpush.msra.mxu2 %v12000_v27  ;;  %v9832_v3 = vpop.f32.mrf.mxu3  ;;  %v4243_v29 = vsub.f32 %v9821_v18, %v4242_v41  ;;  %v11591_v1 = vand.u32 4294901760, %v9860_v0 }
 0x249   : > { %4157 = vmatpush.msra.mxu3 %v12001_v7  ;;  %3797 = vmatmul.f32.gmra.mxu1 %v11981_v53  ;;  %v12003_v53 = vand.u32 4294901760, %v9588_v2  ;;  %v4225_v2 = vsub.f32 %v9777_v4, %v4224_v11  ;;  %v4231_v50 = vsub.f32 %v9788_v45, %v4230_v46  ;;  %v2935_v10 = vadd.f32 %v9767_v23, %v2891_v6 }
 0x24a   : > { %4005 = vmatmul.f32.vlgmr.msra.gmra.mxu0 %v12002_v20  ;;  %4039 = vmatpush.msra.mxu1 %v12001_v7  ;;  %v3050_v15 = vpop.f32.mrf.mxu1  ;;  %v4249_v30 = vsub.f32 %v9837_v61, %v4248_v35  ;;  %v9897_v23 = vsub.f32 %v276_v42, %v9864_v51  ;;  %v9901_v20 = vand.u32 4294901760, %v270_v54  ;;  %v4244_v31 = vand.u32 4294901760, %v4243_v29 }
 0x24b   : > { %4174 = vmatpush.msrb.mxu0 %v9757_v19  ;;  %4118 = vmatpush.msra.mxu2 %v12003_v53  ;;  %v4226_v32 = vand.u32 4294901760, %v4225_v2  ;;  %v4232_v16 = vand.u32 4294901760, %v4231_v50  ;;  %v9870_v33 = vpop.f32.mrf.mxu2  ;;  %v3010_v58 = vadd.f32 %v3009_v24, %v2935_v10  ;;  %v9922_v42 = vsub.f32 %v272_v17, %v9894_v39 }
 0x24c   : > { %4159 = vmatpush.msra.mxu3 %v9539_v48  ;;  %4041 = vmatpush.msra.mxu1 %v9539_v48  ;;  %v278_v48 = vld [vmem:[#allocation2 + $0x288] sm:$0xff]  ;;  %v11586_v50 = vand.u32 4294901760, %v9897_v23 }
 0x24d   : > { %4176 = vmatpush.msrb.mxu0 %v9765_v14  ;;  %4122 = vmatpush.msra.mxu2 %v12004_v60  ;;  %v9847_v52 = vand.u32 4294901760, %v278_v48  ;;  %v4261_v60 = vsub.f32 %v9860_v0, %v11591_v1  ;;  %v3051_v24 = vadd.f32 %v3050_v15, %v3010_v58  ;;  %v11583_v10 = vand.u32 4294901760, %v9922_v42 }
 0x24e   : > { %4161 = vmatpush.msra.mxu3 %v9556_v34  ;;  %4124 = vmatmul.f32.vlgmr.msra.gmra.mxu2 %v11987_v38 }
 0x24f   : > { %4178 = vmatpush.msrb.mxu0 %v9774_v55  ;;  %4329 = vmatpush.msrb.mxu2 %v9777_v4  ;;  %v3013_v40 = vpop.f32.mrf.mxu0  ;;  %v4262_v17 = vand.u32 4294901760, %v4261_v60  ;;  %v310_v4 = vld [vmem:[#allocation2 + $0x388] sm:$0xff] }
 0x250   : > { %4043 = vmatpush.msra.mxu1 %v9556_v34  ;;  %4163 = vmatpush.msra.mxu3 %v9577_v8  ;;  %v4237_v34 = vsub.f32 %v9801_v44, %v4236_v36  ;;  %v9889_v27 = vpop.f32.mrf.mxu3 }
 0x251   : > { %4165 = vmatmul.f32.vlgmr.msra.gmra.mxu3 %v11987_v38  ;;  %4180 = vmatpush.msrb.mxu0 %v9793_v21  ;;  %v2683_v38 = vadd.f32 %v9734_v37, %v2642_v56  ;;  %v11593_v37 = vand.u32 4294901760, %v9851_v49  ;;  %v4250_v56 = vand.u32 4294901760, %v4249_v30 }
 0x252   : > { %4332 = vmatpush.msrb.mxu2 %v9788_v45  ;;  %4387 = vmatpush.msrb.mxu3 %v9757_v19  ;;  %v4238_v22 = vand.u32 4294901760, %v4237_v34  ;;  %v3054_v15 = vpop.f32.mrf.mxu1 }
 0x253   : > { %4045 = vmatpush.msra.mxu1 %v9577_v8  ;;  %4182 = vmatpush.msrb.mxu0 %v9805_v47  ;;  %v9881_v8 = vsub.f32 %v278_v48, %v9847_v52  ;;  %v2732_v9 = vadd.f32 %v9779_v26, %v2683_v38  ;;  %v268_v26 = vld [vmem:[#allocation2 + $0x238] sm:$0xff]  ;;  %v4255_v53 = vsub.f32 %v9851_v49, %v11593_v37  ;;  %v266_v48 = vld [vmem:[#allocation2 + $0x228] sm:$0xff] }
 0x254   : > { %4049 = vmatmul.f32.vlgmr.msra.gmra.mxu1 %v12005_v5  ;;  %4335 = vmatpush.msrb.mxu2 %v9801_v44  ;;  %v9916_v2 = vand.u32 4294901760, %v268_v26  ;;  %v9935_v38 = vand.u32 4294901760, %v266_v48  ;;  %v264_v5 = vld [vmem:[#allocation2 + $0x218] sm:$0xff] }
 0x255   : > { %4227 = vmatpush.msrb.mxu1 %v4226_v32  ;;  %4389 = vmatpush.msrb.mxu3 %v9765_v14  ;;  %v2837_v7 = vadd.f32 %v9808_v25, %v2732_v9  ;;  %v11588_v62 = vand.u32 4294901760, %v9881_v8  ;;  %v9910_v25 = vsub.f32 %v274_v13, %v9877_v43  ;;  %v9928_v32 = vsub.f32 %v270_v54, %v9901_v20 }
 0x256   : > { %4184 = vmatpush.msrb.mxu0 %v9818_v63  ;;  %4338 = vmatpush.msrb.mxu2 %v9821_v18  ;;  %v4256_v34 = vand.u32 4294901760, %v4255_v53  ;;  %v9943_v29 = vsub.f32 %v268_v26, %v9916_v2  ;;  %v3096_v54 = vadd.f32 %v9870_v33, %v3051_v24  ;;  %v4273_v9 = vsub.f32 %v9897_v23, %v11586_v50  ;;  %v324_v26 = vld [vmem:[#allocation2 + $0x3f8] sm:$0xff]  ;;  %v318_v50 = vld [vmem:[#allocation2 + $0x3c8] sm:$0xff] }
 0x257   : > { %4233 = vmatpush.msrb.mxu1 %v4232_v16  ;;  %4391 = vmatpush.msrb.mxu3 %v9774_v55  ;;  %v2896_v6 = vadd.f32 %v9810_v59, %v2837_v7  ;;  %v4267_v13 = vsub.f32 %v9881_v8, %v11588_v62  ;;  %v11585_v59 = vand.u32 4294901760, %v9910_v25  ;;  %v9940_v16 = vpop.f32.mrf.mxu2  ;;  %v11582_v30 = vand.u32 4294901760, %v9928_v32 }
 0x258   : > { %4010 = vmatmul.f32.gmra.mxu0 %v12006_v28  ;;  %4128 = vmatmul.f32.gmra.mxu2 %v11999_v57  ;;  %v6733_v33 = vmov 0.0   ;;  %v9959_v7 = vpop.f32.mrf.mxu3  ;;  %v9964_v28 = vand.u32 4294901760, %v264_v5  ;;  %v9967_v53 = vsub.f32 %v266_v48, %v9935_v38  ;;  %v4285_v48 = vsub.f32 %v9922_v42, %v11583_v10 }
 0x259   : > { %4186 = vmatpush.msrb.mxu0 %v9829_v12  ;;  %4239 = vmatpush.msrb.mxu1 %v4238_v22  ;;  %v2941_v22 = vadd.f32 %v9832_v3, %v2896_v6  ;;  %6409 = vst [vmem:[%s9955_s20] sm:$0xff] %v6733_v33  ;;  %v4268_v3 = vand.u32 4294901760, %v4267_v13  ;;  %v4279_v58 = vsub.f32 %v9910_v25, %v11585_v59  ;;  %v9979_v13 = vand.u32 4294901760, %v324_v26 }
 0x25a   : > { %4341 = vmatpush.msrb.mxu2 %v9837_v61  ;;  %4393 = vmatpush.msrb.mxu3 %v9793_v21  ;;  %6410 = vst [vmem:[%s9955_s20 + $0x8] sm:$0xff] %v6733_v33  ;;  %v3205_v6 = vadd.f32 %v9889_v27, %v3096_v54  ;;  %v4291_v27 = vsub.f32 %v9928_v32, %v11582_v30  ;;  %v12013_v61 = vand.u32 4294901760, %v9851_v49 }
 0x25b   : > { %4169 = vmatmul.f32.gmra.mxu3 %v11999_v57  ;;  %4188 = vmatpush.msrb.mxu0 %v9847_v52  ;;  %v12007_v57 = vld [vmem:[#allocation25_spill] sm:$0xff]  ;;  %v3262_v60 = vpop.f32.mrf.mxu0  ;;  %v3014_v24 = vadd.f32 %v3013_v40, %v2941_v22  ;;  %6411 = vst [vmem:[%s9955_s20 + $0x30] sm:$0xff] %v6733_v33  ;;  %v4280_v54 = vand.u32 4294901760, %v4279_v58  ;;  %v9991_v22 = vsub.f32 %v264_v5, %v9964_v28 }
 0x25c   : > { %4245 = vmatpush.msrb.mxu1 %v4244_v31  ;;  %4344 = vmatpush.msrb.mxu2 %v9851_v49  ;;  %v262_v31 = vld [vmem:[#allocation2 + $0x208] sm:$0xff]  ;;  %6412 = vst [vmem:[%s9955_s20 + $0x38] sm:$0xff] %v6733_v33  ;;  %v10001_v5 = vsub.f32 %v324_v26, %v9979_v13  ;;  %v12014_v49 = vld [vmem:[#allocation31_spill] sm:$0xff] }
 0x25d   : > { %4395 = vmatpush.msrb.mxu3 %v9805_v47  ;;  %4055 = vmatmul.f32.gmra.mxu1 %v12007_v57  ;;  %v3055_v40 = vadd.f32 %v3054_v15, %v3014_v24  ;;  %v9984_v57 = vand.u32 4294901760, %v262_v31  ;;  %v11587_v15 = vand.u32 4294901760, %v9967_v53  ;;  %v320_v24 = vld [vmem:[#allocation2 + $0x3d8] sm:$0xff] }
 0x25e   : > { %4190 = vmatpush.msrb.mxu0 %v9864_v51  ;;  %4251 = vmatpush.msrb.mxu1 %v4250_v56  ;;  %v11584_v56 = vand.u32 4294901760, %v9943_v29 }
 0x25f   : > { %4347 = vmatpush.msrb.mxu2 %v9860_v0  ;;  %4397 = vmatpush.msrb.mxu3 %v9818_v63  ;;  %v10009_v59 = vsub.f32 %v262_v31, %v9984_v57  ;;  %v4303_v26 = vsub.f32 %v9967_v53, %v11587_v15  ;;  %v10025_v15 = vand.u32 4294901760, %v318_v50 }
 0x260   : > { %4192 = vmatpush.msrb.mxu0 %v9877_v43  ;;  %4257 = vmatpush.msrb.mxu1 %v4256_v34  ;;  %v4274_v34 = vand.u32 4294901760, %v4273_v9  ;;  %v3263_v9 = vadd.f32 %v3262_v60, %v3205_v6  ;;  %v4297_v33 = vsub.f32 %v9943_v29, %v11584_v56  ;;  %v3104_v6 = vadd.f32 %v9940_v16, %v3055_v40  ;;  %v316_v40 = vld [vmem:[#allocation2 + $0x3b8] sm:$0xff] }
 0x261   : > { %4350 = vmatpush.msrb.mxu2 %v9881_v8  ;;  %4399 = vmatpush.msrb.mxu3 %v9829_v12  ;;  %v4292_v56 = vand.u32 4294901760, %v4291_v27  ;;  %v11590_v27 = vand.u32 4294901760, %v10001_v5 }
 0x262   : > { %4194 = vmatpush.msrb.mxu0 %v9894_v39  ;;  %4263 = vmatpush.msrb.mxu1 %v4262_v17  ;;  %v322_v17 = vld [vmem:[#allocation2 + $0x3e8] sm:$0xff]  ;;  %v4298_v31 = vand.u32 4294901760, %v4297_v33  ;;  %v11592_v33 = vand.u32 4294901760, %v10009_v59 }
 0x263   : > { %4353 = vmatpush.msrb.mxu2 %v9897_v23  ;;  %4401 = vmatpush.msrb.mxu3 %v9847_v52  ;;  %v10003_v58 = vand.u32 4294901760, %v322_v17 }
 0x264   : > { %4196 = vmatpush.msrb.mxu0 %v9901_v20  ;;  %4269 = vmatpush.msrb.mxu1 %v4268_v3  ;;  %v4286_v3 = vand.u32 4294901760, %v4285_v48 }
 0x265   : > { %4356 = vmatpush.msrb.mxu2 %v9910_v25  ;;  %4403 = vmatpush.msrb.mxu3 %v9864_v51  ;;  %v3306_v30 = vpop.f32.mrf.mxu1  ;;  %v3381_v10 = vpop.f32.mrf.mxu2 }
 0x266   : > { %4198 = vmatpush.msrb.mxu0 %v9916_v2  ;;  %4275 = vmatpush.msrb.mxu1 %v4274_v34  ;;  %v3307_v60 = vadd.f32 %v3306_v30, %v3263_v9  ;;  %v11589_v30 = vand.u32 4294901760, %v9991_v22  ;;  %v10016_v34 = vand.u32 4294901760, %v320_v24  ;;  %v3267_v9 = vpop.f32.mrf.mxu0 }
 0x267   : > { %4359 = vmatpush.msrb.mxu2 %v9922_v42  ;;  %4405 = vmatpush.msrb.mxu3 %v9877_v43 }
 0x268   : > { %4200 = vmatpush.msrb.mxu0 %v9935_v38  ;;  %4281 = vmatpush.msrb.mxu1 %v4280_v54  ;;  %v3382_v16 = vadd.f32 %v3381_v10, %v3307_v60  ;;  %v3422_v48 = vpop.f32.mrf.mxu3  ;;  %v10023_v54 = vsub.f32 %v322_v17, %v10003_v58  ;;  %v3209_v60 = vadd.f32 %v9959_v7, %v3104_v6  ;;  %v314_v7 = vld [vmem:[#allocation2 + $0x3a8] sm:$0xff] }
 0x269   : > { %4362 = vmatpush.msrb.mxu2 %v9928_v32  ;;  %4407 = vmatpush.msrb.mxu3 %v9894_v39  ;;  %v4309_v17 = vsub.f32 %v9991_v22, %v11589_v30  ;;  %v10036_v62 = vsub.f32 %v320_v24, %v10016_v34  ;;  %v10049_v24 = vsub.f32 %v318_v50, %v10025_v15  ;;  %v312_v30 = vld [vmem:[#allocation2 + $0x398] sm:$0xff] }
 0x26a   : > { %4202 = vmatpush.msrb.mxu0 %v9964_v28  ;;  %4287 = vmatpush.msrb.mxu1 %v4286_v3  ;;  %v3423_v10 = vadd.f32 %v3422_v48, %v3382_v16  ;;  %v4304_v3 = vand.u32 4294901760, %v4303_v26  ;;  %v10038_v16 = vand.u32 4294901760, %v316_v40  ;;  %v3268_v6 = vadd.f32 %v3267_v9, %v3209_v60  ;;  %v12008_v48 = vld [vmem:[#allocation33_spill] sm:$0xff] }
 0x26b   : > { %4365 = vmatpush.msrb.mxu2 %v9943_v29  ;;  %4409 = vmatpush.msrb.mxu3 %v9901_v20  ;;  %v11600_v26 = vand.u32 4294901760, %v10023_v54  ;;  %v10057_v9 = vand.u32 4294901760, %v314_v7  ;;  %v4310_v50 = vand.u32 4294901760, %v4309_v17 }
 0x26c   : > { %4204 = vmatpush.msrb.mxu0 %v9984_v57  ;;  %4293 = vmatpush.msrb.mxu1 %v4292_v56  ;;  %6405 = vst [vmem:[%s9955_s20 + $0x10] sm:$0xff] %v3423_v10  ;;  %v4597_v56 = vsub.f32 %v10001_v5, %v11590_v27  ;;  %v11596_v27 = vand.u32 4294901760, %v10036_v62  ;;  %v10062_v1 = vsub.f32 %v316_v40, %v10038_v16  ;;  %v11594_v40 = vand.u32 4294901760, %v10049_v24 }
 0x26d   : > { %4368 = vmatpush.msrb.mxu2 %v9967_v53  ;;  %4411 = vmatpush.msrb.mxu3 %v9916_v2  ;;  %v4603_v17 = vsub.f32 %v10023_v54, %v11600_v26 }
 0x26e   : > { %4210 = vmatmul.f32.vlgmr.msrb.gmra.mxu0 %v12008_v48  ;;  %4299 = vmatpush.msrb.mxu1 %v4298_v31  ;;  %v3312_v10 = vpop.f32.mrf.mxu1  ;;  %v4315_v31 = vsub.f32 %v10009_v59, %v11592_v33  ;;  %v11595_v44 = vand.u32 4294901760, %v10062_v1 }
 0x26f   : > { %4434 = vmatpush.msra.mxu0 %v4224_v11  ;;  %4371 = vmatpush.msrb.mxu2 %v9991_v22  ;;  %v3313_v60 = vadd.f32 %v3312_v10, %v3268_v6  ;;  %v3385_v48 = vpop.f32.mrf.mxu2  ;;  %v10067_v11 = vand.u32 4294901760, %v312_v30  ;;  %v12009_v6 = vld [vmem:[#allocation28_spill] sm:$0xff]  ;;  %v308_v10 = vld [vmem:[#allocation2 + $0x378] sm:$0xff] }
 0x270   : > { %4413 = vmatpush.msrb.mxu3 %v9935_v38  ;;  %4305 = vmatpush.msrb.mxu1 %v4304_v3  ;;  %v4598_v3 = vand.u32 4294901760, %v4597_v56  ;;  %v4316_v45 = vand.u32 4294901760, %v4315_v31  ;;  %v10094_v31 = vand.u32 4294901760, %v308_v10 }
 0x271   : > { %4438 = vmatpush.msra.mxu0 %v4230_v46  ;;  %4374 = vmatpush.msrb.mxu2 %v10009_v59  ;;  %v3386_v33 = vadd.f32 %v3385_v48, %v3313_v60  ;;  %v10079_v46 = vsub.f32 %v314_v7, %v10057_v9  ;;  %v10081_v60 = vand.u32 4294901760, %v310_v4  ;;  %v4609_v48 = vsub.f32 %v10036_v62, %v11596_v27 }
 0x272   : > { %4415 = vmatpush.msrb.mxu3 %v9964_v28  ;;  %4377 = vmatmul.f32.vlgmr.msrb.gmra.mxu2 %v12009_v6  ;;  %v3426_v37 = vpop.f32.mrf.mxu3  ;;  %v306_v6 = vld [vmem:[#allocation2 + $0x368] sm:$0xff]  ;;  %v10092_v7 = vsub.f32 %v312_v30, %v10067_v11 }
 0x273   : > { %4442 = vmatpush.msra.mxu0 %v4236_v36  ;;  %4546 = vmatpush.msra.mxu2 %v9979_v13  ;;  %v3427_v56 = vadd.f32 %v3426_v37, %v3386_v33  ;;  %v12010_v36 = vld [vmem:[#allocation29_spill] sm:$0xff]  ;;  %v4604_v37 = vand.u32 4294901760, %v4603_v17  ;;  %v4615_v33 = vsub.f32 %v10049_v24, %v11594_v40  ;;  %v11597_v18 = vand.u32 4294901760, %v10079_v46 }
 0x274   : > { %4311 = vmatpush.msrb.mxu1 %v4310_v50  ;;  %4417 = vmatpush.msrb.mxu3 %v9984_v57  ;;  %v304_v50 = vld [vmem:[#allocation2 + $0x358] sm:$0xff]  ;;  %v10106_v30 = vand.u32 4294901760, %v306_v6  ;;  %v4621_v17 = vsub.f32 %v10062_v1, %v11595_v44 }
 0x275   : > { %4421 = vmatmul.f32.vlgmr.msrb.gmra.mxu3 %v12010_v36  ;;  %4446 = vmatpush.msra.mxu0 %v4242_v41  ;;  %6407 = vst [vmem:[%s9955_s20 + $0x20] sm:$0xff] %v3427_v56  ;;  %v12011_v36 = vld [vmem:[#allocation35_spill] sm:$0xff]  ;;  %v10104_v41 = vsub.f32 %v310_v4, %v10081_v60  ;;  %v11598_v4 = vand.u32 4294901760, %v10092_v7  ;;  %v10120_v40 = vand.u32 4294901760, %v304_v50 }
 0x276   : > { %4548 = vmatpush.msra.mxu2 %v10003_v58  ;;  %4599 = vmatpush.msra.mxu3 %v4598_v3  ;;  %v12012_v56 = vld [vmem:[#allocation27_spill] sm:$0xff]  ;;  %v4610_v3 = vand.u32 4294901760, %v4609_v48  ;;  %v300_v48 = vld [vmem:[#allocation2 + $0x338] sm:$0xff] }
 0x277   : > { %4317 = vmatpush.msrb.mxu1 %v4316_v45  ;;  %4218 = vmatmul.f32.gmra.mxu0 %v12011_v36  ;;  %v302_v45 = vld [vmem:[#allocation2 + $0x348] sm:$0xff]  ;;  %v10118_v36 = vsub.f32 %v308_v10, %v10094_v31  ;;  %v11599_v44 = vand.u32 4294901760, %v10104_v41  ;;  %v10131_v10 = vsub.f32 %v306_v6, %v10106_v30  ;;  %v10144_v6 = vsub.f32 %v304_v50, %v10120_v40 }
 0x278   : > { %4319 = vmatmul.f32.vlgmr.msrb.gmra.mxu1 %v12012_v56  ;;  %4450 = vmatpush.msra.mxu0 %v4248_v35  ;;  %v4616_v35 = vand.u32 4294901760, %v4615_v33  ;;  %v10133_v27 = vand.u32 4294901760, %v302_v45  ;;  %v12015_v33 = vand.u32 4294901760, %v9860_v0  ;;  %v12017_v0 = vand.u32 4294901760, %v9881_v8  ;;  %v12018_v8 = vld [vmem:[#allocation30_spill] sm:$0xff] }
 0x279   : > { %4505 = vmatpush.msra.mxu1 %v9757_v19  ;;  %4550 = vmatpush.msra.mxu2 %v10016_v34  ;;  %v4627_v19 = vsub.f32 %v10079_v46, %v11597_v18  ;;  %v10146_v18 = vand.u32 4294901760, %v300_v48 }
 0x27a   : > { %4605 = vmatpush.msra.mxu3 %v4604_v37  ;;  %4454 = vmatpush.msra.mxu0 %v12013_v61  ;;  %v4622_v37 = vand.u32 4294901760, %v4621_v17  ;;  %v11601_v61 = vand.u32 4294901760, %v10118_v36  ;;  %v12016_v17 = vld [vmem:[#allocation34_spill] sm:$0xff]  ;;  %v10157_v50 = vsub.f32 %v302_v45, %v10133_v27 }
 0x27b   : > { %4507 = vmatpush.msra.mxu1 %v9765_v14  ;;  %4552 = vmatpush.msra.mxu2 %v10025_v15  ;;  %v4633_v14 = vsub.f32 %v10092_v7, %v11598_v4  ;;  %v296_v4 = vld [vmem:[#allocation2 + $0x318] sm:$0xff]  ;;  %v10169_v45 = vsub.f32 %v300_v48, %v10146_v18  ;;  %v12020_v48 = vand.u32 4294901760, %v9910_v25  ;;  %v12021_v25 = vand.u32 4294901760, %v9922_v42 }
 0x27c   : > { %4611 = vmatpush.msra.mxu3 %v4610_v3  ;;  %4382 = vmatmul.f32.gmra.mxu2 %v12014_v49  ;;  %v298_v3 = vld [vmem:[#allocation2 + $0x328] sm:$0xff]  ;;  %v4639_v49 = vsub.f32 %v10104_v41, %v11599_v44  ;;  %v10174_v26 = vand.u32 4294901760, %v296_v4 }
 0x27d   : > { %4458 = vmatpush.msra.mxu0 %v12015_v33  ;;  %4509 = vmatpush.msra.mxu1 %v9774_v55  ;;  %v4628_v55 = vand.u32 4294901760, %v4627_v19  ;;  %v4650_v33 = vand.u32 4294901760, %v10131_v10  ;;  %v4634_v19 = vand.u32 4294901760, %v4633_v14  ;;  %v294_v44 = vld [vmem:[#allocation2 + $0x308] sm:$0xff] }
 0x27e   : > { %4554 = vmatpush.msra.mxu2 %v10038_v16  ;;  %4617 = vmatpush.msra.mxu3 %v4616_v35  ;;  %v10161_v35 = vand.u32 4294901760, %v298_v3 }
 0x27f   : > { %4427 = vmatmul.f32.gmra.mxu3 %v12016_v17  ;;  %4462 = vmatpush.msra.mxu0 %v12017_v0  ;;  %v4645_v17 = vsub.f32 %v10118_v36, %v11601_v61  ;;  %v4656_v0 = vand.u32 4294901760, %v10144_v6  ;;  %v4651_v14 = vsub.f32 %v10131_v10, %v4650_v33  ;;  %v4662_v61 = vand.u32 4294901760, %v10157_v50 }
 0x280   : > { %4511 = vmatpush.msra.mxu1 %v9793_v21  ;;  %4556 = vmatpush.msra.mxu2 %v10057_v9  ;;  %v12019_v21 = vand.u32 4294901760, %v9897_v23  ;;  %v10185_v23 = vsub.f32 %v298_v3, %v10161_v35 }
 0x281   : > { %4623 = vmatpush.msra.mxu3 %v4622_v37  ;;  %4323 = vmatmul.f32.gmra.mxu1 %v12018_v8  ;;  %v4640_v37 = vand.u32 4294901760, %v4639_v49  ;;  %v4657_v49 = vsub.f32 %v10144_v6, %v4656_v0  ;;  %v4652_v3 = vand.u32 4294901760, %v4651_v14  ;;  %v12023_v14 = vand.u32 4294901760, %v9943_v29 }
 0x282   : > { %4466 = vmatpush.msra.mxu0 %v12019_v21  ;;  %4513 = vmatpush.msra.mxu1 %v9805_v47  ;;  %v10187_v47 = vand.u32 4294901760, %v294_v44  ;;  %v4668_v21 = vand.u32 4294901760, %v10169_v45  ;;  %v4674_v42 = vand.u32 4294901760, %v10185_v23 }
 0x283   : > { %4558 = vmatpush.msra.mxu2 %v10067_v11  ;;  %4629 = vmatpush.msra.mxu3 %v4628_v55  ;;  %v4646_v55 = vand.u32 4294901760, %v4645_v17  ;;  %v12022_v17 = vand.u32 4294901760, %v9928_v32 }
 0x284   : > { %4470 = vmatpush.msra.mxu0 %v12020_v48  ;;  %4515 = vmatpush.msra.mxu1 %v9818_v63  ;;  %v10198_v63 = vsub.f32 %v296_v4, %v10174_v26  ;;  %v4658_v4 = vand.u32 4294901760, %v4657_v49  ;;  %v4675_v48 = vsub.f32 %v10185_v23, %v4674_v42 }
 0x285   : > { %4560 = vmatpush.msra.mxu2 %v10081_v60  ;;  %4635 = vmatpush.msra.mxu3 %v4634_v19  ;;  %v4663_v19 = vsub.f32 %v10157_v50, %v4662_v61 }
 0x286   : > { %4474 = vmatpush.msra.mxu0 %v12021_v25  ;;  %4517 = vmatpush.msra.mxu1 %v9829_v12  ;;  %v10209_v12 = vsub.f32 %v294_v44, %v10187_v47  ;;  %v12024_v44 = vand.u32 4294901760, %v9967_v53  ;;  %v4676_v49 = vand.u32 4294901760, %v4675_v48  ;;  %v12029_v25 = vld [vmem:[#allocation36_spill] sm:$0xff] }
 0x287   : > { %4562 = vmatpush.msra.mxu2 %v10094_v31  ;;  %4641 = vmatpush.msra.mxu3 %v4640_v37  ;;  %v4669_v37 = vsub.f32 %v10169_v45, %v4668_v21  ;;  %v4664_v32 = vand.u32 4294901760, %v4663_v19 }
 0x288   : > { %4478 = vmatpush.msra.mxu0 %v12022_v17  ;;  %4519 = vmatpush.msra.mxu1 %v9847_v52  ;;  %v4680_v52 = vand.u32 4294901760, %v10198_v63  ;;  %v4686_v29 = vand.u32 4294901760, %v10209_v12  ;;  %v12035_v17 = vld [vmem:[#allocation39_spill] sm:$0xff] }
 0x289   : > { %4564 = vmatpush.msra.mxu2 %v10106_v30  ;;  %4647 = vmatpush.msra.mxu3 %v4646_v55  ;;  %v12025_v55 = vand.u32 4294901760, %v9991_v22 }
 0x28a   : > { %4482 = vmatpush.msra.mxu0 %v12023_v14  ;;  %4521 = vmatpush.msra.mxu1 %v9864_v51  ;;  %v4670_v51 = vand.u32 4294901760, %v4669_v37  ;;  %v4681_v53 = vsub.f32 %v10198_v63, %v4680_v52  ;;  %v4687_v22 = vsub.f32 %v10209_v12, %v4686_v29 }
 0x28b   : > { %4566 = vmatpush.msra.mxu2 %v10120_v40  ;;  %4653 = vmatpush.msra.mxu3 %v4652_v3 }
 0x28c   : > { %4486 = vmatpush.msra.mxu0 %v12024_v44  ;;  %4523 = vmatpush.msra.mxu1 %v9877_v43  ;;  %v12026_v43 = vand.u32 4294901760, %v10009_v59  ;;  %v12027_v59 = vld [vmem:[#allocation41_spill] sm:$0xff] }
 0x28d   : > { %4568 = vmatpush.msra.mxu2 %v10133_v27  ;;  %4659 = vmatpush.msra.mxu3 %v4658_v4  ;;  %v12036_v4 = vand.u32 4294901760, %v10079_v46 }
 0x28e   : > { %4490 = vmatpush.msra.mxu0 %v12025_v55  ;;  %4525 = vmatpush.msra.mxu1 %v9894_v39  ;;  %v4682_v39 = vand.u32 4294901760, %v4681_v53  ;;  %v346_v55 = vld [vmem:[#allocation2 + $0x4a8] sm:$0xff]  ;;  %v12040_v53 = vld [vmem:[#allocation37_spill] sm:$0xff] }
 0x28f   : > { %4570 = vmatpush.msra.mxu2 %v10146_v18  ;;  %4665 = vmatpush.msra.mxu3 %v4664_v32 }
 0x290   : > { %4494 = vmatpush.msra.mxu0 %v12026_v43  ;;  %4527 = vmatpush.msra.mxu1 %v9901_v20  ;;  %v4688_v20 = vand.u32 4294901760, %v4687_v22 }
 0x291   : > { %4572 = vmatpush.msra.mxu2 %v10161_v35  ;;  %4671 = vmatpush.msra.mxu3 %v4670_v51 }
 0x292   : > { %4496 = vmatmul.f32.vlgmr.msra.gmra.mxu0 %v12012_v56  ;;  %4529 = vmatpush.msra.mxu1 %v9916_v2  ;;  %v12028_v2 = vand.u32 4294901760, %v10001_v5 }
 0x293   : > { %4701 = vmatpush.msrb.mxu0 %v10001_v5  ;;  %4574 = vmatpush.msra.mxu2 %v10174_v26 }
 0x294   : > { %4677 = vmatpush.msra.mxu3 %v4676_v49  ;;  %4531 = vmatpush.msra.mxu1 %v9935_v38  ;;  %v12030_v38 = vand.u32 4294901760, %v10023_v54  ;;  %v344_v49 = vld [vmem:[#allocation2 + $0x498] sm:$0xff] }
 0x295   : > { %4704 = vmatpush.msrb.mxu0 %v10023_v54  ;;  %4576 = vmatpush.msra.mxu2 %v10187_v47 }
 0x296   : > { %4683 = vmatpush.msra.mxu3 %v4682_v39  ;;  %4582 = vmatmul.f32.vlgmr.msra.gmra.mxu2 %v12027_v59  ;;  %v342_v39 = vld [vmem:[#allocation2 + $0x488] sm:$0xff]  ;;  %v340_v59 = vld [vmem:[#allocation2 + $0x478] sm:$0xff] }
 0x297   : > { %4707 = vmatpush.msrb.mxu0 %v10036_v62  ;;  %4806 = vmatpush.msrb.mxu2 %v12028_v2  ;;  %v10386_v2 = vand.u32 4294901760, %v342_v39 }
 0x298   : > { %4533 = vmatpush.msra.mxu1 %v9964_v28  ;;  %4689 = vmatpush.msra.mxu3 %v4688_v20  ;;  %v12031_v28 = vand.u32 4294901760, %v10036_v62 }
 0x299   : > { %4691 = vmatmul.f32.vlgmr.msra.gmra.mxu3 %v12029_v25  ;;  %4710 = vmatpush.msrb.mxu0 %v10049_v24 }
 0x29a   : > { %4810 = vmatpush.msrb.mxu2 %v12030_v38  ;;  %4877 = vmatpush.msrb.mxu3 %v9979_v13 }
 0x29b   : > { %4535 = vmatpush.msra.mxu1 %v9984_v57  ;;  %4500 = vmatmul.f32.gmra.mxu0 %v12018_v8  ;;  %v3467_v3 = vpop.f32.mrf.mxu0  ;;  %v12032_v57 = vand.u32 4294901760, %v10049_v24 }
 0x29c   : > { %4537 = vmatmul.f32.vlgmr.msra.gmra.mxu1 %v12012_v56  ;;  %4713 = vmatpush.msrb.mxu0 %v10062_v1  ;;  %v12033_v56 = vld [vmem:[#allocation43_spill] sm:$0xff] }
 0x29d   : > { %4759 = vmatpush.msrb.mxu1 %v9979_v13  ;;  %4814 = vmatpush.msrb.mxu2 %v12031_v28  ;;  %v12034_v13 = vand.u32 4294901760, %v10062_v1  ;;  %v12037_v1 = vand.u32 4294901760, %v10092_v7 }
 0x29e   : > { %4879 = vmatpush.msrb.mxu3 %v10003_v58  ;;  %4716 = vmatpush.msrb.mxu0 %v10079_v46  ;;  %v3576_v5 = vpop.f32.mrf.mxu1  ;;  %v12038_v46 = vand.u32 4294901760, %v10104_v41 }
 0x29f   : > { %4761 = vmatpush.msrb.mxu1 %v10003_v58  ;;  %4818 = vmatpush.msrb.mxu2 %v12032_v57  ;;  %v3577_v54 = vadd.f32 %v3576_v5, %v3467_v3  ;;  %v3634_v19 = vpop.f32.mrf.mxu2  ;;  %v338_v5 = vld [vmem:[#allocation2 + $0x468] sm:$0xff] }
 0x2a0   : > { %4881 = vmatpush.msrb.mxu3 %v10016_v34  ;;  %4590 = vmatmul.f32.gmra.mxu2 %v12033_v56  ;;  %v12041_v56 = vld [vmem:[#allocation40_spill] sm:$0xff] }
 0x2a1   : > { %4719 = vmatpush.msrb.mxu0 %v10092_v7  ;;  %4763 = vmatpush.msrb.mxu1 %v10016_v34  ;;  %v3635_v62 = vadd.f32 %v3634_v19, %v3577_v54  ;;  %v12039_v7 = vand.u32 4294901760, %v10118_v36 }
 0x2a2   : > { %4822 = vmatpush.msrb.mxu2 %v12034_v13  ;;  %4883 = vmatpush.msrb.mxu3 %v10025_v15  ;;  %v3678_v58 = vpop.f32.mrf.mxu3 }
 0x2a3   : > { %4695 = vmatmul.f32.gmra.mxu3 %v12035_v17  ;;  %4722 = vmatpush.msrb.mxu0 %v10104_v41  ;;  %v3679_v24 = vadd.f32 %v3678_v58, %v3635_v62  ;;  %v336_v58 = vld [vmem:[#allocation2 + $0x458] sm:$0xff] }
 0x2a4   : > { %4765 = vmatpush.msrb.mxu1 %v10025_v15  ;;  %4826 = vmatpush.msrb.mxu2 %v12036_v4 }
 0x2a5   : > { %4885 = vmatpush.msrb.mxu3 %v10038_v16  ;;  %4541 = vmatmul.f32.gmra.mxu1 %v12018_v8  ;;  %v3475_v34 = vpop.f32.mrf.mxu0 }
 0x2a6   : > { %4725 = vmatpush.msrb.mxu0 %v10118_v36  ;;  %4767 = vmatpush.msrb.mxu1 %v10038_v16  ;;  %v356_v16 = vld [vmem:[#allocation2 + $0x4f8] sm:$0xff] }
 0x2a7   : > { %4830 = vmatpush.msrb.mxu2 %v12037_v1  ;;  %4887 = vmatpush.msrb.mxu3 %v10057_v9  ;;  %v10305_v32 = vand.u32 4294901760, %v356_v16  ;;  %v352_v36 = vld [vmem:[#allocation2 + $0x4d8] sm:$0xff]  ;;  %v10414_v1 = vsub.f32 %v342_v39, %v10386_v2 }
 0x2a8   : > { %4728 = vmatpush.msrb.mxu0 %v10131_v10  ;;  %4769 = vmatpush.msrb.mxu1 %v10057_v9  ;;  %v3580_v15 = vpop.f32.mrf.mxu1  ;;  %v354_v9 = vld [vmem:[#allocation2 + $0x4e8] sm:$0xff] }
 0x2a9   : > { %4834 = vmatpush.msrb.mxu2 %v12038_v46  ;;  %4889 = vmatpush.msrb.mxu3 %v10067_v11  ;;  %v3581_v8 = vadd.f32 %v3580_v15, %v3475_v34  ;;  %v3639_v37 = vpop.f32.mrf.mxu2  ;;  %v10411_v34 = vand.u32 4294901760, %v338_v5 }
 0x2aa   : > { %4731 = vmatpush.msrb.mxu0 %v10144_v6  ;;  %4771 = vmatpush.msrb.mxu1 %v10067_v11  ;;  %v10324_v6 = vsub.f32 %v356_v16, %v10305_v32 }
 0x2ab   : > { %4838 = vmatpush.msrb.mxu2 %v12039_v7  ;;  %4891 = vmatpush.msrb.mxu3 %v10081_v60  ;;  %v3640_v14 = vadd.f32 %v3639_v37, %v3581_v8  ;;  %v10422_v8 = vand.u32 4294901760, %v336_v58  ;;  %v332_v7 = vld [vmem:[#allocation2 + $0x438] sm:$0xff] }
 0x2ac   : > { %4734 = vmatpush.msrb.mxu0 %v10157_v50  ;;  %4773 = vmatpush.msrb.mxu1 %v10081_v60  ;;  %v3684_v41 = vpop.f32.mrf.mxu3  ;;  %v10314_v60 = vand.u32 4294901760, %v354_v9 }
 0x2ad   : > { %4842 = vmatpush.msrb.mxu2 %v4650_v33  ;;  %4893 = vmatpush.msrb.mxu3 %v10094_v31  ;;  %v10307_v11 = vadd.f32 %v3684_v41, %v3640_v14 }
 0x2ae   : > { %4737 = vmatpush.msrb.mxu0 %v10169_v45  ;;  %4775 = vmatpush.msrb.mxu1 %v10094_v31  ;;  %v10321_v31 = vand.u32 4294901760, %v352_v36 }
 0x2af   : > { %4846 = vmatpush.msrb.mxu2 %v4656_v0  ;;  %4895 = vmatpush.msrb.mxu3 %v10106_v30  ;;  %v3753_v10 = vpop.f32.mrf.mxu0  ;;  %v350_v0 = vld [vmem:[#allocation2 + $0x4c8] sm:$0xff] }
 0x2b0   : > { %4740 = vmatpush.msrb.mxu0 %v10185_v23  ;;  %4777 = vmatpush.msrb.mxu1 %v10106_v30  ;;  %v3754_v33 = vadd.f32 %v3753_v10, %v3679_v24  ;;  %v10332_v30 = vsub.f32 %v354_v9, %v10314_v60  ;;  %v10336_v51 = vand.u32 4294901760, %v350_v0  ;;  %v10343_v45 = vsub.f32 %v352_v36, %v10321_v31  ;;  %v12042_v24 = vld [vmem:[#allocation38_spill] sm:$0xff] }
 0x2b1   : > { %4850 = vmatpush.msrb.mxu2 %v4662_v61  ;;  %4897 = vmatpush.msrb.mxu3 %v10120_v40  ;;  %v348_v61 = vld [vmem:[#allocation2 + $0x4b8] sm:$0xff]  ;;  %v10352_v23 = vand.u32 4294901760, %v346_v55  ;;  %v10438_v36 = vsub.f32 %v338_v5, %v10411_v34  ;;  %v10441_v10 = vand.u32 4294901760, %v332_v7 }
 0x2b2   : > { %4743 = vmatpush.msrb.mxu0 %v10198_v63  ;;  %4779 = vmatpush.msrb.mxu1 %v10120_v40  ;;  %v3794_v44 = vpop.f32.mrf.mxu1  ;;  %v4968_v40 = vand.u32 4294901760, %v10324_v6  ;;  %v10347_v43 = vand.u32 4294901760, %v348_v61 }
 0x2b3   : > { %4854 = vmatpush.msrb.mxu2 %v4668_v21  ;;  %4899 = vmatpush.msrb.mxu3 %v10133_v27  ;;  %v3795_v50 = vadd.f32 %v3794_v44, %v3754_v33  ;;  %v3839_v48 = vpop.f32.mrf.mxu2  ;;  %v330_v33 = vld [vmem:[#allocation2 + $0x428] sm:$0xff] }
 0x2b4   : > { %4746 = vmatpush.msrb.mxu0 %v10209_v12  ;;  %4781 = vmatpush.msrb.mxu1 %v10133_v27  ;;  %v4969_v63 = vsub.f32 %v10324_v6, %v4968_v40  ;;  %v10374_v20 = vsub.f32 %v348_v61, %v10347_v43  ;;  %v10461_v39 = vand.u32 4294901760, %v330_v33 }
 0x2b5   : > { %4858 = vmatpush.msrb.mxu2 %v4674_v42  ;;  %4901 = vmatpush.msrb.mxu3 %v10146_v18  ;;  %v3840_v21 = vadd.f32 %v3839_v48, %v3795_v50  ;;  %v4974_v42 = vand.u32 4294901760, %v10332_v30  ;;  %v10450_v50 = vsub.f32 %v336_v58, %v10422_v8 }
 0x2b6   : > { %4749 = vmatmul.f32.vlgmr.msrb.gmra.mxu0 %v12040_v53  ;;  %4783 = vmatpush.msrb.mxu1 %v10146_v18  ;;  %v3948_v27 = vpop.f32.mrf.mxu3  ;;  %v10360_v18 = vsub.f32 %v350_v0, %v10336_v51  ;;  %v4970_v3 = vand.u32 4294901760, %v4969_v63  ;;  %v11614_v54 = vand.u32 4294901760, %v10374_v20 }
 0x2b7   : > { %4918 = vmatpush.msra.mxu0 %v10305_v32  ;;  %4862 = vmatpush.msrb.mxu2 %v4680_v52  ;;  %v10355_v22 = vadd.f32 %v3948_v27, %v3840_v21  ;;  %v4980_v52 = vand.u32 4294901760, %v10343_v45  ;;  %v4975_v12 = vsub.f32 %v10332_v30, %v4974_v42 }
 0x2b8   : > { %4903 = vmatpush.msrb.mxu3 %v10161_v35  ;;  %4785 = vmatpush.msrb.mxu1 %v10161_v35  ;;  %v10371_v35 = vand.u32 4294901760, %v344_v49  ;;  %v4986_v38 = vand.u32 4294901760, %v10360_v18  ;;  %v4993_v46 = vsub.f32 %v10374_v20, %v11614_v54 }
 0x2b9   : > { %4920 = vmatpush.msra.mxu0 %v10314_v60  ;;  %4866 = vmatpush.msrb.mxu2 %v4686_v29  ;;  %v10382_v29 = vsub.f32 %v346_v55, %v10352_v23  ;;  %v4981_v28 = vsub.f32 %v10343_v45, %v4980_v52  ;;  %v4976_v62 = vand.u32 4294901760, %v4975_v12 }
 0x2ba   : > { %4905 = vmatpush.msrb.mxu3 %v10174_v26  ;;  %4868 = vmatmul.f32.vlgmr.msrb.gmra.mxu2 %v12029_v25  ;;  %v10400_v19 = vsub.f32 %v344_v49, %v10371_v35  ;;  %v4987_v4 = vsub.f32 %v10360_v18, %v4986_v38  ;;  %v4994_v0 = vand.u32 4294901760, %v4993_v46  ;;  %v326_v46 = vld [vmem:[#allocation2 + $0x408] sm:$0xff] }
 0x2bb   : > { %4922 = vmatpush.msra.mxu0 %v10321_v31  ;;  %5073 = vmatpush.msra.mxu2 %v10324_v6  ;;  %v11612_v13 = vand.u32 4294901760, %v10382_v29  ;;  %v4982_v15 = vand.u32 4294901760, %v4981_v28  ;;  %v10468_v28 = vsub.f32 %v332_v7, %v10441_v10  ;;  %v10485_v7 = vsub.f32 %v330_v33, %v10461_v39  ;;  %v374_v6 = vld [vmem:[#allocation2 + $0x588] sm:$0xff] }
 0x2bc   : > { %4787 = vmatpush.msrb.mxu1 %v10174_v26  ;;  %4907 = vmatpush.msrb.mxu3 %v10187_v47  ;;  %v10396_v26 = vand.u32 4294901760, %v340_v59  ;;  %v11611_v37 = vand.u32 4294901760, %v10400_v19  ;;  %v4988_v41 = vand.u32 4294901760, %v4987_v4  ;;  %v10498_v33 = vand.u32 4294901760, %v326_v46 }
 0x2bd   : > { %4909 = vmatmul.f32.vlgmr.msrb.gmra.mxu3 %v12029_v25  ;;  %4924 = vmatpush.msra.mxu0 %v10336_v51  ;;  %v3757_v57 = vpop.f32.mrf.mxu0  ;;  %v4999_v14 = vsub.f32 %v10382_v29, %v11612_v13 }
 0x2be   : > { %5076 = vmatpush.msra.mxu2 %v10332_v30  ;;  %5131 = vmatpush.msra.mxu3 %v10305_v32  ;;  %v3758_v25 = vadd.f32 %v3757_v57, %v10307_v11  ;;  %v10426_v16 = vsub.f32 %v340_v59, %v10396_v26  ;;  %v11609_v11 = vand.u32 4294901760, %v10414_v1  ;;  %v5005_v44 = vsub.f32 %v10400_v19, %v11611_v37  ;;  %v12043_v59 = vld [vmem:[#allocation42_spill] sm:$0xff] }
 0x2bf   : > { %4789 = vmatpush.msrb.mxu1 %v10187_v47  ;;  %4754 = vmatmul.f32.gmra.mxu0 %v12041_v56  ;;  %v334_v47 = vld [vmem:[#allocation2 + $0x448] sm:$0xff]  ;;  %v5000_v55 = vand.u32 4294901760, %v4999_v14  ;;  %v11604_v56 = vand.u32 4294901760, %v10450_v50  ;;  %v11602_v14 = vand.u32 4294901760, %v10468_v28 }
 0x2c0   : > { %4793 = vmatmul.f32.vlgmr.msrb.gmra.mxu1 %v12042_v24  ;;  %4926 = vmatpush.msra.mxu0 %v10347_v43  ;;  %v10432_v9 = vand.u32 4294901760, %v334_v47  ;;  %v11607_v61 = vand.u32 4294901760, %v10426_v16  ;;  %v5011_v63 = vsub.f32 %v10414_v1, %v11609_v11  ;;  %v5006_v57 = vand.u32 4294901760, %v5005_v44 }
 0x2c1   : > { %4971 = vmatpush.msra.mxu1 %v4970_v3  ;;  %5079 = vmatpush.msra.mxu2 %v10343_v45  ;;  %v328_v3 = vld [vmem:[#allocation2 + $0x418] sm:$0xff]  ;;  %v5029_v44 = vsub.f32 %v10450_v50, %v11604_v56 }
 0x2c2   : > { %5133 = vmatpush.msra.mxu3 %v10314_v60  ;;  %4928 = vmatpush.msra.mxu0 %v10352_v23  ;;  %v10455_v21 = vsub.f32 %v334_v47, %v10432_v9  ;;  %v5012_v4 = vand.u32 4294901760, %v5011_v63  ;;  %v5041_v63 = vsub.f32 %v10468_v28, %v11602_v14  ;;  %v10522_v14 = vsub.f32 %v326_v46, %v10498_v33  ;;  %v380_v56 = vld [vmem:[#allocation2 + $0x5b8] sm:$0xff] }
 0x2c3   : > { %4977 = vmatpush.msra.mxu1 %v4976_v62  ;;  %5082 = vmatpush.msra.mxu2 %v10360_v18 }
 0x2c4   : > { %5135 = vmatpush.msra.mxu3 %v10321_v31  ;;  %4872 = vmatmul.f32.gmra.mxu2 %v12035_v17  ;;  %v11603_v58 = vand.u32 4294901760, %v10455_v21  ;;  %v5042_v46 = vand.u32 4294901760, %v5041_v63  ;;  %v11613_v63 = vand.u32 4294901760, %v10522_v14 }
 0x2c5   : > { %4930 = vmatpush.msra.mxu0 %v10371_v35  ;;  %4983 = vmatpush.msra.mxu1 %v4982_v15  ;;  %v10482_v15 = vand.u32 4294901760, %v328_v3 }
 0x2c6   : > { %5085 = vmatpush.msra.mxu2 %v10374_v20  ;;  %5137 = vmatpush.msra.mxu3 %v10336_v51  ;;  %v3798_v48 = vpop.f32.mrf.mxu1 }
 0x2c7   : > { %4913 = vmatmul.f32.gmra.mxu3 %v12035_v17  ;;  %4932 = vmatpush.msra.mxu0 %v10386_v2  ;;  %v3799_v53 = vadd.f32 %v3798_v48, %v3758_v25  ;;  %v4006_v27 = vpop.f32.mrf.mxu0  ;;  %v3847_v49 = vpop.f32.mrf.mxu2  ;;  %v11605_v17 = vand.u32 4294901760, %v10438_v36  ;;  %v5017_v25 = vsub.f32 %v10426_v16, %v11607_v61  ;;  %v5035_v48 = vsub.f32 %v10455_v21, %v11603_v58 }
 0x2c8   : > { %4989 = vmatpush.msra.mxu1 %v4988_v41  ;;  %5088 = vmatpush.msra.mxu2 %v10382_v29  ;;  %v4007_v12 = vadd.f32 %v4006_v27, %v10355_v22  ;;  %v388_v22 = vld [vmem:[#allocation2 + $0x5f8] sm:$0xff]  ;;  %v10505_v27 = vsub.f32 %v328_v3, %v10482_v15  ;;  %v5030_v3 = vand.u32 4294901760, %v5029_v44 }
 0x2c9   : > { %5139 = vmatpush.msra.mxu3 %v10347_v43  ;;  %4799 = vmatmul.f32.gmra.mxu1 %v12043_v59  ;;  %v3848_v5 = vadd.f32 %v3847_v49, %v3799_v53  ;;  %v5023_v47 = vsub.f32 %v10438_v36, %v11605_v17  ;;  %v10490_v41 = vand.u32 4294901760, %v388_v22  ;;  %v11606_v49 = vand.u32 4294901760, %v10485_v7 }
 0x2ca   : > { %4934 = vmatpush.msra.mxu0 %v10396_v26  ;;  %4995 = vmatpush.msra.mxu1 %v4994_v0  ;;  %v3952_v62 = vpop.f32.mrf.mxu3  ;;  %v5018_v0 = vand.u32 4294901760, %v5017_v25  ;;  %v11608_v44 = vand.u32 4294901760, %v10505_v27 }
 0x2cb   : > { %5091 = vmatpush.msra.mxu2 %v10400_v19  ;;  %5141 = vmatpush.msra.mxu3 %v10352_v23  ;;  %v3953_v24 = vadd.f32 %v3952_v62, %v3848_v5  ;;  %v5024_v53 = vand.u32 4294901760, %v5023_v47  ;;  %v10514_v59 = vsub.f32 %v388_v22, %v10490_v41  ;;  %v384_v5 = vld [vmem:[#allocation2 + $0x5d8] sm:$0xff]  ;;  %v5036_v47 = vand.u32 4294901760, %v5035_v48  ;;  %v382_v22 = vld [vmem:[#allocation2 + $0x5c8] sm:$0xff] }
 0x2cc   : > { %4936 = vmatpush.msra.mxu0 %v10411_v34  ;;  %5001 = vmatpush.msra.mxu1 %v5000_v55  ;;  %v386_v55 = vld [vmem:[#allocation2 + $0x5e8] sm:$0xff]  ;;  %v10529_v58 = vand.u32 4294901760, %v384_v5 }
 0x2cd   : > { %5094 = vmatpush.msra.mxu2 %v10414_v1  ;;  %5143 = vmatpush.msra.mxu3 %v10371_v35  ;;  %v10517_v62 = vand.u32 4294901760, %v386_v55  ;;  %v11610_v48 = vand.u32 4294901760, %v10514_v59 }
 0x2ce   : > { %4938 = vmatpush.msra.mxu0 %v10422_v8  ;;  %5007 = vmatpush.msra.mxu1 %v5006_v57 }
 0x2cf   : > { %5097 = vmatpush.msra.mxu2 %v10426_v16  ;;  %5145 = vmatpush.msra.mxu3 %v10386_v2 }
 0x2d0   : > { %4940 = vmatpush.msra.mxu0 %v10432_v9  ;;  %5013 = vmatpush.msra.mxu1 %v5012_v4 }
 0x2d1   : > { %5100 = vmatpush.msra.mxu2 %v10438_v36  ;;  %5147 = vmatpush.msra.mxu3 %v10396_v26  ;;  %v4050_v57 = vpop.f32.mrf.mxu1  ;;  %v4125_v25 = vpop.f32.mrf.mxu2 }
 0x2d2   : > { %4942 = vmatpush.msra.mxu0 %v10441_v10  ;;  %5019 = vmatpush.msra.mxu1 %v5018_v0  ;;  %v4051_v4 = vadd.f32 %v4050_v57, %v4007_v12  ;;  %v5047_v0 = vsub.f32 %v10485_v7, %v11606_v49  ;;  %v10538_v49 = vand.u32 4294901760, %v382_v22 }
 0x2d3   : > { %5103 = vmatpush.msra.mxu2 %v10450_v50  ;;  %5149 = vmatpush.msra.mxu3 %v10411_v34 }
 0x2d4   : > { %4944 = vmatpush.msra.mxu0 %v10461_v39  ;;  %5025 = vmatpush.msra.mxu1 %v5024_v53  ;;  %v4126_v12 = vadd.f32 %v4125_v25, %v4051_v4  ;;  %v4166_v57 = vpop.f32.mrf.mxu3  ;;  %v10536_v53 = vsub.f32 %v386_v55, %v10517_v62  ;;  %12044 = vst [vmem:[#allocation67_spill] sm:$0xff] %v10538_v49  ;;  %v5048_v4 = vand.u32 4294901760, %v5047_v0 }
 0x2d5   : > { %5106 = vmatpush.msra.mxu2 %v10455_v21  ;;  %5151 = vmatpush.msra.mxu3 %v10422_v8  ;;  %v4011_v17 = vpop.f32.mrf.mxu0  ;;  %v5053_v55 = vsub.f32 %v10505_v27, %v11608_v44 }
 0x2d6   : > { %4946 = vmatpush.msra.mxu0 %v10482_v15  ;;  %5031 = vmatpush.msra.mxu1 %v5030_v3  ;;  %v4012_v61 = vadd.f32 %v4011_v17, %v3953_v24  ;;  %v10540_v25 = vadd.f32 %v4166_v57, %v4126_v12  ;;  %v10550_v3 = vsub.f32 %v384_v5, %v10529_v58  ;;  %v10552_v17 = vand.u32 4294901760, %v380_v56  ;;  %v378_v24 = vld [vmem:[#allocation2 + $0x5a8] sm:$0xff]  ;;  %v12045_v12 = vld [vmem:[#allocation49_spill] sm:$0xff]  ;;  %v376_v5 = vld [vmem:[#allocation2 + $0x598] sm:$0xff] }
 0x2d7   : > { %5109 = vmatpush.msra.mxu2 %v10468_v28  ;;  %5153 = vmatpush.msra.mxu3 %v10432_v9  ;;  %v11617_v0 = vand.u32 4294901760, %v10536_v53  ;;  %v10562_v57 = vsub.f32 %v382_v22, %v10538_v49  ;;  %v5054_v22 = vand.u32 4294901760, %v5053_v55  ;;  %v372_v55 = vld [vmem:[#allocation2 + $0x578] sm:$0xff] }
 0x2d8   : > { %4948 = vmatpush.msra.mxu0 %v10498_v33  ;;  %5037 = vmatpush.msra.mxu1 %v5036_v47  ;;  %v5341_v47 = vsub.f32 %v10514_v59, %v11610_v48  ;;  %v11615_v37 = vand.u32 4294901760, %v10550_v3  ;;  %v10575_v13 = vsub.f32 %v380_v56, %v10552_v17 }
 0x2d9   : > { %5112 = vmatpush.msra.mxu2 %v10485_v7  ;;  %5155 = vmatpush.msra.mxu3 %v10441_v10  ;;  %v11616_v56 = vand.u32 4294901760, %v10562_v57 }
 0x2da   : > { %4954 = vmatmul.f32.vlgmr.msra.gmra.mxu0 %v12045_v12  ;;  %5043 = vmatpush.msra.mxu1 %v5042_v46  ;;  %v4056_v44 = vpop.f32.mrf.mxu1  ;;  %v5059_v46 = vsub.f32 %v10522_v14, %v11613_v63  ;;  %v10570_v12 = vand.u32 4294901760, %v378_v24  ;;  %v11618_v45 = vand.u32 4294901760, %v10575_v13 }
 0x2db   : > { %5178 = vmatpush.msrb.mxu0 %v4968_v40  ;;  %5115 = vmatpush.msra.mxu2 %v10505_v27  ;;  %v4057_v11 = vadd.f32 %v4056_v44, %v4012_v61  ;;  %v4129_v48 = vpop.f32.mrf.mxu2  ;;  %v10580_v40 = vand.u32 4294901760, %v376_v5  ;;  %v12047_v61 = vld [vmem:[#allocation44_spill] sm:$0xff]  ;;  %v5342_v44 = vand.u32 4294901760, %v5341_v47  ;;  %v5353_v47 = vsub.f32 %v10550_v3, %v11615_v37  ;;  %v12049_v37 = vld [vmem:[#allocation51_spill] sm:$0xff] }
 0x2dc   : > { %12046 = vst [vmem:[#allocation70_spill] sm:$0xff] %v10570_v12  ;;  %5157 = vmatpush.msra.mxu3 %v10461_v39  ;;  %5049 = vmatpush.msra.mxu1 %v5048_v4  ;;  %v5347_v4 = vsub.f32 %v10536_v53, %v11617_v0  ;;  %v5060_v30 = vand.u32 4294901760, %v5059_v46  ;;  %v5359_v46 = vsub.f32 %v10562_v57, %v11616_v56 }
 0x2dd   : > { %5182 = vmatpush.msrb.mxu0 %v4974_v42  ;;  %5118 = vmatpush.msra.mxu2 %v10522_v14  ;;  %v4130_v63 = vadd.f32 %v4129_v48, %v4057_v11  ;;  %v10592_v42 = vsub.f32 %v378_v24, %v10570_v12  ;;  %v10594_v11 = vand.u32 4294901760, %v374_v6  ;;  %v10607_v24 = vsub.f32 %v376_v5, %v10580_v40 }
 0x2de   : > { %5159 = vmatpush.msra.mxu3 %v10482_v15  ;;  %5121 = vmatmul.f32.vlgmr.msra.gmra.mxu2 %v12047_v61  ;;  %v4170_v54 = vpop.f32.mrf.mxu3  ;;  %v12048_v61 = vld [vmem:[#allocation45_spill] sm:$0xff]  ;;  %v5365_v56 = vsub.f32 %v10575_v13, %v11618_v45 }
 0x2df   : > { %5186 = vmatpush.msrb.mxu0 %v4980_v52  ;;  %5290 = vmatpush.msrb.mxu2 %v10490_v41  ;;  %v10596_v48 = vadd.f32 %v4170_v54, %v4130_v63  ;;  %v370_v52 = vld [vmem:[#allocation2 + $0x568] sm:$0xff]  ;;  %v10609_v54 = vand.u32 4294901760, %v372_v55  ;;  %v5348_v63 = vand.u32 4294901760, %v5347_v4  ;;  %v11619_v18 = vand.u32 4294901760, %v10592_v42 }
 0x2e0   : > { %5055 = vmatpush.msra.mxu1 %v5054_v22  ;;  %5161 = vmatpush.msra.mxu3 %v10498_v33  ;;  %v368_v22 = vld [vmem:[#allocation2 + $0x558] sm:$0xff]  ;;  %v10620_v5 = vand.u32 4294901760, %v370_v52  ;;  %v5354_v4 = vand.u32 4294901760, %v5353_v47  ;;  %v5360_v47 = vand.u32 4294901760, %v5359_v46  ;;  %v12054_v46 = vand.u32 4294901760, %v10400_v19 }
 0x2e1   : > { %5165 = vmatmul.f32.vlgmr.msra.gmra.mxu3 %v12048_v61  ;;  %5190 = vmatpush.msrb.mxu0 %v4986_v38  ;;  %v10618_v38 = vsub.f32 %v374_v6, %v10594_v11  ;;  %v12050_v61 = vld [vmem:[#allocation32_spill] sm:$0xff]  ;;  %v10632_v6 = vsub.f32 %v372_v55, %v10609_v54  ;;  %v10634_v0 = vand.u32 4294901760, %v368_v22  ;;  %v12057_v19 = vand.u32 4294901760, %v10414_v1 }
 0x2e2   : > { %5292 = vmatpush.msrb.mxu2 %v10517_v62  ;;  %5343 = vmatpush.msrb.mxu3 %v5342_v44  ;;  %v12051_v44 = vand.u32 4294901760, %v10374_v20  ;;  %v12052_v20 = vand.u32 4294901760, %v10382_v29  ;;  %v10645_v55 = vsub.f32 %v370_v52, %v10620_v5  ;;  %v12053_v29 = vld [vmem:[#allocation47_spill] sm:$0xff] }
 0x2e3   : > { %5061 = vmatpush.msra.mxu1 %v5060_v30  ;;  %4962 = vmatmul.f32.gmra.mxu0 %v12049_v37  ;;  %v366_v30 = vld [vmem:[#allocation2 + $0x548] sm:$0xff]  ;;  %v10658_v52 = vsub.f32 %v368_v22, %v10634_v0 }
 0x2e4   : > { %5063 = vmatmul.f32.vlgmr.msra.gmra.mxu1 %v12050_v61  ;;  %5194 = vmatpush.msrb.mxu0 %v12051_v44  ;;  %v364_v44 = vld [vmem:[#allocation2 + $0x538] sm:$0xff]  ;;  %v10647_v37 = vand.u32 4294901760, %v366_v30 }
 0x2e5   : > { %5249 = vmatpush.msrb.mxu1 %v10305_v32  ;;  %5294 = vmatpush.msrb.mxu2 %v10529_v58  ;;  %v5371_v32 = vsub.f32 %v10592_v42, %v11619_v18  ;;  %v10660_v45 = vand.u32 4294901760, %v364_v44 }
 0x2e6   : > { %5349 = vmatpush.msrb.mxu3 %v5348_v63  ;;  %5198 = vmatpush.msrb.mxu0 %v12052_v20  ;;  %v5366_v63 = vand.u32 4294901760, %v5365_v56  ;;  %v12056_v56 = vld [vmem:[#allocation50_spill] sm:$0xff]  ;;  %v10671_v22 = vsub.f32 %v366_v30, %v10647_v37  ;;  %v5400_v30 = vand.u32 4294901760, %v10658_v52 }
 0x2e7   : > { %5251 = vmatpush.msrb.mxu1 %v10314_v60  ;;  %5296 = vmatpush.msrb.mxu2 %v10538_v49  ;;  %v12055_v60 = vand.u32 4294901760, %v10607_v24  ;;  %v360_v49 = vld [vmem:[#allocation2 + $0x518] sm:$0xff] }
 0x2e8   : > { %5355 = vmatpush.msrb.mxu3 %v5354_v4  ;;  %5126 = vmatmul.f32.gmra.mxu2 %v12053_v29  ;;  %v362_v4 = vld [vmem:[#allocation2 + $0x528] sm:$0xff]  ;;  %v12058_v29 = vand.u32 4294901760, %v10618_v38 }
 0x2e9   : > { %5202 = vmatpush.msrb.mxu0 %v12054_v46  ;;  %5253 = vmatpush.msrb.mxu1 %v10321_v31  ;;  %v5377_v20 = vsub.f32 %v10607_v24, %v12055_v60  ;;  %v5372_v31 = vand.u32 4294901760, %v5371_v32  ;;  %v12059_v32 = vld [vmem:[#allocation46_spill] sm:$0xff]  ;;  %v10684_v60 = vsub.f32 %v364_v44, %v10660_v45  ;;  %v12063_v44 = vand.u32 4294901760, %v10438_v36 }
 0x2ea   : > { %5298 = vmatpush.msrb.mxu2 %v10552_v17  ;;  %5361 = vmatpush.msrb.mxu3 %v5360_v47  ;;  %v5383_v46 = vsub.f32 %v10618_v38, %v12058_v29  ;;  %v10675_v47 = vand.u32 4294901760, %v362_v4  ;;  %v12064_v36 = vand.u32 4294901760, %v10450_v50 }
 0x2eb   : > { %5171 = vmatmul.f32.gmra.mxu3 %v12056_v56  ;;  %5206 = vmatpush.msrb.mxu0 %v12057_v19  ;;  %v4211_v18 = vpop.f32.mrf.mxu0  ;;  %v5378_v56 = vand.u32 4294901760, %v5377_v20  ;;  %v12060_v19 = vand.u32 4294901760, %v10632_v6 }
 0x2ec   : > { %5255 = vmatpush.msrb.mxu1 %v10336_v51  ;;  %5300 = vmatpush.msrb.mxu2 %v10570_v12  ;;  %v4212_v1 = vadd.f32 %v4211_v18, %v10540_v25  ;;  %v358_v51 = vld [vmem:[#allocation2 + $0x508] sm:$0xff]  ;;  %v12061_v12 = vand.u32 4294901760, %v10426_v16  ;;  %v10689_v25 = vand.u32 4294901760, %v360_v49  ;;  %v5384_v18 = vand.u32 4294901760, %v5383_v46 }
 0x2ed   : > { %5367 = vmatpush.msrb.mxu3 %v5366_v63  ;;  %5067 = vmatmul.f32.gmra.mxu1 %v12059_v32  ;;  %v5389_v29 = vsub.f32 %v10632_v6, %v12060_v19  ;;  %v12062_v63 = vand.u32 4294901760, %v10645_v55  ;;  %v5406_v19 = vand.u32 4294901760, %v10671_v22  ;;  %v10700_v16 = vsub.f32 %v362_v4, %v10675_v47 }
 0x2ee   : > { %5210 = vmatpush.msrb.mxu0 %v12061_v12  ;;  %5257 = vmatpush.msrb.mxu1 %v10347_v43  ;;  %v10702_v43 = vand.u32 4294901760, %v358_v51  ;;  %v5412_v46 = vand.u32 4294901760, %v10684_v60 }
 0x2ef   : > { %5302 = vmatpush.msrb.mxu2 %v10580_v40  ;;  %5373 = vmatpush.msrb.mxu3 %v5372_v31  ;;  %v5395_v20 = vsub.f32 %v10645_v55, %v12062_v63  ;;  %v5390_v12 = vand.u32 4294901760, %v5389_v29  ;;  %v5401_v31 = vsub.f32 %v10658_v52, %v5400_v30  ;;  %v12065_v29 = vand.u32 4294901760, %v10455_v21 }
 0x2f0   : > { %5214 = vmatpush.msrb.mxu0 %v12063_v44  ;;  %5259 = vmatpush.msrb.mxu1 %v10352_v23  ;;  %v10713_v23 = vsub.f32 %v360_v49, %v10689_v25  ;;  %v5418_v50 = vand.u32 4294901760, %v10700_v16  ;;  %v5413_v63 = vsub.f32 %v10684_v60, %v5412_v46 }
 0x2f1   : > { %5304 = vmatpush.msrb.mxu2 %v10594_v11  ;;  %5379 = vmatpush.msrb.mxu3 %v5378_v56  ;;  %v5396_v4 = vand.u32 4294901760, %v5395_v20  ;;  %v5407_v56 = vsub.f32 %v10671_v22, %v5406_v19 }
 0x2f2   : > { %5218 = vmatpush.msrb.mxu0 %v12064_v36  ;;  %5261 = vmatpush.msrb.mxu1 %v10371_v35  ;;  %v10724_v35 = vsub.f32 %v358_v51, %v10702_v43  ;;  %v5424_v51 = vand.u32 4294901760, %v10713_v23 }
 0x2f3   : > { %5306 = vmatpush.msrb.mxu2 %v10609_v54  ;;  %5385 = vmatpush.msrb.mxu3 %v5384_v18  ;;  %v5402_v18 = vand.u32 4294901760, %v5401_v31  ;;  %v12067_v31 = vand.u32 4294901760, %v10485_v7 }
 0x2f4   : > { %5222 = vmatpush.msrb.mxu0 %v12065_v29  ;;  %5263 = vmatpush.msrb.mxu1 %v10386_v2  ;;  %v4219_v49 = vpop.f32.mrf.mxu0  ;;  %v12066_v2 = vand.u32 4294901760, %v10468_v28  ;;  %v5430_v28 = vand.u32 4294901760, %v10724_v35 }
 0x2f5   : > { %5308 = vmatpush.msrb.mxu2 %v10620_v5  ;;  %5391 = vmatpush.msrb.mxu3 %v5390_v12  ;;  %v4220_v20 = vadd.f32 %v4219_v49, %v10596_v48  ;;  %v4320_v21 = vpop.f32.mrf.mxu1  ;;  %v4378_v44 = vpop.f32.mrf.mxu2  ;;  %v5408_v12 = vand.u32 4294901760, %v5407_v56  ;;  %v5419_v48 = vsub.f32 %v10700_v16, %v5418_v50  ;;  %v12069_v56 = vand.u32 4294901760, %v10522_v14 }
 0x2f6   : > { %5226 = vmatpush.msrb.mxu0 %v12066_v2  ;;  %5265 = vmatpush.msrb.mxu1 %v10396_v26  ;;  %v4321_v36 = vadd.f32 %v4320_v21, %v4212_v1  ;;  %v5414_v1 = vand.u32 4294901760, %v5413_v63  ;;  %v12071_v2 = vand.u32 4294901760, %v10514_v59 }
 0x2f7   : > { %5310 = vmatpush.msrb.mxu2 %v10634_v0  ;;  %5397 = vmatpush.msrb.mxu3 %v5396_v4  ;;  %v12068_v4 = vand.u32 4294901760, %v10505_v27  ;;  %v5420_v49 = vand.u32 4294901760, %v5419_v48  ;;  %v5431_v27 = vsub.f32 %v10724_v35, %v5430_v28  ;;  %v404_v48 = vld [vmem:[#allocation2 + $0x678] sm:$0xff] }
 0x2f8   : > { %5230 = vmatpush.msrb.mxu0 %v12067_v31  ;;  %5267 = vmatpush.msrb.mxu1 %v10411_v34  ;;  %v4379_v29 = vadd.f32 %v4378_v44, %v4321_v36  ;;  %v4422_v26 = vpop.f32.mrf.mxu3  ;;  %v5425_v34 = vsub.f32 %v10713_v23, %v5424_v51  ;;  %v12070_v44 = vld [vmem:[#allocation57_spill] sm:$0xff]  ;;  %v12074_v36 = vand.u32 4294901760, %v10536_v53 }
 0x2f9   : > { %5312 = vmatpush.msrb.mxu2 %v10647_v37  ;;  %5403 = vmatpush.msrb.mxu3 %v5402_v18  ;;  %v5432_v63 = vand.u32 4294901760, %v5431_v27 }
 0x2fa   : > { %5234 = vmatpush.msrb.mxu0 %v12068_v4  ;;  %5269 = vmatpush.msrb.mxu1 %v10422_v8  ;;  %v10750_v7 = vadd.f32 %v4422_v26, %v4379_v29  ;;  %v5426_v8 = vand.u32 4294901760, %v5425_v34  ;;  %v402_v34 = vld [vmem:[#allocation2 + $0x668] sm:$0xff] }
 0x2fb   : > { %5314 = vmatpush.msrb.mxu2 %v10660_v45  ;;  %5409 = vmatpush.msrb.mxu3 %v5408_v12  ;;  %v406_v12 = vld [vmem:[#allocation2 + $0x688] sm:$0xff] }
 0x2fc   : > { %5238 = vmatpush.msrb.mxu0 %v12069_v56  ;;  %5271 = vmatpush.msrb.mxu1 %v10432_v9  ;;  %v10897_v31 = vand.u32 4294901760, %v406_v12 }
 0x2fd   : > { %5316 = vmatpush.msrb.mxu2 %v10675_v47  ;;  %5415 = vmatpush.msrb.mxu3 %v5414_v1 }
 0x2fe   : > { %5240 = vmatmul.f32.vlgmr.msrb.gmra.mxu0 %v12050_v61  ;;  %5273 = vmatpush.msrb.mxu1 %v10441_v10  ;;  %v4324_v18 = vpop.f32.mrf.mxu1 }
 0x2ff   : > { %5445 = vmatpush.msra.mxu0 %v10514_v59  ;;  %5318 = vmatpush.msrb.mxu2 %v10689_v25  ;;  %v4325_v14 = vadd.f32 %v4324_v18, %v4220_v20  ;;  %v4383_v9 = vpop.f32.mrf.mxu2  ;;  %v12076_v59 = vand.u32 4294901760, %v10562_v57  ;;  %v400_v18 = vld [vmem:[#allocation2 + $0x658] sm:$0xff] }
 0x300   : > { %5421 = vmatpush.msrb.mxu3 %v5420_v49  ;;  %5275 = vmatpush.msrb.mxu1 %v10461_v39  ;;  %v12073_v39 = vld [vmem:[#allocation52_spill] sm:$0xff] }
 0x301   : > { %5448 = vmatpush.msra.mxu0 %v10536_v53  ;;  %5320 = vmatpush.msrb.mxu2 %v10702_v43  ;;  %v4384_v21 = vadd.f32 %v4383_v9, %v4325_v14  ;;  %v12079_v53 = vld [vmem:[#allocation67_spill] sm:$0xff]  ;;  %v12088_v49 = vld [vmem:[#allocation56_spill] sm:$0xff]  ;;  %v12089_v14 = vld [vmem:[#allocation54_spill] sm:$0xff] }
 0x302   : > { %5427 = vmatpush.msrb.mxu3 %v5426_v8  ;;  %5326 = vmatmul.f32.vlgmr.msrb.gmra.mxu2 %v12070_v44  ;;  %v4428_v10 = vpop.f32.mrf.mxu3  ;;  %v10921_v8 = vsub.f32 %v406_v12, %v10897_v31 }
 0x303   : > { %5451 = vmatpush.msra.mxu0 %v10550_v3  ;;  %5550 = vmatpush.msra.mxu2 %v12071_v2  ;;  %v10771_v20 = vadd.f32 %v4428_v10, %v4384_v21  ;;  %v398_v10 = vld [vmem:[#allocation2 + $0x648] sm:$0xff]  ;;  %v10937_v2 = vand.u32 4294901760, %v400_v18 }
 0x304   : > { %5277 = vmatpush.msrb.mxu1 %v10482_v15  ;;  %5433 = vmatpush.msrb.mxu3 %v5432_v63  ;;  %v12075_v15 = vand.u32 4294901760, %v10550_v3  ;;  %v12080_v3 = vld [vmem:[#allocation55_spill] sm:$0xff]  ;;  %v10928_v63 = vand.u32 4294901760, %v402_v34 }
 0x305   : > { %12072 = vst [vmem:[#allocation69_spill] sm:$0xff] %v10771_v20  ;;  %5435 = vmatmul.f32.vlgmr.msrb.gmra.mxu3 %v12073_v39  ;;  %5454 = vmatpush.msra.mxu0 %v10562_v57  ;;  %v12084_v57 = vand.u32 4294901760, %v10618_v38 }
 0x306   : > { %5554 = vmatpush.msra.mxu2 %v12074_v36  ;;  %5621 = vmatpush.msra.mxu3 %v10490_v41 }
 0x307   : > { %5279 = vmatpush.msrb.mxu1 %v10498_v33  ;;  %5244 = vmatmul.f32.gmra.mxu0 %v12059_v32  ;;  %v12077_v33 = vld [vmem:[#allocation59_spill] sm:$0xff] }
 0x308   : > { %5281 = vmatmul.f32.vlgmr.msrb.gmra.mxu1 %v12050_v61  ;;  %5457 = vmatpush.msra.mxu0 %v10575_v13 }
 0x309   : > { %5503 = vmatpush.msra.mxu1 %v10490_v41  ;;  %5558 = vmatpush.msra.mxu2 %v12075_v15  ;;  %v12078_v41 = vand.u32 4294901760, %v10575_v13  ;;  %v12082_v13 = vand.u32 4294901760, %v10607_v24  ;;  %v11632_v15 = vand.u32 4294901760, %v10921_v8 }
 0x30a   : > { %5623 = vmatpush.msra.mxu3 %v10517_v62  ;;  %5460 = vmatpush.msra.mxu0 %v10592_v42 }
 0x30b   : > { %5505 = vmatpush.msra.mxu1 %v10517_v62  ;;  %5562 = vmatpush.msra.mxu2 %v12076_v59  ;;  %v12081_v62 = vand.u32 4294901760, %v10592_v42  ;;  %v420_v42 = vld [vmem:[#allocation2 + $0x6f8] sm:$0xff] }
 0x30c   : > { %5625 = vmatpush.msra.mxu3 %v10529_v58  ;;  %5334 = vmatmul.f32.gmra.mxu2 %v12077_v33  ;;  %v10825_v61 = vand.u32 4294901760, %v420_v42  ;;  %v396_v59 = vld [vmem:[#allocation2 + $0x638] sm:$0xff] }
 0x30d   : > { %5463 = vmatpush.msra.mxu0 %v10607_v24  ;;  %5507 = vmatpush.msra.mxu1 %v10529_v58  ;;  %v12083_v58 = vld [vmem:[#allocation70_spill] sm:$0xff]  ;;  %v418_v24 = vld [vmem:[#allocation2 + $0x6e8] sm:$0xff] }
 0x30e   : > { %5566 = vmatpush.msra.mxu2 %v12078_v41  ;;  %5627 = vmatpush.msra.mxu3 %v12079_v53 }
 0x30f   : > { %5439 = vmatmul.f32.gmra.mxu3 %v12080_v3  ;;  %5466 = vmatpush.msra.mxu0 %v10618_v38  ;;  %v12086_v38 = vand.u32 4294901760, %v10645_v55 }
 0x310   : > { %5509 = vmatpush.msra.mxu1 %v12079_v53  ;;  %5570 = vmatpush.msra.mxu2 %v12081_v62  ;;  %v10950_v53 = vand.u32 4294901760, %v398_v10  ;;  %v10953_v62 = vsub.f32 %v402_v34, %v10928_v63 }
 0x311   : > { %5629 = vmatpush.msra.mxu3 %v10552_v17  ;;  %5285 = vmatmul.f32.gmra.mxu1 %v12059_v32 }
 0x312   : > { %5469 = vmatpush.msra.mxu0 %v10632_v6  ;;  %5511 = vmatpush.msra.mxu1 %v10552_v17  ;;  %v12085_v17 = vand.u32 4294901760, %v10632_v6  ;;  %v10832_v6 = vand.u32 4294901760, %v418_v24 }
 0x313   : > { %5574 = vmatpush.msra.mxu2 %v12082_v13  ;;  %5631 = vmatpush.msra.mxu3 %v12083_v58 }
 0x314   : > { %5472 = vmatpush.msra.mxu0 %v10645_v55  ;;  %5513 = vmatpush.msra.mxu1 %v12083_v58  ;;  %v414_v55 = vld [vmem:[#allocation2 + $0x6c8] sm:$0xff] }
 0x315   : > { %5578 = vmatpush.msra.mxu2 %v12084_v57  ;;  %5633 = vmatpush.msra.mxu3 %v10580_v40  ;;  %v394_v58 = vld [vmem:[#allocation2 + $0x628] sm:$0xff] }
 0x316   : > { %5475 = vmatpush.msra.mxu0 %v10658_v52  ;;  %5515 = vmatpush.msra.mxu1 %v10580_v40  ;;  %v416_v40 = vld [vmem:[#allocation2 + $0x6d8] sm:$0xff] }
 0x317   : > { %5582 = vmatpush.msra.mxu2 %v12085_v17  ;;  %5635 = vmatpush.msra.mxu3 %v10594_v11  ;;  %v412_v52 = vld [vmem:[#allocation2 + $0x6b8] sm:$0xff] }
 0x318   : > { %5478 = vmatpush.msra.mxu0 %v10671_v22  ;;  %5517 = vmatpush.msra.mxu1 %v10594_v11  ;;  %v10839_v11 = vand.u32 4294901760, %v416_v40  ;;  %v10854_v22 = vand.u32 4294901760, %v414_v55 }
 0x319   : > { %5586 = vmatpush.msra.mxu2 %v12086_v38  ;;  %5637 = vmatpush.msra.mxu3 %v10609_v54  ;;  %v5755_v38 = vsub.f32 %v10921_v8, %v11632_v15  ;;  %v438_v15 = vld [vmem:[#allocation2 + $0x788] sm:$0xff] }
 0x31a   : > { %5481 = vmatpush.msra.mxu0 %v10684_v60  ;;  %5519 = vmatpush.msra.mxu1 %v10609_v54  ;;  %v10842_v54 = vsub.f32 %v420_v42, %v10825_v61  ;;  %v10863_v32 = vsub.f32 %v416_v40, %v10839_v11  ;;  %v10961_v42 = vand.u32 4294901760, %v396_v59 }
 0x31b   : > { %5590 = vmatpush.msra.mxu2 %v5400_v30  ;;  %5639 = vmatpush.msra.mxu3 %v10620_v5  ;;  %v410_v30 = vld [vmem:[#allocation2 + $0x6a8] sm:$0xff] }
 0x31c   : > { %5484 = vmatpush.msra.mxu0 %v10700_v16  ;;  %5521 = vmatpush.msra.mxu1 %v10620_v5  ;;  %v10850_v5 = vsub.f32 %v418_v24, %v10832_v6  ;;  %v5712_v60 = vand.u32 4294901760, %v10842_v54  ;;  %v408_v16 = vld [vmem:[#allocation2 + $0x698] sm:$0xff]  ;;  %v10965_v24 = vsub.f32 %v400_v18, %v10937_v2 }
 0x31d   : > { %5594 = vmatpush.msra.mxu2 %v5406_v19  ;;  %5641 = vmatpush.msra.mxu3 %v10634_v0  ;;  %v12087_v19 = vld [vmem:[#allocation53_spill] sm:$0xff] }
 0x31e   : > { %5487 = vmatpush.msra.mxu0 %v10713_v23  ;;  %5523 = vmatpush.msra.mxu1 %v10634_v0  ;;  %v10859_v0 = vand.u32 4294901760, %v412_v52  ;;  %v5724_v23 = vand.u32 4294901760, %v10863_v32 }
 0x31f   : > { %5598 = vmatpush.msra.mxu2 %v5412_v46  ;;  %5643 = vmatpush.msra.mxu3 %v10647_v37  ;;  %v10873_v46 = vand.u32 4294901760, %v410_v30 }
 0x320   : > { %5490 = vmatpush.msra.mxu0 %v10724_v35  ;;  %5525 = vmatpush.msra.mxu1 %v10647_v37  ;;  %v5718_v37 = vand.u32 4294901760, %v10850_v5  ;;  %v5725_v1 = vsub.f32 %v10863_v32, %v5724_v23 }
 0x321   : > { %5602 = vmatpush.msra.mxu2 %v5418_v50  ;;  %5645 = vmatpush.msra.mxu3 %v10660_v45  ;;  %v10876_v50 = vsub.f32 %v414_v55, %v10854_v22  ;;  %v10903_v29 = vsub.f32 %v410_v30, %v10873_v46  ;;  %v10973_v55 = vand.u32 4294901760, %v394_v58  ;;  %v10977_v30 = vsub.f32 %v398_v10, %v10950_v53 }
 0x322   : > { %5493 = vmatmul.f32.vlgmr.msra.gmra.mxu0 %v12087_v19  ;;  %5527 = vmatpush.msra.mxu1 %v10660_v45  ;;  %v5713_v45 = vsub.f32 %v10842_v54, %v5712_v60  ;;  %v5719_v35 = vsub.f32 %v10850_v5, %v5718_v37  ;;  %v392_v19 = vld [vmem:[#allocation2 + $0x618] sm:$0xff] }
 0x323   : > { %5662 = vmatpush.msrb.mxu0 %v10825_v61  ;;  %5606 = vmatpush.msra.mxu2 %v5424_v51  ;;  %v10886_v51 = vsub.f32 %v412_v52, %v10859_v0  ;;  %v11637_v21 = vand.u32 4294901760, %v10903_v29  ;;  %v11628_v52 = vand.u32 4294901760, %v10953_v62  ;;  %v10995_v34 = vand.u32 4294901760, %v392_v19 }
 0x324   : > { %5647 = vmatpush.msra.mxu3 %v10675_v47  ;;  %5529 = vmatpush.msra.mxu1 %v10675_v47  ;;  %v10890_v47 = vand.u32 4294901760, %v408_v16  ;;  %v5714_v26 = vand.u32 4294901760, %v5713_v45  ;;  %v5720_v27 = vand.u32 4294901760, %v5719_v35  ;;  %v11627_v45 = vand.u32 4294901760, %v10965_v24 }
 0x325   : > { %5664 = vmatpush.msrb.mxu0 %v10832_v6  ;;  %5610 = vmatpush.msra.mxu2 %v5430_v28  ;;  %v5730_v28 = vand.u32 4294901760, %v10876_v50  ;;  %v5736_v4 = vand.u32 4294901760, %v10886_v51  ;;  %v5743_v41 = vsub.f32 %v10903_v29, %v11637_v21  ;;  %v10987_v35 = vsub.f32 %v396_v59, %v10961_v42  ;;  %v450_v59 = vld [vmem:[#allocation2 + $0x7e8] sm:$0xff] }
 0x326   : > { %5649 = vmatpush.msra.mxu3 %v10689_v25  ;;  %5612 = vmatmul.f32.vlgmr.msra.gmra.mxu2 %v12073_v39  ;;  %v10916_v56 = vsub.f32 %v408_v16, %v10890_v47  ;;  %v10999_v18 = vsub.f32 %v394_v58, %v10973_v55  ;;  %v12094_v21 = vld [vmem:[#allocation68_spill] sm:$0xff] }
 0x327   : > { %5666 = vmatpush.msrb.mxu0 %v10839_v11  ;;  %5817 = vmatpush.msrb.mxu2 %v10842_v54  ;;  %v5731_v9 = vsub.f32 %v10876_v50, %v5730_v28  ;;  %v5737_v44 = vsub.f32 %v10886_v51, %v5736_v4  ;;  %v5744_v40 = vand.u32 4294901760, %v5743_v41 }
 0x328   : > { %5531 = vmatpush.msra.mxu1 %v10689_v25  ;;  %5651 = vmatpush.msra.mxu3 %v10702_v43  ;;  %v10913_v25 = vand.u32 4294901760, %v404_v48  ;;  %v11625_v58 = vand.u32 4294901760, %v10999_v18 }
 0x329   : > { %5653 = vmatmul.f32.vlgmr.msra.gmra.mxu3 %v12073_v39  ;;  %5668 = vmatpush.msrb.mxu0 %v10854_v22  ;;  %v11634_v39 = vand.u32 4294901760, %v10916_v56  ;;  %v5732_v33 = vand.u32 4294901760, %v5731_v9  ;;  %v5738_v13 = vand.u32 4294901760, %v5737_v44  ;;  %v5773_v9 = vsub.f32 %v10965_v24, %v11627_v45  ;;  %v442_v45 = vld [vmem:[#allocation2 + $0x7a8] sm:$0xff] }
 0x32a   : > { %5820 = vmatpush.msrb.mxu2 %v10850_v5  ;;  %5875 = vmatpush.msrb.mxu3 %v10825_v61  ;;  %v10941_v36 = vsub.f32 %v404_v48, %v10913_v25  ;;  %v5756_v48 = vand.u32 4294901760, %v5755_v38 }
 0x32b   : > { %5533 = vmatpush.msra.mxu1 %v10702_v43  ;;  %5498 = vmatmul.f32.gmra.mxu0 %v12088_v49  ;;  %v5726_v43 = vand.u32 4294901760, %v5725_v1  ;;  %v5749_v57 = vsub.f32 %v10916_v56, %v11634_v39  ;;  %v5767_v1 = vsub.f32 %v10953_v62, %v11628_v52  ;;  %v390_v49 = vld [vmem:[#allocation2 + $0x608] sm:$0xff]  ;;  %v5774_v38 = vand.u32 4294901760, %v5773_v9  ;;  %v444_v9 = vld [vmem:[#allocation2 + $0x7b8] sm:$0xff]  ;;  %v12091_v52 = vld [vmem:[#allocation65_spill] sm:$0xff] }
 0x32c   : > { %5537 = vmatmul.f32.vlgmr.msra.gmra.mxu1 %v12089_v14  ;;  %5670 = vmatpush.msrb.mxu0 %v10859_v0  ;;  %v11631_v17 = vand.u32 4294901760, %v10941_v36  ;;  %v11012_v10 = vand.u32 4294901760, %v390_v49  ;;  %v11106_v39 = vand.u32 4294901760, %v438_v15 }
 0x32d   : > { %5715 = vmatpush.msrb.mxu1 %v5714_v26  ;;  %5823 = vmatpush.msrb.mxu2 %v10863_v32  ;;  %v5750_v16 = vand.u32 4294901760, %v5749_v57  ;;  %v452_v26 = vld [vmem:[#allocation2 + $0x7f8] sm:$0xff]  ;;  %v12093_v32 = vld [vmem:[#allocation61_spill] sm:$0xff] }
 0x32e   : > { %5877 = vmatpush.msrb.mxu3 %v10832_v6  ;;  %5672 = vmatpush.msrb.mxu0 %v10873_v46  ;;  %v5761_v12 = vsub.f32 %v10941_v36, %v11631_v17  ;;  %v11008_v44 = vand.u32 4294901760, %v452_v26  ;;  %v448_v57 = vld [vmem:[#allocation2 + $0x7d8] sm:$0xff] }
 0x32f   : > { %5721 = vmatpush.msrb.mxu1 %v5720_v27  ;;  %5826 = vmatpush.msrb.mxu2 %v10876_v50  ;;  %v11626_v27 = vand.u32 4294901760, %v10977_v30 }
 0x330   : > { %5879 = vmatpush.msrb.mxu3 %v10839_v11  ;;  %5616 = vmatmul.f32.gmra.mxu2 %v12080_v3  ;;  %v5762_v14 = vand.u32 4294901760, %v5761_v12  ;;  %v446_v12 = vld [vmem:[#allocation2 + $0x7c8] sm:$0xff] }
 0x331   : > { %5674 = vmatpush.msrb.mxu0 %v10890_v47  ;;  %5727 = vmatpush.msrb.mxu1 %v5726_v43  ;;  %v11624_v43 = vand.u32 4294901760, %v10987_v35  ;;  %v5779_v41 = vsub.f32 %v10977_v30, %v11626_v27 }
 0x332   : > { %5829 = vmatpush.msrb.mxu2 %v10886_v51  ;;  %5881 = vmatpush.msrb.mxu3 %v10854_v22  ;;  %v12096_v51 = vand.u32 4294901760, %v10903_v29 }
 0x333   : > { %5657 = vmatmul.f32.gmra.mxu3 %v12080_v3  ;;  %5676 = vmatpush.msrb.mxu0 %v10897_v31  ;;  %v12090_v3 = vld [vmem:[#allocation58_spill] sm:$0xff] }
 0x334   : > { %5733 = vmatpush.msrb.mxu1 %v5732_v33  ;;  %5832 = vmatpush.msrb.mxu2 %v10903_v29  ;;  %v5768_v33 = vand.u32 4294901760, %v5767_v1  ;;  %v5791_v1 = vsub.f32 %v10999_v18, %v11625_v58  ;;  %v12097_v29 = vld [vmem:[#allocation64_spill] sm:$0xff] }
 0x335   : > { %5883 = vmatpush.msrb.mxu3 %v10859_v0  ;;  %5543 = vmatmul.f32.gmra.mxu1 %v12090_v3  ;;  %v11029_v3 = vsub.f32 %v452_v26, %v11008_v44 }
 0x336   : > { %5678 = vmatpush.msrb.mxu0 %v10913_v25  ;;  %5739 = vmatpush.msrb.mxu1 %v5738_v13  ;;  %v11019_v13 = vsub.f32 %v392_v19, %v10995_v34  ;;  %v11031_v19 = vand.u32 4294901760, %v450_v59  ;;  %v5792_v27 = vand.u32 4294901760, %v5791_v1 }
 0x337   : > { %5835 = vmatpush.msrb.mxu2 %v10916_v56  ;;  %5885 = vmatpush.msrb.mxu3 %v10873_v46 }
 0x338   : > { %5680 = vmatpush.msrb.mxu0 %v10928_v63  ;;  %5745 = vmatpush.msrb.mxu1 %v5744_v40  ;;  %v5785_v40 = vsub.f32 %v10987_v35, %v11624_v43  ;;  %v11629_v26 = vand.u32 4294901760, %v11019_v13  ;;  %v11052_v43 = vand.u32 4294901760, %v446_v12 }
 0x339   : > { %5838 = vmatpush.msrb.mxu2 %v10921_v8  ;;  %5887 = vmatpush.msrb.mxu3 %v10890_v47 }
 0x33a   : > { %5682 = vmatpush.msrb.mxu0 %v10937_v2  ;;  %5751 = vmatpush.msrb.mxu1 %v5750_v16  ;;  %v11036_v16 = vsub.f32 %v390_v49, %v11012_v10  ;;  %v5786_v49 = vand.u32 4294901760, %v5785_v40 }
 0x33b   : > { %5841 = vmatpush.msrb.mxu2 %v10941_v36  ;;  %5889 = vmatpush.msrb.mxu3 %v10897_v31 }
 0x33c   : > { %5684 = vmatpush.msrb.mxu0 %v10950_v53  ;;  %5757 = vmatpush.msrb.mxu1 %v5756_v48  ;;  %v5780_v48 = vand.u32 4294901760, %v5779_v41  ;;  %v11050_v41 = vsub.f32 %v450_v59, %v11031_v19  ;;  %v11633_v58 = vand.u32 4294901760, %v11036_v16  ;;  %v11064_v59 = vand.u32 4294901760, %v444_v9 }
 0x33d   : > { %5844 = vmatpush.msrb.mxu2 %v10953_v62  ;;  %5891 = vmatpush.msrb.mxu3 %v10913_v25 }
 0x33e   : > { %5686 = vmatpush.msrb.mxu0 %v10961_v42  ;;  %5763 = vmatpush.msrb.mxu1 %v5762_v14  ;;  %v11043_v14 = vand.u32 4294901760, %v448_v57  ;;  %v11635_v1 = vand.u32 4294901760, %v11050_v41 }
 0x33f   : > { %5847 = vmatpush.msrb.mxu2 %v10965_v24  ;;  %5893 = vmatpush.msrb.mxu3 %v10928_v63 }
 0x340   : > { %5688 = vmatpush.msrb.mxu0 %v10973_v55  ;;  %5769 = vmatpush.msrb.mxu1 %v5768_v33  ;;  %v11630_v33 = vand.u32 4294901760, %v11029_v3  ;;  %v11062_v40 = vsub.f32 %v448_v57, %v11043_v14  ;;  %v440_v57 = vld [vmem:[#allocation2 + $0x798] sm:$0xff] }
 0x341   : > { %5850 = vmatpush.msrb.mxu2 %v10977_v30  ;;  %5895 = vmatpush.msrb.mxu3 %v10937_v2  ;;  %v11092_v54 = vand.u32 4294901760, %v440_v57 }
 0x342   : > { %5690 = vmatpush.msrb.mxu0 %v10995_v34  ;;  %5775 = vmatpush.msrb.mxu1 %v5774_v38  ;;  %v5797_v38 = vsub.f32 %v11019_v13, %v11629_v26  ;;  %v11074_v26 = vsub.f32 %v446_v12, %v11052_v43  ;;  %v11636_v17 = vand.u32 4294901760, %v11062_v40  ;;  %v11087_v12 = vsub.f32 %v444_v9, %v11064_v59 }
 0x343   : > { %5853 = vmatpush.msrb.mxu2 %v10987_v35  ;;  %5897 = vmatpush.msrb.mxu3 %v10950_v53 }
 0x344   : > { %5692 = vmatpush.msrb.mxu0 %v11012_v10  ;;  %5781 = vmatpush.msrb.mxu1 %v5780_v48  ;;  %v6085_v48 = vsub.f32 %v11029_v3, %v11630_v33  ;;  %v5798_v33 = vand.u32 4294901760, %v5797_v38  ;;  %v11638_v9 = vand.u32 4294901760, %v11074_v26  ;;  %v436_v38 = vld [vmem:[#allocation2 + $0x778] sm:$0xff] }
 0x345   : > { %5856 = vmatpush.msrb.mxu2 %v10999_v18  ;;  %5899 = vmatpush.msrb.mxu3 %v10961_v42 }
 0x346   : > { %5698 = vmatmul.f32.vlgmr.msrb.gmra.mxu0 %v12091_v52  ;;  %5787 = vmatpush.msrb.mxu1 %v5786_v49  ;;  %v5803_v52 = vsub.f32 %v11036_v16, %v11633_v58  ;;  %v11082_v49 = vand.u32 4294901760, %v442_v45  ;;  %v6086_v58 = vand.u32 4294901760, %v6085_v48  ;;  %v6097_v48 = vsub.f32 %v11062_v40, %v11636_v17  ;;  %v432_v17 = vld [vmem:[#allocation2 + $0x758] sm:$0xff] }
 0x347   : > { %5922 = vmatpush.msra.mxu0 %v5712_v60  ;;  %5859 = vmatpush.msrb.mxu2 %v11019_v13  ;;  %v12092_v60 = vld [vmem:[#allocation60_spill] sm:$0xff] }
 0x348   : > { %5901 = vmatpush.msrb.mxu3 %v10973_v55  ;;  %5793 = vmatpush.msrb.mxu1 %v5792_v27  ;;  %v6091_v27 = vsub.f32 %v11050_v41, %v11635_v1  ;;  %v5804_v5 = vand.u32 4294901760, %v5803_v52  ;;  %v434_v1 = vld [vmem:[#allocation2 + $0x768] sm:$0xff]  ;;  %v6103_v52 = vsub.f32 %v11074_v26, %v11638_v9  ;;  %v11144_v9 = vand.u32 4294901760, %v432_v17 }
 0x349   : > { %5926 = vmatpush.msra.mxu0 %v5718_v37  ;;  %5862 = vmatpush.msrb.mxu2 %v11036_v16  ;;  %v11104_v37 = vsub.f32 %v442_v45, %v11082_v49  ;;  %v11119_v45 = vand.u32 4294901760, %v436_v38 }
 0x34a   : > { %5903 = vmatpush.msrb.mxu3 %v10995_v34  ;;  %5865 = vmatmul.f32.vlgmr.msrb.gmra.mxu2 %v12092_v60  ;;  %v11639_v60 = vand.u32 4294901760, %v11087_v12 }
 0x34b   : > { %5930 = vmatpush.msra.mxu0 %v5724_v23  ;;  %6034 = vmatpush.msra.mxu2 %v11008_v44  ;;  %v11117_v23 = vsub.f32 %v440_v57, %v11092_v54  ;;  %v11640_v50 = vand.u32 4294901760, %v11104_v37  ;;  %v11130_v57 = vand.u32 4294901760, %v434_v1 }
 0x34c   : > { %5799 = vmatpush.msrb.mxu1 %v5798_v33  ;;  %5905 = vmatpush.msrb.mxu3 %v11012_v10  ;;  %v6092_v33 = vand.u32 4294901760, %v6091_v27  ;;  %v6109_v27 = vsub.f32 %v11087_v12, %v11639_v60 }
 0x34d   : > { %5909 = vmatmul.f32.vlgmr.msrb.gmra.mxu3 %v12093_v32  ;;  %5934 = vmatpush.msra.mxu0 %v5730_v28  ;;  %v11128_v28 = vsub.f32 %v438_v15, %v11106_v39  ;;  %v12095_v32 = vld [vmem:[#allocation48_spill] sm:$0xff]  ;;  %v11142_v15 = vsub.f32 %v436_v38, %v11119_v45  ;;  %v11155_v38 = vsub.f32 %v434_v1, %v11130_v57 }
 0x34e   : > { %6036 = vmatpush.msra.mxu2 %v11031_v19  ;;  %6087 = vmatpush.msra.mxu3 %v6086_v58  ;;  %v6098_v58 = vand.u32 4294901760, %v6097_v48  ;;  %v428_v48 = vld [vmem:[#allocation2 + $0x738] sm:$0xff]  ;;  %v11168_v1 = vsub.f32 %v432_v17, %v11144_v9 }
 0x34f   : > { %5805 = vmatpush.msrb.mxu1 %v5804_v5  ;;  %5706 = vmatmul.f32.gmra.mxu0 %v12094_v21  ;;  %v430_v5 = vld [vmem:[#allocation2 + $0x748] sm:$0xff]  ;;  %v11170_v60 = vand.u32 4294901760, %v428_v48 }
 0x350   : > { %5807 = vmatmul.f32.vlgmr.msrb.gmra.mxu1 %v12095_v32  ;;  %5938 = vmatpush.msra.mxu0 %v5736_v4  ;;  %v6104_v4 = vand.u32 4294901760, %v6103_v52  ;;  %v11157_v21 = vand.u32 4294901760, %v430_v5  ;;  %v12098_v52 = vand.u32 4294901760, %v10916_v56  ;;  %v12101_v56 = vand.u32 4294901760, %v10921_v8  ;;  %v12103_v8 = vld [vmem:[#allocation63_spill] sm:$0xff] }
 0x351   : > { %5993 = vmatpush.msra.mxu1 %v10825_v61  ;;  %6038 = vmatpush.msra.mxu2 %v11043_v14  ;;  %v6115_v61 = vsub.f32 %v11104_v37, %v11640_v50  ;;  %v424_v50 = vld [vmem:[#allocation2 + $0x718] sm:$0xff] }
 0x352   : > { %6093 = vmatpush.msra.mxu3 %v6092_v33  ;;  %5942 = vmatpush.msra.mxu0 %v12096_v51  ;;  %v6110_v33 = vand.u32 4294901760, %v6109_v27  ;;  %v12100_v27 = vld [vmem:[#allocation66_spill] sm:$0xff]  ;;  %v11181_v17 = vsub.f32 %v430_v5, %v11157_v21  ;;  %v11193_v5 = vsub.f32 %v428_v48, %v11170_v60  ;;  %v11198_v20 = vand.u32 4294901760, %v424_v50 }
 0x353   : > { %5995 = vmatpush.msra.mxu1 %v10832_v6  ;;  %6040 = vmatpush.msra.mxu2 %v11052_v43  ;;  %v12099_v6 = vand.u32 4294901760, %v11117_v23  ;;  %v12107_v48 = vand.u32 4294901760, %v10953_v62  ;;  %v12109_v62 = vand.u32 4294901760, %v10965_v24 }
 0x354   : > { %6099 = vmatpush.msra.mxu3 %v6098_v58  ;;  %5870 = vmatmul.f32.gmra.mxu2 %v12097_v29  ;;  %v426_v58 = vld [vmem:[#allocation2 + $0x728] sm:$0xff]  ;;  %v12102_v29 = vand.u32 4294901760, %v11128_v28 }
 0x355   : > { %5946 = vmatpush.msra.mxu0 %v12098_v52  ;;  %5997 = vmatpush.msra.mxu1 %v10839_v11  ;;  %v6121_v51 = vsub.f32 %v11117_v23, %v12099_v6  ;;  %v6116_v11 = vand.u32 4294901760, %v6115_v61  ;;  %v422_v6 = vld [vmem:[#allocation2 + $0x708] sm:$0xff] }
 0x356   : > { %6042 = vmatpush.msra.mxu2 %v11064_v59  ;;  %6105 = vmatpush.msra.mxu3 %v6104_v4  ;;  %v6127_v52 = vsub.f32 %v11128_v28, %v12102_v29  ;;  %v11185_v4 = vand.u32 4294901760, %v426_v58  ;;  %v6150_v29 = vand.u32 4294901760, %v11181_v17 }
 0x357   : > { %5915 = vmatmul.f32.gmra.mxu3 %v12100_v27  ;;  %5950 = vmatpush.msra.mxu0 %v12101_v56  ;;  %v6122_v61 = vand.u32 4294901760, %v6121_v51  ;;  %v12104_v27 = vand.u32 4294901760, %v11142_v15  ;;  %v12106_v51 = vand.u32 4294901760, %v11155_v38 }
 0x358   : > { %5999 = vmatpush.msra.mxu1 %v10854_v22  ;;  %6044 = vmatpush.msra.mxu2 %v11082_v49  ;;  %v12105_v22 = vand.u32 4294901760, %v10941_v36  ;;  %v11209_v36 = vsub.f32 %v426_v58, %v11185_v4 }
 0x359   : > { %6111 = vmatpush.msra.mxu3 %v6110_v33  ;;  %5811 = vmatmul.f32.gmra.mxu1 %v12103_v8  ;;  %v6133_v56 = vsub.f32 %v11142_v15, %v12104_v27  ;;  %v6128_v33 = vand.u32 4294901760, %v6127_v52  ;;  %v6139_v27 = vsub.f32 %v11155_v38, %v12106_v51  ;;  %v12108_v52 = vand.u32 4294901760, %v11168_v1 }
 0x35a   : > { %5954 = vmatpush.msra.mxu0 %v12105_v22  ;;  %6001 = vmatpush.msra.mxu1 %v10859_v0  ;;  %v11211_v0 = vand.u32 4294901760, %v422_v6  ;;  %v6156_v51 = vand.u32 4294901760, %v11193_v5  ;;  %v6162_v24 = vand.u32 4294901760, %v11209_v36 }
 0x35b   : > { %6046 = vmatpush.msra.mxu2 %v11092_v54  ;;  %6117 = vmatpush.msra.mxu3 %v6116_v11  ;;  %v6134_v11 = vand.u32 4294901760, %v6133_v56  ;;  %v6145_v22 = vsub.f32 %v11168_v1, %v12108_v52  ;;  %v6140_v58 = vand.u32 4294901760, %v6139_v27  ;;  %v12110_v56 = vand.u32 4294901760, %v10977_v30 }
 0x35c   : > { %5958 = vmatpush.msra.mxu0 %v12107_v48  ;;  %6003 = vmatpush.msra.mxu1 %v10873_v46  ;;  %v11222_v46 = vsub.f32 %v424_v50, %v11198_v20  ;;  %v12111_v27 = vand.u32 4294901760, %v10987_v35  ;;  %v6163_v48 = vsub.f32 %v11209_v36, %v6162_v24 }
 0x35d   : > { %6048 = vmatpush.msra.mxu2 %v11106_v39  ;;  %6123 = vmatpush.msra.mxu3 %v6122_v61  ;;  %v6151_v61 = vsub.f32 %v11181_v17, %v6150_v29  ;;  %v6146_v50 = vand.u32 4294901760, %v6145_v22  ;;  %v12117_v22 = vld [vmem:[#allocation76_spill] sm:$0xff] }
 0x35e   : > { %5962 = vmatpush.msra.mxu0 %v12109_v62  ;;  %6005 = vmatpush.msra.mxu1 %v10890_v47  ;;  %v11233_v47 = vsub.f32 %v422_v6, %v11211_v0  ;;  %v12112_v6 = vand.u32 4294901760, %v10999_v18  ;;  %v6164_v52 = vand.u32 4294901760, %v6163_v48 }
 0x35f   : > { %6050 = vmatpush.msra.mxu2 %v11119_v45  ;;  %6129 = vmatpush.msra.mxu3 %v6128_v33  ;;  %v6157_v33 = vsub.f32 %v11193_v5, %v6156_v51  ;;  %v6152_v30 = vand.u32 4294901760, %v6151_v61 }
 0x360   : > { %5966 = vmatpush.msra.mxu0 %v12110_v56  ;;  %6007 = vmatpush.msra.mxu1 %v10897_v31  ;;  %v6168_v31 = vand.u32 4294901760, %v11222_v46  ;;  %v6174_v35 = vand.u32 4294901760, %v11233_v47 }
 0x361   : > { %6052 = vmatpush.msra.mxu2 %v11130_v57  ;;  %6135 = vmatpush.msra.mxu3 %v6134_v11  ;;  %v12113_v11 = vand.u32 4294901760, %v11019_v13 }
 0x362   : > { %5970 = vmatpush.msra.mxu0 %v12111_v27  ;;  %6009 = vmatpush.msra.mxu1 %v10913_v25  ;;  %v6158_v25 = vand.u32 4294901760, %v6157_v33  ;;  %v6169_v18 = vsub.f32 %v11222_v46, %v6168_v31  ;;  %v6175_v13 = vsub.f32 %v11233_v47, %v6174_v35 }
 0x363   : > { %6054 = vmatpush.msra.mxu2 %v11144_v9  ;;  %6141 = vmatpush.msra.mxu3 %v6140_v58 }
 0x364   : > { %5974 = vmatpush.msra.mxu0 %v12112_v6  ;;  %6011 = vmatpush.msra.mxu1 %v10928_v63  ;;  %v12114_v63 = vand.u32 4294901760, %v11036_v16  ;;  %v12115_v16 = vld [vmem:[#allocation81_spill] sm:$0xff] }
 0x365   : > { %6056 = vmatpush.msra.mxu2 %v11157_v21  ;;  %6147 = vmatpush.msra.mxu3 %v6146_v50 }
 0x366   : > { %5978 = vmatpush.msra.mxu0 %v12113_v11  ;;  %6013 = vmatpush.msra.mxu1 %v10937_v2  ;;  %v6170_v2 = vand.u32 4294901760, %v6169_v18 }
 0x367   : > { %6058 = vmatpush.msra.mxu2 %v11170_v60  ;;  %6153 = vmatpush.msra.mxu3 %v6152_v30 }
 0x368   : > { %5982 = vmatpush.msra.mxu0 %v12114_v63  ;;  %6015 = vmatpush.msra.mxu1 %v10950_v53  ;;  %v6176_v53 = vand.u32 4294901760, %v6175_v13 }
 0x369   : > { %6060 = vmatpush.msra.mxu2 %v11185_v4  ;;  %6159 = vmatpush.msra.mxu3 %v6158_v25 }
 0x36a   : > { %5984 = vmatmul.f32.vlgmr.msra.gmra.mxu0 %v12095_v32  ;;  %6017 = vmatpush.msra.mxu1 %v10961_v42  ;;  %v12116_v42 = vand.u32 4294901760, %v11029_v3 }
 0x36b   : > { %6189 = vmatpush.msrb.mxu0 %v11029_v3  ;;  %6062 = vmatpush.msra.mxu2 %v11198_v20  ;;  %v12120_v3 = vand.u32 4294901760, %v11074_v26 }
 0x36c   : > { %6165 = vmatpush.msra.mxu3 %v6164_v52  ;;  %6019 = vmatpush.msra.mxu1 %v10973_v55  ;;  %v12118_v55 = vand.u32 4294901760, %v11050_v41 }
 0x36d   : > { %6192 = vmatpush.msrb.mxu0 %v11050_v41  ;;  %6064 = vmatpush.msra.mxu2 %v11211_v0  ;;  %v12123_v41 = vld [vmem:[#allocation79_spill] sm:$0xff] }
 0x36e   : > { %6171 = vmatpush.msra.mxu3 %v6170_v2  ;;  %6070 = vmatmul.f32.vlgmr.msra.gmra.mxu2 %v12115_v16 }
 0x36f   : > { %6195 = vmatpush.msrb.mxu0 %v11062_v40  ;;  %6294 = vmatpush.msrb.mxu2 %v12116_v42 }
 0x370   : > { %6021 = vmatpush.msra.mxu1 %v10995_v34  ;;  %6177 = vmatpush.msra.mxu3 %v6176_v53  ;;  %v12119_v34 = vand.u32 4294901760, %v11062_v40  ;;  %v12128_v40 = vand.u32 4294901760, %v11155_v38 }
 0x371   : > { %6179 = vmatmul.f32.vlgmr.msra.gmra.mxu3 %v12117_v22  ;;  %6198 = vmatpush.msrb.mxu0 %v11074_v26  ;;  %v12125_v26 = vand.u32 4294901760, %v11117_v23 }
 0x372   : > { %6298 = vmatpush.msrb.mxu2 %v12118_v55  ;;  %6365 = vmatpush.msrb.mxu3 %v11008_v44 }
 0x373   : > { %6023 = vmatpush.msra.mxu1 %v11012_v10  ;;  %5988 = vmatmul.f32.gmra.mxu0 %v12103_v8  ;;  %v12121_v10 = vld [vmem:[#allocation62_spill] sm:$0xff] }
 0x374   : > { %6025 = vmatmul.f32.vlgmr.msra.gmra.mxu1 %v12095_v32  ;;  %6201 = vmatpush.msrb.mxu0 %v11087_v12 }
 0x375   : > { %6247 = vmatpush.msrb.mxu1 %v11008_v44  ;;  %6302 = vmatpush.msrb.mxu2 %v12119_v34  ;;  %v12122_v44 = vand.u32 4294901760, %v11087_v12  ;;  %v4538_v12 = vpop.f32.mrf.mxu1 }
 0x376   : > { %6367 = vmatpush.msrb.mxu3 %v11031_v19  ;;  %6204 = vmatpush.msrb.mxu0 %v11104_v37 }
 0x377   : > { %6249 = vmatpush.msrb.mxu1 %v11031_v19  ;;  %6306 = vmatpush.msrb.mxu2 %v12120_v3  ;;  %v12124_v19 = vand.u32 4294901760, %v11104_v37  ;;  %v4583_v37 = vpop.f32.mrf.mxu2 }
 0x378   : > { %6369 = vmatpush.msrb.mxu3 %v11043_v14  ;;  %6078 = vmatmul.f32.gmra.mxu2 %v12121_v10 }
 0x379   : > { %6207 = vmatpush.msrb.mxu0 %v11117_v23  ;;  %6251 = vmatpush.msrb.mxu1 %v11043_v14  ;;  %v12127_v14 = vand.u32 4294901760, %v11142_v15  ;;  %v4692_v23 = vpop.f32.mrf.mxu3 }
 0x37a   : > { %6310 = vmatpush.msrb.mxu2 %v12122_v44  ;;  %6371 = vmatpush.msrb.mxu3 %v11052_v43 }
 0x37b   : > { %6183 = vmatmul.f32.gmra.mxu3 %v12123_v41  ;;  %6210 = vmatpush.msrb.mxu0 %v11128_v28 }
 0x37c   : > { %6253 = vmatpush.msrb.mxu1 %v11052_v43  ;;  %6314 = vmatpush.msrb.mxu2 %v12124_v19  ;;  %v12126_v43 = vand.u32 4294901760, %v11128_v28 }
 0x37d   : > { %6373 = vmatpush.msrb.mxu3 %v11064_v59  ;;  %6029 = vmatmul.f32.gmra.mxu1 %v12103_v8 }
 0x37e   : > { %6213 = vmatpush.msrb.mxu0 %v11142_v15  ;;  %6255 = vmatpush.msrb.mxu1 %v11064_v59  ;;  %v12129_v59 = vand.u32 4294901760, %v11168_v1 }
 0x37f   : > { %6318 = vmatpush.msrb.mxu2 %v12125_v26  ;;  %6375 = vmatpush.msrb.mxu3 %v11082_v49 }
 0x380   : > { %6216 = vmatpush.msrb.mxu0 %v11155_v38  ;;  %6257 = vmatpush.msrb.mxu1 %v11082_v49  ;;  %v12130_v49 = vld [vmem:[#allocation77_spill] sm:$0xff] }
 0x381   : > { %6322 = vmatpush.msrb.mxu2 %v12126_v43  ;;  %6377 = vmatpush.msrb.mxu3 %v11092_v54  ;;  %v4696_v32 = vpop.f32.mrf.mxu3 }
 0x382   : > { %6219 = vmatpush.msrb.mxu0 %v11168_v1  ;;  %6259 = vmatpush.msrb.mxu1 %v11092_v54  ;;  %v12131_v54 = vld [vmem:[#allocation78_spill] sm:$0xff] }
 0x383   : > { %6326 = vmatpush.msrb.mxu2 %v12127_v14  ;;  %6379 = vmatpush.msrb.mxu3 %v11106_v39 }
 0x384   : > { %6222 = vmatpush.msrb.mxu0 %v11181_v17  ;;  %6261 = vmatpush.msrb.mxu1 %v11106_v39  ;;  %v4497_v39 = vpop.f32.mrf.mxu0 }
 0x385   : > { %6330 = vmatpush.msrb.mxu2 %v12128_v40  ;;  %6381 = vmatpush.msrb.mxu3 %v11119_v45 }
 0x386   : > { %6225 = vmatpush.msrb.mxu0 %v11193_v5  ;;  %6263 = vmatpush.msrb.mxu1 %v11119_v45  ;;  %v12133_v45 = vld [vmem:[#allocation82_spill] sm:$0xff] }
 0x387   : > { %6334 = vmatpush.msrb.mxu2 %v12129_v59  ;;  %6383 = vmatpush.msrb.mxu3 %v11130_v57 }
 0x388   : > { %6228 = vmatpush.msrb.mxu0 %v11209_v36  ;;  %6265 = vmatpush.msrb.mxu1 %v11130_v57  ;;  %v4591_v57 = vpop.f32.mrf.mxu2 }
 0x389   : > { %6338 = vmatpush.msrb.mxu2 %v6150_v29  ;;  %6385 = vmatpush.msrb.mxu3 %v11144_v9  ;;  %v4910_v1 = vpop.f32.mrf.mxu3 }
 0x38a   : > { %6231 = vmatpush.msrb.mxu0 %v11222_v46  ;;  %6267 = vmatpush.msrb.mxu1 %v11144_v9  ;;  %v12132_v9 = vld [vmem:[#allocation80_spill] sm:$0xff] }
 0x38b   : > { %6342 = vmatpush.msrb.mxu2 %v6156_v51  ;;  %6387 = vmatpush.msrb.mxu3 %v11157_v21  ;;  %v4498_v51 = vadd.f32 %v4497_v39, %v10750_v7 }
 0x38c   : > { %6234 = vmatpush.msrb.mxu0 %v11233_v47  ;;  %6269 = vmatpush.msrb.mxu1 %v11157_v21 }
 0x38d   : > { %6346 = vmatpush.msrb.mxu2 %v6162_v24  ;;  %6389 = vmatpush.msrb.mxu3 %v11170_v60  ;;  %v4539_v46 = vadd.f32 %v4538_v12, %v4498_v51  ;;  %v12134_v24 = vld [vmem:[#allocation69_spill] sm:$0xff] }
 0x38e   : > { %6237 = vmatmul.f32.vlgmr.msrb.gmra.mxu0 %v12130_v49  ;;  %6271 = vmatpush.msrb.mxu1 %v11170_v60  ;;  %v4501_v60 = vpop.f32.mrf.mxu0 }
 0x38f   : > { %6350 = vmatpush.msrb.mxu2 %v6168_v31  ;;  %6391 = vmatpush.msrb.mxu3 %v11185_v4  ;;  %v4584_v61 = vadd.f32 %v4583_v37, %v4539_v46  ;;  %v4502_v47 = vadd.f32 %v4501_v60, %v12134_v24 }
 0x390   : > { %6273 = vmatpush.msrb.mxu1 %v11185_v4  ;;  %v4869_v15 = vpop.f32.mrf.mxu2 }
 0x391   : > { %6354 = vmatpush.msrb.mxu2 %v6174_v35  ;;  %6393 = vmatpush.msrb.mxu3 %v11198_v20  ;;  %v4914_v29 = vpop.f32.mrf.mxu3  ;;  %v4693_v33 = vadd.f32 %v4692_v23, %v4584_v61 }
 0x392   : > { %6356 = vmatmul.f32.vlgmr.msrb.gmra.mxu2 %v12117_v22  ;;  %6275 = vmatpush.msrb.mxu1 %v11198_v20  ;;  %v4542_v20 = vpop.f32.mrf.mxu1 }
 0x393   : > { %6395 = vmatpush.msrb.mxu3 %v11211_v0  ;;  %v4543_v27 = vadd.f32 %v4542_v20, %v4502_v47 }
 0x394   : > { %6397 = vmatmul.f32.vlgmr.msrb.gmra.mxu3 %v12117_v22  ;;  %6277 = vmatpush.msrb.mxu1 %v11211_v0 }
 0x395   : > { %6281 = vmatmul.f32.vlgmr.msrb.gmra.mxu1 %v12131_v54  ;;  %v4592_v48 = vadd.f32 %v4591_v57, %v4543_v27 }
 0x396   : > { %6242 = vmatmul.f32.gmra.mxu0 %v12132_v9  ;;  %v4750_v28 = vpop.f32.mrf.mxu0 }
 0x397   : > { %v4751_v30 = vadd.f32 %v4750_v28, %v4693_v33  ;;  %v4697_v18 = vadd.f32 %v4696_v32, %v4592_v48 }
 0x398   : > { %v4873_v8 = vpop.f32.mrf.mxu2 }
 0x399   : > { %v5166_v62 = vpop.f32.mrf.mxu3 }
 0x39a   : > { %6360 = vmatmul.f32.gmra.mxu2 %v12123_v41  ;;  %v4794_v21 = vpop.f32.mrf.mxu1 }
 0x39b   : > { %v4795_v35 = vadd.f32 %v4794_v21, %v4751_v30 }
 0x39c   : > { %6401 = vmatmul.f32.gmra.mxu3 %v12123_v41 }
 0x39d   : > { %6287 = vmatmul.f32.gmra.mxu1 %v12133_v45  ;;  %v4870_v63 = vadd.f32 %v4869_v15, %v4795_v35 }
 0x39e   : > { %v4755_v38 = vpop.f32.mrf.mxu0 }
 0x39f   : > { %v4756_v52 = vadd.f32 %v4755_v38, %v4697_v18  ;;  %v4911_v13 = vadd.f32 %v4910_v1, %v4870_v63 }
 0x3a0   : > { %v5122_v36 = vpop.f32.mrf.mxu2 }
 0x3a1   : > { %v5172_v31 = vpop.f32.mrf.mxu3 }
 0x3a2   : > { %v4800_v17 = vpop.f32.mrf.mxu1 }
 0x3a3   : > { %v4801_v2 = vadd.f32 %v4800_v17, %v4756_v52 }
 0x3a5   : > { %v4874_v22 = vadd.f32 %v4873_v8, %v4801_v2 }
 0x3a6   : > { %v4955_v4 = vpop.f32.mrf.mxu0 }
 0x3a7   : > { %v4956_v16 = vadd.f32 %v4955_v4, %v4911_v13  ;;  %v4915_v10 = vadd.f32 %v4914_v29, %v4874_v22 }
 0x3a8   : > { %v5127_v50 = vpop.f32.mrf.mxu2 }
 0x3a9   : > { %v5436_v7 = vpop.f32.mrf.mxu3 }
 0x3aa   : > { %v5064_v5 = vpop.f32.mrf.mxu1 }
 0x3ab   : > { %v5065_v55 = vadd.f32 %v5064_v5, %v4956_v16 }
 0x3ad   : > { %v5123_v44 = vadd.f32 %v5122_v36, %v5065_v55 }
 0x3ae   : > { %v4963_v0 = vpop.f32.mrf.mxu0 }
 0x3af   : > { %v4964_v19 = vadd.f32 %v4963_v0, %v4915_v10  ;;  %v5167_v26 = vadd.f32 %v5166_v62, %v5123_v44 }
 0x3b0   : > { %v5327_v25 = vpop.f32.mrf.mxu2 }
 0x3b1   : > { %v5440_v3 = vpop.f32.mrf.mxu3 }
 0x3b2   : > { %v5068_v58 = vpop.f32.mrf.mxu1 }
 0x3b3   : > { %v5069_v43 = vadd.f32 %v5068_v58, %v4964_v19 }
 0x3b5   : > { %v5128_v49 = vadd.f32 %v5127_v50, %v5069_v43 }
 0x3b6   : > { %v5241_v56 = vpop.f32.mrf.mxu0 }
 0x3b7   : > { %v5242_v59 = vadd.f32 %v5241_v56, %v5167_v26  ;;  %v5173_v9 = vadd.f32 %v5172_v31, %v5128_v49 }
 0x3b8   : > { %v5335_v34 = vpop.f32.mrf.mxu2 }
 0x3b9   : > { %v5654_v39 = vpop.f32.mrf.mxu3 }
 0x3ba   : > { %v5282_v6 = vpop.f32.mrf.mxu1 }
 0x3bb   : > { %v5283_v12 = vadd.f32 %v5282_v6, %v5242_v59 }
 0x3bd   : > { %v5328_v37 = vadd.f32 %v5327_v25, %v5283_v12 }
 0x3be   : > { %v5245_v11 = vpop.f32.mrf.mxu0 }
 0x3bf   : > { %v5246_v23 = vadd.f32 %v5245_v11, %v5173_v9  ;;  %v5437_v20 = vadd.f32 %v5436_v7, %v5328_v37 }
 0x3c0   : > { %v5613_v14 = vpop.f32.mrf.mxu2 }
 0x3c1   : > { %v5658_v57 = vpop.f32.mrf.mxu3 }
 0x3c2   : > { %v5286_v53 = vpop.f32.mrf.mxu1 }
 0x3c3   : > { %v5287_v28 = vadd.f32 %v5286_v53, %v5246_v23 }
 0x3c5   : > { %v5336_v15 = vadd.f32 %v5335_v34, %v5287_v28 }
 0x3c6   : > { %v5494_v42 = vpop.f32.mrf.mxu0 }
 0x3c7   : > { %v5495_v32 = vadd.f32 %v5494_v42, %v5437_v20  ;;  %v5441_v4 = vadd.f32 %v5440_v3, %v5336_v15 }
 0x3c8   : > { %v5617_v45 = vpop.f32.mrf.mxu2 }
 0x3ca   : > { %v5538_v41 = vpop.f32.mrf.mxu1 }
 0x3cb   : > { %v5539_v38 = vadd.f32 %v5538_v41, %v5495_v32 }
 0x3cd   : > { %v5614_v8 = vadd.f32 %v5613_v14, %v5539_v38 }
 0x3ce   : > { %v5499_v40 = vpop.f32.mrf.mxu0 }
 0x3cf   : > { %v5500_v5 = vadd.f32 %v5499_v40, %v5441_v4  ;;  %v5655_v36 = vadd.f32 %v5654_v39, %v5614_v8 }
 0x3d0   : > { %v5866_v1 = vpop.f32.mrf.mxu2  ;;  %v5910_v29 = vpop.f32.mrf.mxu3 }
 0x3d2   : > { %v5544_v54 = vpop.f32.mrf.mxu1 }
 0x3d3   : > { %v5545_v0 = vadd.f32 %v5544_v54, %v5500_v5 }
 0x3d5   : > { %v5618_v58 = vadd.f32 %v5617_v45, %v5545_v0 }
 0x3d6   : > { %v5699_v60 = vpop.f32.mrf.mxu0 }
 0x3d7   : > { %v5700_v62 = vadd.f32 %v5699_v60, %v5655_v36  ;;  %v5659_v47 = vadd.f32 %v5658_v57, %v5618_v58 }
 0x3d8   : > { %v5871_v56 = vpop.f32.mrf.mxu2 }
 0x3da   : > { %v5808_v21 = vpop.f32.mrf.mxu1  ;;  %v5916_v24 = vpop.f32.mrf.mxu3 }
 0x3db   : > { %v5809_v61 = vadd.f32 %v5808_v21, %v5700_v62 }
 0x3dd   : > { %v5867_v50 = vadd.f32 %v5866_v1, %v5809_v61 }
 0x3de   : > { %v5707_v17 = vpop.f32.mrf.mxu0 }
 0x3df   : > { %v5708_v27 = vadd.f32 %v5707_v17, %v5659_v47  ;;  %v5911_v31 = vadd.f32 %v5910_v29, %v5867_v50 }
 0x3e2   : > { %v5812_v51 = vpop.f32.mrf.mxu1 }
 0x3e3   : > { %v5813_v30 = vadd.f32 %v5812_v51, %v5708_v27 }
 0x3e5   : > { %v5872_v11 = vadd.f32 %v5871_v56, %v5813_v30 }
 0x3e7   : > { %v5985_v46 = vpop.f32.mrf.mxu0  ;;  %v5917_v7 = vadd.f32 %v5916_v24, %v5872_v11 }
 0x3e8   : > { %v5986_v35 = vadd.f32 %v5985_v46, %v5911_v31 }
 0x3f0   : > { %v5989_v48 = vpop.f32.mrf.mxu0 }
 0x3f1   : > { %v6026_v33 = vpop.f32.mrf.mxu1  ;;  %v6071_v6 = vpop.f32.mrf.mxu2  ;;  %v5990_v2 = vadd.f32 %v5989_v48, %v5917_v7 }
 0x3f2   : > { %v6027_v18 = vadd.f32 %v6026_v33, %v5986_v35 }
 0x3f4   : > { %v6180_v25 = vpop.f32.mrf.mxu3  ;;  %v6072_v52 = vadd.f32 %v6071_v6, %v6027_v18 }
 0x3f6   : > { %v6181_v16 = vadd.f32 %v6180_v25, %v6072_v52 }
 0x3fa   : > { %v6030_v63 = vpop.f32.mrf.mxu1 }
 0x3fb   : > { %v6079_v53 = vpop.f32.mrf.mxu2  ;;  %v6031_v42 = vadd.f32 %v6030_v63, %v5990_v2 }
 0x3fd   : > { %v6080_v3 = vadd.f32 %v6079_v53, %v6031_v42 }
 0x3fe   : > { %v6184_v22 = vpop.f32.mrf.mxu3 }
 0x3ff   : > { %v6185_v26 = vadd.f32 %v6184_v22, %v6080_v3 }
 0x40b   : > { %v6238_v13 = vpop.f32.mrf.mxu0 }
 0x40c   : > { %v6239_v55 = vadd.f32 %v6238_v13, %v6181_v16 }
 0x412   : > { %v6282_v34 = vpop.f32.mrf.mxu1 }
 0x413   : > { %v6283_v10 = vadd.f32 %v6282_v34, %v6239_v55  ;;  %v6243_v41 = vpop.f32.mrf.mxu0 }
 0x414   : > { %v6244_v40 = vadd.f32 %v6243_v41, %v6185_v26 }
 0x415   : > { %v6357_v44 = vpop.f32.mrf.mxu2 }
 0x416   : > { %v6358_v19 = vadd.f32 %v6357_v44, %v6283_v10 }
 0x417   : > { %v6398_v43 = vpop.f32.mrf.mxu3 }
 0x418   : > { %v6399_v14 = vadd.f32 %v6398_v43, %v6358_v19 }
 0x41a   : > { %6406 = vst [vmem:[%s9955_s20 + $0x18] sm:$0xff] %v6399_v14  ;;  %v6288_v59 = vpop.f32.mrf.mxu1 }
 0x41b   : > { %v6289_v39 = vadd.f32 %v6288_v59, %v6244_v40 }
 0x41d   : > { %v6361_v49 = vpop.f32.mrf.mxu2 }
 0x41e   : > { %v6362_v12 = vadd.f32 %v6361_v49, %v6289_v39 }
 0x41f   : > { %v6402_v54 = vpop.f32.mrf.mxu3 }
 0x420   : > { %v6403_v9 = vadd.f32 %v6402_v54, %v6362_v12 }
 0x422   : > { %6408 = vst [vmem:[%s9955_s20 + $0x28] sm:$0xff] %v6403_v9 }
 0x423   : > { %6683 = shalt.err (!%p6680_p10)
}
 0x424   : > { %s6734_s5 = smov 256   ;;  %s6735_s6 = smov 16  }
 0x425   : > { %6538 = dma.vmem_to_hbm [thread:$0]  (%p6818_p7), %s6427_s21, 1024, %s6429_s22, %s6414_s13, %s6734_s5, %s6734_s5, %s6735_s6  }
 0x426 PF: > { %s6443_s7 = sand.u32 1, %s6714_s9   ;;  %p12135_p12 = scmp.ge.s32.totalorder %s6726_s12, 2 }
 0x427   : > { %s6444_s14 = scalar_lea.sflag [#allocation4], %s6443_s7 }
 0x428   : > { %p6549_p13 = pnand %p12135_p12, %p6786_p6 }
 0x42a   : > { %p6550_p0 = pneg %p6549_p13 }
 0x42c   : > { %6709 = dma.done.wait (%p6550_p0), %s6444_s14, 1024  }
 0x42d   : > { %6711 = vsyncadd (%p6550_p0), %s6444_s14, 4294966272  ;;  %p16_p3 = scmp.ge.s32.totalorder %s6804_s23, 4   ;;  %s12136_s9 = smov %s6718_s10 }
 0x42e   : > { %s12137_s10 = smov %s6722_s11  ;;  %s12138_s11 = smov %s6814_s28 }
 0x42f   : > { %s12139_s12 = smov %s6804_s23  ;;  %18 = sbr.rel (!%p16_p3) target bundleno = 6 (0x6), region = 78 }
 0x434   :  { %6450 = vsyncpa [#allocation3], 1 }
 0x435   :  { %6452 = vsyncpa [#allocation3 + $0x1], 1 }
 0x436   :  { %6453 = vsyncpa [#allocation6], 1 }
 0x437   :  { %6455 = vsyncpa [#allocation6 + $0x1], 1 }
 0x438   :  { %6456 = vsyncpa [#allocation4], 1 }
 0x439   :  { %6458 = vsyncpa [#allocation4 + $0x1], 1 }

</bundles_post_ra>
